<compile_context>
chip_gen: v7x
topology: tpu7x:2x2x1
jax: 0.10.0
libtpu: 0.0.40
codegen_flags: <defaults>
</compile_context>

<pallas_src>
import functools

import jax
import jax.numpy as jnp
from jax.experimental import pallas as pl
from jax.experimental.pallas import tpu as pltpu


# ----------------------------------------------------------------------------
# Fused Pallas kernel: whole forward pass for one batch tile
# ----------------------------------------------------------------------------
def _convnet_kernel(x_ref, t1_ref, b1_ref, t2_ref, b2_ref,
                    wf1_ref, bf1_ref, wf2_ref, bf2_ref,
                    o_ref, p1_ref, p2_ref):
    f32 = jnp.float32
    bf16 = jnp.bfloat16

    t1 = t1_ref[...]            # (140, 256) bf16   rows = ki*28 + w_in
    b1 = b1_ref[...]            # (1, 256)   f32    lanes = w_out*10 + oc
    t2 = t2_ref[...]            # (768, 128) bf16   rows = ki*256 + w_in*10 + ci
    b2 = b2_ref[...]            # (1, 128)   f32    lanes = w_out*12 + oc

    # ---- conv1 (1->10, 5x5) + bias + ReLU + 2x2 maxpool ---------------------
    # Output row h of conv1 needs image rows h..h+4, which are adjacent lanes
    # of the flattened (Bt, 784) input -> a single K=140 MXU dot per row.
    def conv1_row(h):
        lhs = x_ref[:, h * 28: h * 28 + 140]             # (Bt, 140) bf16
        return jnp.maximum(jnp.dot(lhs, t1, preferred_element_type=f32) + b1, 0.0)

    for hp in range(12):
        m = jnp.maximum(conv1_row(2 * hp), conv1_row(2 * hp + 1))   # vertical max
        m = jnp.maximum(m, pltpu.roll(m, shift=256 - 10, axis=1))   # horizontal max
        # Valid data sits at lanes (2k)*10 + oc, k in [0,12); the odd-w and pad
        # lanes are ignored downstream because t2 has zero rows there.
        p1_ref[:, hp * 256:(hp + 1) * 256] = m.astype(bf16)

    # ---- conv2 (10->12, 3x3) + bias + ReLU + 2x2 maxpool --------------------
    def conv2_row(h):
        lhs = p1_ref[:, h * 256:(h + 3) * 256]           # (Bt, 768) bf16, aligned
        return jnp.maximum(jnp.dot(lhs, t2, preferred_element_type=f32) + b2, 0.0)

    for hp in range(5):
        m = jnp.maximum(conv2_row(2 * hp), conv2_row(2 * hp + 1))
        m = jnp.maximum(m, pltpu.roll(m, shift=128 - 12, axis=1))
        p2_ref[:, hp * 128:(hp + 1) * 128] = m.astype(bf16)

    # ---- fc1 (300->20) + ReLU ------------------------------------------------
    # wf1 is permuted to the (row, w, channel) lane layout of p2, with zero rows
    # at odd-w / pad lanes and zero-padded output columns 20..127.
    h1 = jnp.dot(p2_ref[...], wf1_ref[...], preferred_element_type=f32) + bf1_ref[...]
    h1 = jnp.maximum(h1, 0.0).astype(bf16)               # (Bt, 128)

    # ---- fc2 (20->10) + log_softmax(dim=1) -----------------------------------
    # Pad lanes carry a -1e30 bias, so they vanish from the softmax sum.
    logits = jnp.dot(h1, wf2_ref[...], preferred_element_type=f32) + bf2_ref[...]
    z = logits - jnp.max(logits, axis=-1, keepdims=True)
    o_ref[...] = z - jnp.log(jnp.sum(jnp.exp(z), axis=-1, keepdims=True))


# ----------------------------------------------------------------------------
# One-time parameter preparation (banded conv matrices with pooling compaction
# folded in as zero rows, fc1 column permutation, lane padding, bf16 casts)
# ----------------------------------------------------------------------------
def prepare_params(params):
    bf16 = jnp.bfloat16
    f32 = jnp.float32
    w1, b1 = params["w1"], params["b1"]       # (10,1,5,5), (10,)
    w2, b2 = params["w2"], params["b2"]       # (12,10,3,3), (12,)
    wf1, bf1 = params["wf1"], params["bf1"]   # (20,300), (20,)
    wf2, bf2 = params["wf2"], params["bf2"]   # (10,20), (10,)

    # conv1 banded matrix: t1[ki*28 + wi, wo*10 + oc] = w1[oc, 0, ki, wi - wo]
    kj1 = jnp.arange(5)[:, None, None]
    wi1 = jnp.arange(28)[None, :, None]
    wo1 = jnp.arange(24)[None, None, :]
    shift1 = (wi1 == wo1 + kj1).astype(f32)                        # (5, 28, 24)
    t1 = jnp.einsum("jxw,oij->ixwo", shift1, w1[:, 0])             # (5,28,24,10)
    t1 = jnp.pad(t1.reshape(140, 240), ((0, 0), (0, 16)))          # (140, 256)

    # conv2 banded matrix with the pool-1 even-column compaction folded in:
    # t2[ki*256 + win*10 + ci, wo*12 + oc] = w2[oc, ci, ki, k - wo] for win = 2k,
    # zero rows at odd win / pad positions.
    kj2 = jnp.arange(3)[:, None, None]
    kin = jnp.arange(12)[None, :, None]
    wo2 = jnp.arange(10)[None, None, :]
    shift2 = (kin == wo2 + kj2).astype(f32)                        # (3, 12, 10)
    t2c = jnp.einsum("jkw,ocij->ikcwo", shift2, w2)                # (3,12,10,10,12)
    t2 = jnp.zeros((3, 24, 10, 128), f32)
    t2 = t2.at[:, 0::2, :, :120].set(t2c.reshape(3, 12, 10, 120))
    t2 = jnp.pad(t2.reshape(3, 240, 128), ((0, 0), (0, 16), (0, 0)))
    t2 = t2.reshape(768, 128)

    # fc1: permute torch (c*25 + h*5 + w) columns to the kernel's pooled lane
    # layout (row h, lane = 2w*12 + c), zero rows at odd-w / pad lanes.
    wt = wf1.reshape(20, 12, 5, 5)                                  # [n, c, h, w]
    wf1k = jnp.zeros((5, 10, 12, 128), f32)
    wf1k = wf1k.at[:, 0::2, :, :20].set(jnp.transpose(wt, (2, 3, 1, 0)))
    wf1k = jnp.pad(wf1k.reshape(5, 120, 128), ((0, 0), (0, 8), (0, 0)))
    wf1k = wf1k.reshape(640, 128)

    wf2k = jnp.zeros((128, 128), f32).at[:20, :10].set(wf2.T)

    return {
        "t1": t1.astype(bf16),
        "b1": jnp.pad(jnp.tile(b1, 24), (0, 16)).reshape(1, 256).astype(f32),
        "t2": t2.astype(bf16),
        "b2": jnp.pad(jnp.tile(b2, 10), (0, 8)).reshape(1, 128).astype(f32),
        "wf1": wf1k.astype(bf16),
        "bf1": jnp.pad(bf1, (0, 108)).reshape(1, 128).astype(f32),
        "wf2": wf2k.astype(bf16),
        "bf2": jnp.full((128,), -1e30, f32).at[:10].set(bf2).reshape(1, 128),
    }


# ----------------------------------------------------------------------------
# Batch-tile selection: one full-height MXU pass per push (128 on v5e, 256 on
# v6e/v7x) while keeping >=2 grid steps when the batch allows (v7x dual TC).
# ----------------------------------------------------------------------------
def _pick_block_b(batch):
    max_bt = 256
    try:
        kind = jax.devices()[0].device_kind.lower()
        if ("v5 lite" in kind) or ("v5lite" in kind) or ("v5e" in kind):
            max_bt = 128
    except Exception:
        pass
    half = -(-batch // 2)                 # ceil(batch / 2)
    bt = -(-half // 16) * 16              # round up to bf16 sublane tile
    return int(max(16, min(max_bt, bt)))


# ----------------------------------------------------------------------------
# Forward wrapper: batch-tiled grid, 'parallel' semantics, lane-dense output
# ----------------------------------------------------------------------------
@functools.partial(jax.jit, static_argnames=("block_b",))
def convnet_forward(kparams, x, block_b=None):
    B = x.shape[0]
    if block_b is None:
        block_b = _pick_block_b(B)
    bp = pl.cdiv(B, block_b) * block_b

    # Flatten (B,1,28,28) -> (B,784): conv1's 5-row windows become adjacent
    # lane slices inside the kernel (no HBM im2col).
    xk = x.reshape(B, 784).astype(jnp.bfloat16)
    if bp != B:
        xk = jnp.pad(xk, ((0, bp - B), (0, 0)))

    kp = kparams
    out = pl.pallas_call(
        _convnet_kernel,
        out_shape=jax.ShapeDtypeStruct((bp, 128), jnp.float32),
        grid=(bp // block_b,),
        in_specs=[
            pl.BlockSpec((block_b, 784), lambda i: (i, 0)),   # x tile
            pl.BlockSpec((140, 256), lambda i: (0, 0)),       # t1
            pl.BlockSpec((1, 256), lambda i: (0, 0)),         # b1
            pl.BlockSpec((768, 128), lambda i: (0, 0)),       # t2
            pl.BlockSpec((1, 128), lambda i: (0, 0)),         # b2
            pl.BlockSpec((640, 128), lambda i: (0, 0)),       # wf1
            pl.BlockSpec((1, 128), lambda i: (0, 0)),         # bf1
            pl.BlockSpec((128, 128), lambda i: (0, 0)),       # wf2
            pl.BlockSpec((1, 128), lambda i: (0, 0)),         # bf2
        ],
        out_specs=pl.BlockSpec((block_b, 128), lambda i: (i, 0)),
        scratch_shapes=[
            pltpu.VMEM((block_b, 12 * 256), jnp.bfloat16),    # pooled conv1 rows
            pltpu.VMEM((block_b, 5 * 128), jnp.bfloat16),     # pooled conv2 rows
        ],
        compiler_params=pltpu.CompilerParams(
            dimension_semantics=("parallel",)),
    )(xk, kp["t1"], kp["b1"], kp["t2"], kp["b2"],
      kp["wf1"], kp["bf1"], kp["wf2"], kp["bf2"])
    return out[:B, :10]


# ----------------------------------------------------------------------------
# Params init + pure-XLA reference (sanity check of kernel + weight layouts)
# ----------------------------------------------------------------------------
def init_params(key):
    """Deterministic init mimicking PyTorch's uniform(-1/sqrt(fan_in), +...)."""
    ks = jax.random.split(key, 8)

    def uni(k, shape, fan_in):
        bound = 1.0 / float(fan_in) ** 0.5
        return jax.random.uniform(k, shape, jnp.float32, -bound, bound)

    return {
        "w1": uni(ks[0], (10, 1, 5, 5), 1 * 5 * 5),
        "b1": uni(ks[1], (10,), 1 * 5 * 5),
        "w2": uni(ks[2], (12, 10, 3, 3), 10 * 3 * 3),
        "b2": uni(ks[3], (12,), 10 * 3 * 3),
        "wf1": uni(ks[4], (20, 12 * 5 * 5), 12 * 5 * 5),
        "bf1": uni(ks[5], (20,), 12 * 5 * 5),
        "wf2": uni(ks[6], (10, 20), 20),
        "bf2": uni(ks[7], (10,), 20),
    }


def reference_forward(params, x):
    """Pure-JAX (XLA) reference of the PyTorch forward."""
    dn = ("NCHW", "OIHW", "NCHW")
    y = jax.lax.conv_general_dilated(x, params["w1"], (1, 1), "VALID",
                                     dimension_numbers=dn)
    y = jax.nn.relu(y + params["b1"][None, :, None, None])
    y = jax.lax.reduce_window(y, -jnp.inf, jax.lax.max,
                              (1, 1, 2, 2), (1, 1, 2, 2), "VALID")
    y = jax.lax.conv_general_dilated(y, params["w2"], (1, 1), "VALID",
                                     dimension_numbers=dn)
    y = jax.nn.relu(y + params["b2"][None, :, None, None])
    y = jax.lax.reduce_window(y, -jnp.inf, jax.lax.max,
                              (1, 1, 2, 2), (1, 1, 2, 2), "VALID")
    y = y.reshape(x.shape[0], -1)
    y = jax.nn.relu(y @ params["wf1"].T + params["bf1"])
    y = y @ params["wf2"].T + params["bf2"]
    return jax.nn.log_softmax(y, axis=1)


if __name__ == "__main__":
    key = jax.random.PRNGKey(0)
    k_params, k_x = jax.random.split(key)
    k_x1, k_x2 = jax.random.split(k_x)
    params = init_params(k_params)
    kparams = prepare_params(params)

    # fc1 = Linear(12*5*5, 20) forces 28x28 spatial input (MNIST), 1 channel.
    x = jax.random.normal(k_x1, (2, 1, 28, 28), dtype=jnp.float32)
    out = jax.block_until_ready(convnet_forward(kparams, x))
    assert out.shape == (2, 10) and out.dtype == jnp.float32

    # log_softmax rows exponentiate to ~1 and match the f32 XLA reference
    # (kernel uses bf16 MXU operands, hence the tolerance).
    ref = reference_forward(params, x)
    assert bool(jnp.all(jnp.abs(jnp.exp(out).sum(axis=1) - 1.0) < 2e-3))
    assert float(jnp.max(jnp.abs(out - ref))) < 5e-2

    # Second shape exercises a multi-step grid (block_b < B) and batch padding.
    x2 = jax.random.normal(k_x2, (37, 1, 28, 28), dtype=jnp.float32)
    out2 = jax.block_until_ready(convnet_forward(kparams, x2))
    ref2 = reference_forward(params, x2)
    assert out2.shape == (37, 10)
    assert float(jnp.max(jnp.abs(out2 - ref2))) < 5e-2

    print("KERNEL_OK")
</pallas_src>

<mosaic_0001>
module attributes {stable_mosaic.version = 11 : i64} {
  func.func @_convnet_kernel(%arg0: i32, %arg1: memref<16x784xbf16, #tpu.memory_space<vmem>>, %arg2: memref<140x256xbf16, #tpu.memory_space<vmem>>, %arg3: memref<1x256xf32, #tpu.memory_space<vmem>>, %arg4: memref<768x128xbf16, #tpu.memory_space<vmem>>, %arg5: memref<1x128xf32, #tpu.memory_space<vmem>>, %arg6: memref<640x128xbf16, #tpu.memory_space<vmem>>, %arg7: memref<1x128xf32, #tpu.memory_space<vmem>>, %arg8: memref<128x128xbf16, #tpu.memory_space<vmem>>, %arg9: memref<1x128xf32, #tpu.memory_space<vmem>>, %arg10: memref<16x128xf32, #tpu.memory_space<vmem>>, %arg11: memref<16x3072xbf16, #tpu.memory_space<vmem>>, %arg12: memref<16x640xbf16, #tpu.memory_space<vmem>>) attributes {dimension_semantics = [#tpu.dimension_semantics<parallel>], iteration_bounds = array<i64: 1>, scalar_prefetch = 0 : i64, scratch_operands = 2 : i64, tpu.core_type = #tpu.core_type<tc>, window_params = [{transform_indices = @transform_0, window_bounds = array<i64: 16, 784>}, {pipeline_mode = #tpu.pipeline_mode<synchronous>, transform_indices = @transform_1, window_bounds = array<i64: 140, 256>}, {pipeline_mode = #tpu.pipeline_mode<synchronous>, transform_indices = @transform_2, window_bounds = array<i64: 1, 256>}, {pipeline_mode = #tpu.pipeline_mode<synchronous>, transform_indices = @transform_3, window_bounds = array<i64: 768, 128>}, {pipeline_mode = #tpu.pipeline_mode<synchronous>, transform_indices = @transform_4, window_bounds = array<i64: 1, 128>}, {pipeline_mode = #tpu.pipeline_mode<synchronous>, transform_indices = @transform_5, window_bounds = array<i64: 640, 128>}, {pipeline_mode = #tpu.pipeline_mode<synchronous>, transform_indices = @transform_6, window_bounds = array<i64: 1, 128>}, {pipeline_mode = #tpu.pipeline_mode<synchronous>, transform_indices = @transform_7, window_bounds = array<i64: 128, 128>}, {pipeline_mode = #tpu.pipeline_mode<synchronous>, transform_indices = @transform_8, window_bounds = array<i64: 1, 128>}, {transform_indices = @transform_9, window_bounds = array<i64: 16, 128>}]} {
    %c0 = arith.constant 0 : index
    %c0_0 = arith.constant 0 : index
    %0 = vector.load %arg2[%c0, %c0_0] : memref<140x256xbf16, #tpu.memory_space<vmem>>, vector<140x256xbf16>
    %c0_1 = arith.constant 0 : index
    %c0_2 = arith.constant 0 : index
    %1 = vector.load %arg3[%c0_1, %c0_2] : memref<1x256xf32, #tpu.memory_space<vmem>>, vector<1x256xf32>
    %c0_3 = arith.constant 0 : index
    %c0_4 = arith.constant 0 : index
    %2 = vector.load %arg4[%c0_3, %c0_4] : memref<768x128xbf16, #tpu.memory_space<vmem>>, vector<768x128xbf16>
    %c0_5 = arith.constant 0 : index
    %c0_6 = arith.constant 0 : index
    %3 = vector.load %arg5[%c0_5, %c0_6] : memref<1x128xf32, #tpu.memory_space<vmem>>, vector<1x128xf32>
    %c0_7 = arith.constant 0 : index
    %c0_8 = arith.constant 0 : index
    %4 = vector.load %arg1[%c0_7, %c0_8] : memref<16x784xbf16, #tpu.memory_space<vmem>>, vector<16x140xbf16>
    %cst = arith.constant dense<0.000000e+00> : vector<16x256xf32>
    %5 = tpu.matmul %4, %0, %cst {dimension_numbers = #tpu.dot_dimension_numbers<[1], [0], [0], [1], [0, 0, 1, 1], [], []>} : vector<16x140xbf16>, vector<140x256xbf16>, vector<16x256xf32> -> vector<16x256xf32>
    %6 = vector.broadcast %1 : vector<1x256xf32> to vector<16x256xf32>
    %7 = arith.addf %5, %6 : vector<16x256xf32>
    %cst_9 = arith.constant 0.000000e+00 : f32
    %8 = vector.broadcast %cst_9 : f32 to vector<16x256xf32>
    %9 = arith.maximumf %7, %8 : vector<16x256xf32>
    %c0_10 = arith.constant 0 : index
    %c28 = arith.constant 28 : index
    %10 = vector.load %arg1[%c0_10, %c28] : memref<16x784xbf16, #tpu.memory_space<vmem>>, vector<16x140xbf16>
    %cst_11 = arith.constant dense<0.000000e+00> : vector<16x256xf32>
    %11 = tpu.matmul %10, %0, %cst_11 {dimension_numbers = #tpu.dot_dimension_numbers<[1], [0], [0], [1], [0, 0, 1, 1], [], []>} : vector<16x140xbf16>, vector<140x256xbf16>, vector<16x256xf32> -> vector<16x256xf32>
    %12 = vector.broadcast %1 : vector<1x256xf32> to vector<16x256xf32>
    %13 = arith.addf %11, %12 : vector<16x256xf32>
    %cst_12 = arith.constant 0.000000e+00 : f32
    %14 = vector.broadcast %cst_12 : f32 to vector<16x256xf32>
    %15 = arith.maximumf %13, %14 : vector<16x256xf32>
    %16 = arith.maximumf %9, %15 : vector<16x256xf32>
    %c246_i32 = arith.constant 246 : i32
    %17 = tpu.dynamic_rotate %16 by %c246_i32 dim 1 : vector<16x256xf32>, i32 -> vector<16x256xf32>
    %18 = arith.maximumf %16, %17 : vector<16x256xf32>
    %19 = arith.truncf %18 : vector<16x256xf32> to vector<16x256xbf16>
    %c0_13 = arith.constant 0 : index
    %c0_14 = arith.constant 0 : index
    %20 = vector.load %arg11[%c0_13, %c0_14] : memref<16x3072xbf16, #tpu.memory_space<vmem>>, vector<16x256xbf16>
    tpu.vector_store %arg11[%c0_13, %c0_14], %19 {strides = array<i32>} : memref<16x3072xbf16, #tpu.memory_space<vmem>>, vector<16x256xbf16>,
    %c0_15 = arith.constant 0 : index
    %c56 = arith.constant 56 : index
    %21 = vector.load %arg1[%c0_15, %c56] : memref<16x784xbf16, #tpu.memory_space<vmem>>, vector<16x140xbf16>
    %cst_16 = arith.constant dense<0.000000e+00> : vector<16x256xf32>
    %22 = tpu.matmul %21, %0, %cst_16 {dimension_numbers = #tpu.dot_dimension_numbers<[1], [0], [0], [1], [0, 0, 1, 1], [], []>} : vector<16x140xbf16>, vector<140x256xbf16>, vector<16x256xf32> -> vector<16x256xf32>
    %23 = vector.broadcast %1 : vector<1x256xf32> to vector<16x256xf32>
    %24 = arith.addf %22, %23 : vector<16x256xf32>
    %cst_17 = arith.constant 0.000000e+00 : f32
    %25 = vector.broadcast %cst_17 : f32 to vector<16x256xf32>
    %26 = arith.maximumf %24, %25 : vector<16x256xf32>
    %c0_18 = arith.constant 0 : index
    %c84 = arith.constant 84 : index
    %27 = vector.load %arg1[%c0_18, %c84] : memref<16x784xbf16, #tpu.memory_space<vmem>>, vector<16x140xbf16>
    %cst_19 = arith.constant dense<0.000000e+00> : vector<16x256xf32>
    %28 = tpu.matmul %27, %0, %cst_19 {dimension_numbers = #tpu.dot_dimension_numbers<[1], [0], [0], [1], [0, 0, 1, 1], [], []>} : vector<16x140xbf16>, vector<140x256xbf16>, vector<16x256xf32> -> vector<16x256xf32>
    %29 = vector.broadcast %1 : vector<1x256xf32> to vector<16x256xf32>
    %30 = arith.addf %28, %29 : vector<16x256xf32>
    %cst_20 = arith.constant 0.000000e+00 : f32
    %31 = vector.broadcast %cst_20 : f32 to vector<16x256xf32>
    %32 = arith.maximumf %30, %31 : vector<16x256xf32>
    %33 = arith.maximumf %26, %32 : vector<16x256xf32>
    %c246_i32_21 = arith.constant 246 : i32
    %34 = tpu.dynamic_rotate %33 by %c246_i32_21 dim 1 : vector<16x256xf32>, i32 -> vector<16x256xf32>
    %35 = arith.maximumf %33, %34 : vector<16x256xf32>
    %36 = arith.truncf %35 : vector<16x256xf32> to vector<16x256xbf16>
    %c0_22 = arith.constant 0 : index
    %c256 = arith.constant 256 : index
    %37 = vector.load %arg11[%c0_22, %c256] : memref<16x3072xbf16, #tpu.memory_space<vmem>>, vector<16x256xbf16>
    tpu.vector_store %arg11[%c0_22, %c256], %36 {strides = array<i32>} : memref<16x3072xbf16, #tpu.memory_space<vmem>>, vector<16x256xbf16>,
    %c0_23 = arith.constant 0 : index
    %c112 = arith.constant 112 : index
    %38 = vector.load %arg1[%c0_23, %c112] : memref<16x784xbf16, #tpu.memory_space<vmem>>, vector<16x140xbf16>
    %cst_24 = arith.constant dense<0.000000e+00> : vector<16x256xf32>
    %39 = tpu.matmul %38, %0, %cst_24 {dimension_numbers = #tpu.dot_dimension_numbers<[1], [0], [0], [1], [0, 0, 1, 1], [], []>} : vector<16x140xbf16>, vector<140x256xbf16>, vector<16x256xf32> -> vector<16x256xf32>
    %40 = vector.broadcast %1 : vector<1x256xf32> to vector<16x256xf32>
    %41 = arith.addf %39, %40 : vector<16x256xf32>
    %cst_25 = arith.constant 0.000000e+00 : f32
    %42 = vector.broadcast %cst_25 : f32 to vector<16x256xf32>
    %43 = arith.maximumf %41, %42 : vector<16x256xf32>
    %c0_26 = arith.constant 0 : index
    %c140 = arith.constant 140 : index
    %44 = vector.load %arg1[%c0_26, %c140] : memref<16x784xbf16, #tpu.memory_space<vmem>>, vector<16x140xbf16>
    %cst_27 = arith.constant dense<0.000000e+00> : vector<16x256xf32>
    %45 = tpu.matmul %44, %0, %cst_27 {dimension_numbers = #tpu.dot_dimension_numbers<[1], [0], [0], [1], [0, 0, 1, 1], [], []>} : vector<16x140xbf16>, vector<140x256xbf16>, vector<16x256xf32> -> vector<16x256xf32>
    %46 = vector.broadcast %1 : vector<1x256xf32> to vector<16x256xf32>
    %47 = arith.addf %45, %46 : vector<16x256xf32>
    %cst_28 = arith.constant 0.000000e+00 : f32
    %48 = vector.broadcast %cst_28 : f32 to vector<16x256xf32>
    %49 = arith.maximumf %47, %48 : vector<16x256xf32>
    %50 = arith.maximumf %43, %49 : vector<16x256xf32>
    %c246_i32_29 = arith.constant 246 : i32
    %51 = tpu.dynamic_rotate %50 by %c246_i32_29 dim 1 : vector<16x256xf32>, i32 -> vector<16x256xf32>
    %52 = arith.maximumf %50, %51 : vector<16x256xf32>
    %53 = arith.truncf %52 : vector<16x256xf32> to vector<16x256xbf16>
    %c0_30 = arith.constant 0 : index
    %c512 = arith.constant 512 : index
    %54 = vector.load %arg11[%c0_30, %c512] : memref<16x3072xbf16, #tpu.memory_space<vmem>>, vector<16x256xbf16>
    tpu.vector_store %arg11[%c0_30, %c512], %53 {strides = array<i32>} : memref<16x3072xbf16, #tpu.memory_space<vmem>>, vector<16x256xbf16>,
    %c0_31 = arith.constant 0 : index
    %c168 = arith.constant 168 : index
    %55 = vector.load %arg1[%c0_31, %c168] : memref<16x784xbf16, #tpu.memory_space<vmem>>, vector<16x140xbf16>
    %cst_32 = arith.constant dense<0.000000e+00> : vector<16x256xf32>
    %56 = tpu.matmul %55, %0, %cst_32 {dimension_numbers = #tpu.dot_dimension_numbers<[1], [0], [0], [1], [0, 0, 1, 1], [], []>} : vector<16x140xbf16>, vector<140x256xbf16>, vector<16x256xf32> -> vector<16x256xf32>
    %57 = vector.broadcast %1 : vector<1x256xf32> to vector<16x256xf32>
    %58 = arith.addf %56, %57 : vector<16x256xf32>
    %cst_33 = arith.constant 0.000000e+00 : f32
    %59 = vector.broadcast %cst_33 : f32 to vector<16x256xf32>
    %60 = arith.maximumf %58, %59 : vector<16x256xf32>
    %c0_34 = arith.constant 0 : index
    %c196 = arith.constant 196 : index
    %61 = vector.load %arg1[%c0_34, %c196] : memref<16x784xbf16, #tpu.memory_space<vmem>>, vector<16x140xbf16>
    %cst_35 = arith.constant dense<0.000000e+00> : vector<16x256xf32>
    %62 = tpu.matmul %61, %0, %cst_35 {dimension_numbers = #tpu.dot_dimension_numbers<[1], [0], [0], [1], [0, 0, 1, 1], [], []>} : vector<16x140xbf16>, vector<140x256xbf16>, vector<16x256xf32> -> vector<16x256xf32>
    %63 = vector.broadcast %1 : vector<1x256xf32> to vector<16x256xf32>
    %64 = arith.addf %62, %63 : vector<16x256xf32>
    %cst_36 = arith.constant 0.000000e+00 : f32
    %65 = vector.broadcast %cst_36 : f32 to vector<16x256xf32>
    %66 = arith.maximumf %64, %65 : vector<16x256xf32>
    %67 = arith.maximumf %60, %66 : vector<16x256xf32>
    %c246_i32_37 = arith.constant 246 : i32
    %68 = tpu.dynamic_rotate %67 by %c246_i32_37 dim 1 : vector<16x256xf32>, i32 -> vector<16x256xf32>
    %69 = arith.maximumf %67, %68 : vector<16x256xf32>
    %70 = arith.truncf %69 : vector<16x256xf32> to vector<16x256xbf16>
    %c0_38 = arith.constant 0 : index
    %c768 = arith.constant 768 : index
    %71 = vector.load %arg11[%c0_38, %c768] : memref<16x3072xbf16, #tpu.memory_space<vmem>>, vector<16x256xbf16>
    tpu.vector_store %arg11[%c0_38, %c768], %70 {strides = array<i32>} : memref<16x3072xbf16, #tpu.memory_space<vmem>>, vector<16x256xbf16>,
    %c0_39 = arith.constant 0 : index
    %c224 = arith.constant 224 : index
    %72 = vector.load %arg1[%c0_39, %c224] : memref<16x784xbf16, #tpu.memory_space<vmem>>, vector<16x140xbf16>
    %cst_40 = arith.constant dense<0.000000e+00> : vector<16x256xf32>
    %73 = tpu.matmul %72, %0, %cst_40 {dimension_numbers = #tpu.dot_dimension_numbers<[1], [0], [0], [1], [0, 0, 1, 1], [], []>} : vector<16x140xbf16>, vector<140x256xbf16>, vector<16x256xf32> -> vector<16x256xf32>
    %74 = vector.broadcast %1 : vector<1x256xf32> to vector<16x256xf32>
    %75 = arith.addf %73, %74 : vector<16x256xf32>
    %cst_41 = arith.constant 0.000000e+00 : f32
    %76 = vector.broadcast %cst_41 : f32 to vector<16x256xf32>
    %77 = arith.maximumf %75, %76 : vector<16x256xf32>
    %c0_42 = arith.constant 0 : index
    %c252 = arith.constant 252 : index
    %78 = vector.load %arg1[%c0_42, %c252] : memref<16x784xbf16, #tpu.memory_space<vmem>>, vector<16x140xbf16>
    %cst_43 = arith.constant dense<0.000000e+00> : vector<16x256xf32>
    %79 = tpu.matmul %78, %0, %cst_43 {dimension_numbers = #tpu.dot_dimension_numbers<[1], [0], [0], [1], [0, 0, 1, 1], [], []>} : vector<16x140xbf16>, vector<140x256xbf16>, vector<16x256xf32> -> vector<16x256xf32>
    %80 = vector.broadcast %1 : vector<1x256xf32> to vector<16x256xf32>
    %81 = arith.addf %79, %80 : vector<16x256xf32>
    %cst_44 = arith.constant 0.000000e+00 : f32
    %82 = vector.broadcast %cst_44 : f32 to vector<16x256xf32>
    %83 = arith.maximumf %81, %82 : vector<16x256xf32>
    %84 = arith.maximumf %77, %83 : vector<16x256xf32>
    %c246_i32_45 = arith.constant 246 : i32
    %85 = tpu.dynamic_rotate %84 by %c246_i32_45 dim 1 : vector<16x256xf32>, i32 -> vector<16x256xf32>
    %86 = arith.maximumf %84, %85 : vector<16x256xf32>
    %87 = arith.truncf %86 : vector<16x256xf32> to vector<16x256xbf16>
    %c0_46 = arith.constant 0 : index
    %c1024 = arith.constant 1024 : index
    %88 = vector.load %arg11[%c0_46, %c1024] : memref<16x3072xbf16, #tpu.memory_space<vmem>>, vector<16x256xbf16>
    tpu.vector_store %arg11[%c0_46, %c1024], %87 {strides = array<i32>} : memref<16x3072xbf16, #tpu.memory_space<vmem>>, vector<16x256xbf16>,
    %c0_47 = arith.constant 0 : index
    %c280 = arith.constant 280 : index
    %89 = vector.load %arg1[%c0_47, %c280] : memref<16x784xbf16, #tpu.memory_space<vmem>>, vector<16x140xbf16>
    %cst_48 = arith.constant dense<0.000000e+00> : vector<16x256xf32>
    %90 = tpu.matmul %89, %0, %cst_48 {dimension_numbers = #tpu.dot_dimension_numbers<[1], [0], [0], [1], [0, 0, 1, 1], [], []>} : vector<16x140xbf16>, vector<140x256xbf16>, vector<16x256xf32> -> vector<16x256xf32>
    %91 = vector.broadcast %1 : vector<1x256xf32> to vector<16x256xf32>
    %92 = arith.addf %90, %91 : vector<16x256xf32>
    %cst_49 = arith.constant 0.000000e+00 : f32
    %93 = vector.broadcast %cst_49 : f32 to vector<16x256xf32>
    %94 = arith.maximumf %92, %93 : vector<16x256xf32>
    %c0_50 = arith.constant 0 : index
    %c308 = arith.constant 308 : index
    %95 = vector.load %arg1[%c0_50, %c308] : memref<16x784xbf16, #tpu.memory_space<vmem>>, vector<16x140xbf16>
    %cst_51 = arith.constant dense<0.000000e+00> : vector<16x256xf32>
    %96 = tpu.matmul %95, %0, %cst_51 {dimension_numbers = #tpu.dot_dimension_numbers<[1], [0], [0], [1], [0, 0, 1, 1], [], []>} : vector<16x140xbf16>, vector<140x256xbf16>, vector<16x256xf32> -> vector<16x256xf32>
    %97 = vector.broadcast %1 : vector<1x256xf32> to vector<16x256xf32>
    %98 = arith.addf %96, %97 : vector<16x256xf32>
    %cst_52 = arith.constant 0.000000e+00 : f32
    %99 = vector.broadcast %cst_52 : f32 to vector<16x256xf32>
    %100 = arith.maximumf %98, %99 : vector<16x256xf32>
    %101 = arith.maximumf %94, %100 : vector<16x256xf32>
    %c246_i32_53 = arith.constant 246 : i32
    %102 = tpu.dynamic_rotate %101 by %c246_i32_53 dim 1 : vector<16x256xf32>, i32 -> vector<16x256xf32>
    %103 = arith.maximumf %101, %102 : vector<16x256xf32>
    %104 = arith.truncf %103 : vector<16x256xf32> to vector<16x256xbf16>
    %c0_54 = arith.constant 0 : index
    %c1280 = arith.constant 1280 : index
    %105 = vector.load %arg11[%c0_54, %c1280] : memref<16x3072xbf16, #tpu.memory_space<vmem>>, vector<16x256xbf16>
    tpu.vector_store %arg11[%c0_54, %c1280], %104 {strides = array<i32>} : memref<16x3072xbf16, #tpu.memory_space<vmem>>, vector<16x256xbf16>,
    %c0_55 = arith.constant 0 : index
    %c336 = arith.constant 336 : index
    %106 = vector.load %arg1[%c0_55, %c336] : memref<16x784xbf16, #tpu.memory_space<vmem>>, vector<16x140xbf16>
    %cst_56 = arith.constant dense<0.000000e+00> : vector<16x256xf32>
    %107 = tpu.matmul %106, %0, %cst_56 {dimension_numbers = #tpu.dot_dimension_numbers<[1], [0], [0], [1], [0, 0, 1, 1], [], []>} : vector<16x140xbf16>, vector<140x256xbf16>, vector<16x256xf32> -> vector<16x256xf32>
    %108 = vector.broadcast %1 : vector<1x256xf32> to vector<16x256xf32>
    %109 = arith.addf %107, %108 : vector<16x256xf32>
    %cst_57 = arith.constant 0.000000e+00 : f32
    %110 = vector.broadcast %cst_57 : f32 to vector<16x256xf32>
    %111 = arith.maximumf %109, %110 : vector<16x256xf32>
    %c0_58 = arith.constant 0 : index
    %c364 = arith.constant 364 : index
    %112 = vector.load %arg1[%c0_58, %c364] : memref<16x784xbf16, #tpu.memory_space<vmem>>, vector<16x140xbf16>
    %cst_59 = arith.constant dense<0.000000e+00> : vector<16x256xf32>
    %113 = tpu.matmul %112, %0, %cst_59 {dimension_numbers = #tpu.dot_dimension_numbers<[1], [0], [0], [1], [0, 0, 1, 1], [], []>} : vector<16x140xbf16>, vector<140x256xbf16>, vector<16x256xf32> -> vector<16x256xf32>
    %114 = vector.broadcast %1 : vector<1x256xf32> to vector<16x256xf32>
    %115 = arith.addf %113, %114 : vector<16x256xf32>
    %cst_60 = arith.constant 0.000000e+00 : f32
    %116 = vector.broadcast %cst_60 : f32 to vector<16x256xf32>
    %117 = arith.maximumf %115, %116 : vector<16x256xf32>
    %118 = arith.maximumf %111, %117 : vector<16x256xf32>
    %c246_i32_61 = arith.constant 246 : i32
    %119 = tpu.dynamic_rotate %118 by %c246_i32_61 dim 1 : vector<16x256xf32>, i32 -> vector<16x256xf32>
    %120 = arith.maximumf %118, %119 : vector<16x256xf32>
    %121 = arith.truncf %120 : vector<16x256xf32> to vector<16x256xbf16>
    %c0_62 = arith.constant 0 : index
    %c1536 = arith.constant 1536 : index
    %122 = vector.load %arg11[%c0_62, %c1536] : memref<16x3072xbf16, #tpu.memory_space<vmem>>, vector<16x256xbf16>
    tpu.vector_store %arg11[%c0_62, %c1536], %121 {strides = array<i32>} : memref<16x3072xbf16, #tpu.memory_space<vmem>>, vector<16x256xbf16>,
    %c0_63 = arith.constant 0 : index
    %c392 = arith.constant 392 : index
    %123 = vector.load %arg1[%c0_63, %c392] : memref<16x784xbf16, #tpu.memory_space<vmem>>, vector<16x140xbf16>
    %cst_64 = arith.constant dense<0.000000e+00> : vector<16x256xf32>
    %124 = tpu.matmul %123, %0, %cst_64 {dimension_numbers = #tpu.dot_dimension_numbers<[1], [0], [0], [1], [0, 0, 1, 1], [], []>} : vector<16x140xbf16>, vector<140x256xbf16>, vector<16x256xf32> -> vector<16x256xf32>
    %125 = vector.broadcast %1 : vector<1x256xf32> to vector<16x256xf32>
    %126 = arith.addf %124, %125 : vector<16x256xf32>
    %cst_65 = arith.constant 0.000000e+00 : f32
    %127 = vector.broadcast %cst_65 : f32 to vector<16x256xf32>
    %128 = arith.maximumf %126, %127 : vector<16x256xf32>
    %c0_66 = arith.constant 0 : index
    %c420 = arith.constant 420 : index
    %129 = vector.load %arg1[%c0_66, %c420] : memref<16x784xbf16, #tpu.memory_space<vmem>>, vector<16x140xbf16>
    %cst_67 = arith.constant dense<0.000000e+00> : vector<16x256xf32>
    %130 = tpu.matmul %129, %0, %cst_67 {dimension_numbers = #tpu.dot_dimension_numbers<[1], [0], [0], [1], [0, 0, 1, 1], [], []>} : vector<16x140xbf16>, vector<140x256xbf16>, vector<16x256xf32> -> vector<16x256xf32>
    %131 = vector.broadcast %1 : vector<1x256xf32> to vector<16x256xf32>
    %132 = arith.addf %130, %131 : vector<16x256xf32>
    %cst_68 = arith.constant 0.000000e+00 : f32
    %133 = vector.broadcast %cst_68 : f32 to vector<16x256xf32>
    %134 = arith.maximumf %132, %133 : vector<16x256xf32>
    %135 = arith.maximumf %128, %134 : vector<16x256xf32>
    %c246_i32_69 = arith.constant 246 : i32
    %136 = tpu.dynamic_rotate %135 by %c246_i32_69 dim 1 : vector<16x256xf32>, i32 -> vector<16x256xf32>
    %137 = arith.maximumf %135, %136 : vector<16x256xf32>
    %138 = arith.truncf %137 : vector<16x256xf32> to vector<16x256xbf16>
    %c0_70 = arith.constant 0 : index
    %c1792 = arith.constant 1792 : index
    %139 = vector.load %arg11[%c0_70, %c1792] : memref<16x3072xbf16, #tpu.memory_space<vmem>>, vector<16x256xbf16>
    tpu.vector_store %arg11[%c0_70, %c1792], %138 {strides = array<i32>} : memref<16x3072xbf16, #tpu.memory_space<vmem>>, vector<16x256xbf16>,
    %c0_71 = arith.constant 0 : index
    %c448 = arith.constant 448 : index
    %140 = vector.load %arg1[%c0_71, %c448] : memref<16x784xbf16, #tpu.memory_space<vmem>>, vector<16x140xbf16>
    %cst_72 = arith.constant dense<0.000000e+00> : vector<16x256xf32>
    %141 = tpu.matmul %140, %0, %cst_72 {dimension_numbers = #tpu.dot_dimension_numbers<[1], [0], [0], [1], [0, 0, 1, 1], [], []>} : vector<16x140xbf16>, vector<140x256xbf16>, vector<16x256xf32> -> vector<16x256xf32>
    %142 = vector.broadcast %1 : vector<1x256xf32> to vector<16x256xf32>
    %143 = arith.addf %141, %142 : vector<16x256xf32>
    %cst_73 = arith.constant 0.000000e+00 : f32
    %144 = vector.broadcast %cst_73 : f32 to vector<16x256xf32>
    %145 = arith.maximumf %143, %144 : vector<16x256xf32>
    %c0_74 = arith.constant 0 : index
    %c476 = arith.constant 476 : index
    %146 = vector.load %arg1[%c0_74, %c476] : memref<16x784xbf16, #tpu.memory_space<vmem>>, vector<16x140xbf16>
    %cst_75 = arith.constant dense<0.000000e+00> : vector<16x256xf32>
    %147 = tpu.matmul %146, %0, %cst_75 {dimension_numbers = #tpu.dot_dimension_numbers<[1], [0], [0], [1], [0, 0, 1, 1], [], []>} : vector<16x140xbf16>, vector<140x256xbf16>, vector<16x256xf32> -> vector<16x256xf32>
    %148 = vector.broadcast %1 : vector<1x256xf32> to vector<16x256xf32>
    %149 = arith.addf %147, %148 : vector<16x256xf32>
    %cst_76 = arith.constant 0.000000e+00 : f32
    %150 = vector.broadcast %cst_76 : f32 to vector<16x256xf32>
    %151 = arith.maximumf %149, %150 : vector<16x256xf32>
    %152 = arith.maximumf %145, %151 : vector<16x256xf32>
    %c246_i32_77 = arith.constant 246 : i32
    %153 = tpu.dynamic_rotate %152 by %c246_i32_77 dim 1 : vector<16x256xf32>, i32 -> vector<16x256xf32>
    %154 = arith.maximumf %152, %153 : vector<16x256xf32>
    %155 = arith.truncf %154 : vector<16x256xf32> to vector<16x256xbf16>
    %c0_78 = arith.constant 0 : index
    %c2048 = arith.constant 2048 : index
    %156 = vector.load %arg11[%c0_78, %c2048] : memref<16x3072xbf16, #tpu.memory_space<vmem>>, vector<16x256xbf16>
    tpu.vector_store %arg11[%c0_78, %c2048], %155 {strides = array<i32>} : memref<16x3072xbf16, #tpu.memory_space<vmem>>, vector<16x256xbf16>,
    %c0_79 = arith.constant 0 : index
    %c504 = arith.constant 504 : index
    %157 = vector.load %arg1[%c0_79, %c504] : memref<16x784xbf16, #tpu.memory_space<vmem>>, vector<16x140xbf16>
    %cst_80 = arith.constant dense<0.000000e+00> : vector<16x256xf32>
    %158 = tpu.matmul %157, %0, %cst_80 {dimension_numbers = #tpu.dot_dimension_numbers<[1], [0], [0], [1], [0, 0, 1, 1], [], []>} : vector<16x140xbf16>, vector<140x256xbf16>, vector<16x256xf32> -> vector<16x256xf32>
    %159 = vector.broadcast %1 : vector<1x256xf32> to vector<16x256xf32>
    %160 = arith.addf %158, %159 : vector<16x256xf32>
    %cst_81 = arith.constant 0.000000e+00 : f32
    %161 = vector.broadcast %cst_81 : f32 to vector<16x256xf32>
    %162 = arith.maximumf %160, %161 : vector<16x256xf32>
    %c0_82 = arith.constant 0 : index
    %c532 = arith.constant 532 : index
    %163 = vector.load %arg1[%c0_82, %c532] : memref<16x784xbf16, #tpu.memory_space<vmem>>, vector<16x140xbf16>
    %cst_83 = arith.constant dense<0.000000e+00> : vector<16x256xf32>
    %164 = tpu.matmul %163, %0, %cst_83 {dimension_numbers = #tpu.dot_dimension_numbers<[1], [0], [0], [1], [0, 0, 1, 1], [], []>} : vector<16x140xbf16>, vector<140x256xbf16>, vector<16x256xf32> -> vector<16x256xf32>
    %165 = vector.broadcast %1 : vector<1x256xf32> to vector<16x256xf32>
    %166 = arith.addf %164, %165 : vector<16x256xf32>
    %cst_84 = arith.constant 0.000000e+00 : f32
    %167 = vector.broadcast %cst_84 : f32 to vector<16x256xf32>
    %168 = arith.maximumf %166, %167 : vector<16x256xf32>
    %169 = arith.maximumf %162, %168 : vector<16x256xf32>
    %c246_i32_85 = arith.constant 246 : i32
    %170 = tpu.dynamic_rotate %169 by %c246_i32_85 dim 1 : vector<16x256xf32>, i32 -> vector<16x256xf32>
    %171 = arith.maximumf %169, %170 : vector<16x256xf32>
    %172 = arith.truncf %171 : vector<16x256xf32> to vector<16x256xbf16>
    %c0_86 = arith.constant 0 : index
    %c2304 = arith.constant 2304 : index
    %173 = vector.load %arg11[%c0_86, %c2304] : memref<16x3072xbf16, #tpu.memory_space<vmem>>, vector<16x256xbf16>
    tpu.vector_store %arg11[%c0_86, %c2304], %172 {strides = array<i32>} : memref<16x3072xbf16, #tpu.memory_space<vmem>>, vector<16x256xbf16>,
    %c0_87 = arith.constant 0 : index
    %c560 = arith.constant 560 : index
    %174 = vector.load %arg1[%c0_87, %c560] : memref<16x784xbf16, #tpu.memory_space<vmem>>, vector<16x140xbf16>
    %cst_88 = arith.constant dense<0.000000e+00> : vector<16x256xf32>
    %175 = tpu.matmul %174, %0, %cst_88 {dimension_numbers = #tpu.dot_dimension_numbers<[1], [0], [0], [1], [0, 0, 1, 1], [], []>} : vector<16x140xbf16>, vector<140x256xbf16>, vector<16x256xf32> -> vector<16x256xf32>
    %176 = vector.broadcast %1 : vector<1x256xf32> to vector<16x256xf32>
    %177 = arith.addf %175, %176 : vector<16x256xf32>
    %cst_89 = arith.constant 0.000000e+00 : f32
    %178 = vector.broadcast %cst_89 : f32 to vector<16x256xf32>
    %179 = arith.maximumf %177, %178 : vector<16x256xf32>
    %c0_90 = arith.constant 0 : index
    %c588 = arith.constant 588 : index
    %180 = vector.load %arg1[%c0_90, %c588] : memref<16x784xbf16, #tpu.memory_space<vmem>>, vector<16x140xbf16>
    %cst_91 = arith.constant dense<0.000000e+00> : vector<16x256xf32>
    %181 = tpu.matmul %180, %0, %cst_91 {dimension_numbers = #tpu.dot_dimension_numbers<[1], [0], [0], [1], [0, 0, 1, 1], [], []>} : vector<16x140xbf16>, vector<140x256xbf16>, vector<16x256xf32> -> vector<16x256xf32>
    %182 = vector.broadcast %1 : vector<1x256xf32> to vector<16x256xf32>
    %183 = arith.addf %181, %182 : vector<16x256xf32>
    %cst_92 = arith.constant 0.000000e+00 : f32
    %184 = vector.broadcast %cst_92 : f32 to vector<16x256xf32>
    %185 = arith.maximumf %183, %184 : vector<16x256xf32>
    %186 = arith.maximumf %179, %185 : vector<16x256xf32>
    %c246_i32_93 = arith.constant 246 : i32
    %187 = tpu.dynamic_rotate %186 by %c246_i32_93 dim 1 : vector<16x256xf32>, i32 -> vector<16x256xf32>
    %188 = arith.maximumf %186, %187 : vector<16x256xf32>
    %189 = arith.truncf %188 : vector<16x256xf32> to vector<16x256xbf16>
    %c0_94 = arith.constant 0 : index
    %c2560 = arith.constant 2560 : index
    %190 = vector.load %arg11[%c0_94, %c2560] : memref<16x3072xbf16, #tpu.memory_space<vmem>>, vector<16x256xbf16>
    tpu.vector_store %arg11[%c0_94, %c2560], %189 {strides = array<i32>} : memref<16x3072xbf16, #tpu.memory_space<vmem>>, vector<16x256xbf16>,
    %c0_95 = arith.constant 0 : index
    %c616 = arith.constant 616 : index
    %191 = vector.load %arg1[%c0_95, %c616] : memref<16x784xbf16, #tpu.memory_space<vmem>>, vector<16x140xbf16>
    %cst_96 = arith.constant dense<0.000000e+00> : vector<16x256xf32>
    %192 = tpu.matmul %191, %0, %cst_96 {dimension_numbers = #tpu.dot_dimension_numbers<[1], [0], [0], [1], [0, 0, 1, 1], [], []>} : vector<16x140xbf16>, vector<140x256xbf16>, vector<16x256xf32> -> vector<16x256xf32>
    %193 = vector.broadcast %1 : vector<1x256xf32> to vector<16x256xf32>
    %194 = arith.addf %192, %193 : vector<16x256xf32>
    %cst_97 = arith.constant 0.000000e+00 : f32
    %195 = vector.broadcast %cst_97 : f32 to vector<16x256xf32>
    %196 = arith.maximumf %194, %195 : vector<16x256xf32>
    %c0_98 = arith.constant 0 : index
    %c644 = arith.constant 644 : index
    %197 = vector.load %arg1[%c0_98, %c644] : memref<16x784xbf16, #tpu.memory_space<vmem>>, vector<16x140xbf16>
    %cst_99 = arith.constant dense<0.000000e+00> : vector<16x256xf32>
    %198 = tpu.matmul %197, %0, %cst_99 {dimension_numbers = #tpu.dot_dimension_numbers<[1], [0], [0], [1], [0, 0, 1, 1], [], []>} : vector<16x140xbf16>, vector<140x256xbf16>, vector<16x256xf32> -> vector<16x256xf32>
    %199 = vector.broadcast %1 : vector<1x256xf32> to vector<16x256xf32>
    %200 = arith.addf %198, %199 : vector<16x256xf32>
    %cst_100 = arith.constant 0.000000e+00 : f32
    %201 = vector.broadcast %cst_100 : f32 to vector<16x256xf32>
    %202 = arith.maximumf %200, %201 : vector<16x256xf32>
    %203 = arith.maximumf %196, %202 : vector<16x256xf32>
    %c246_i32_101 = arith.constant 246 : i32
    %204 = tpu.dynamic_rotate %203 by %c246_i32_101 dim 1 : vector<16x256xf32>, i32 -> vector<16x256xf32>
    %205 = arith.maximumf %203, %204 : vector<16x256xf32>
    %206 = arith.truncf %205 : vector<16x256xf32> to vector<16x256xbf16>
    %c0_102 = arith.constant 0 : index
    %c2816 = arith.constant 2816 : index
    %207 = vector.load %arg11[%c0_102, %c2816] : memref<16x3072xbf16, #tpu.memory_space<vmem>>, vector<16x256xbf16>
    tpu.vector_store %arg11[%c0_102, %c2816], %206 {strides = array<i32>} : memref<16x3072xbf16, #tpu.memory_space<vmem>>, vector<16x256xbf16>,
    %c0_103 = arith.constant 0 : index
    %c0_104 = arith.constant 0 : index
    %208 = vector.load %arg11[%c0_103, %c0_104] : memref<16x3072xbf16, #tpu.memory_space<vmem>>, vector<16x768xbf16>
    %cst_105 = arith.constant dense<0.000000e+00> : vector<16x128xf32>
    %209 = tpu.matmul %208, %2, %cst_105 {dimension_numbers = #tpu.dot_dimension_numbers<[1], [0], [0], [1], [0, 0, 1, 1], [], []>} : vector<16x768xbf16>, vector<768x128xbf16>, vector<16x128xf32> -> vector<16x128xf32>
    %210 = vector.broadcast %3 : vector<1x128xf32> to vector<16x128xf32>
    %211 = arith.addf %209, %210 : vector<16x128xf32>
    %cst_106 = arith.constant 0.000000e+00 : f32
    %212 = vector.broadcast %cst_106 : f32 to vector<16x128xf32>
    %213 = arith.maximumf %211, %212 : vector<16x128xf32>
    %c0_107 = arith.constant 0 : index
    %c256_108 = arith.constant 256 : index
    %214 = vector.load %arg11[%c0_107, %c256_108] : memref<16x3072xbf16, #tpu.memory_space<vmem>>, vector<16x768xbf16>
    %cst_109 = arith.constant dense<0.000000e+00> : vector<16x128xf32>
    %215 = tpu.matmul %214, %2, %cst_109 {dimension_numbers = #tpu.dot_dimension_numbers<[1], [0], [0], [1], [0, 0, 1, 1], [], []>} : vector<16x768xbf16>, vector<768x128xbf16>, vector<16x128xf32> -> vector<16x128xf32>
    %216 = vector.broadcast %3 : vector<1x128xf32> to vector<16x128xf32>
    %217 = arith.addf %215, %216 : vector<16x128xf32>
    %cst_110 = arith.constant 0.000000e+00 : f32
    %218 = vector.broadcast %cst_110 : f32 to vector<16x128xf32>
    %219 = arith.maximumf %217, %218 : vector<16x128xf32>
    %220 = arith.maximumf %213, %219 : vector<16x128xf32>
    %c116_i32 = arith.constant 116 : i32
    %221 = tpu.dynamic_rotate %220 by %c116_i32 dim 1 : vector<16x128xf32>, i32 -> vector<16x128xf32>
    %222 = arith.maximumf %220, %221 : vector<16x128xf32>
    %223 = arith.truncf %222 : vector<16x128xf32> to vector<16x128xbf16>
    %c0_111 = arith.constant 0 : index
    %c0_112 = arith.constant 0 : index
    %224 = vector.load %arg12[%c0_111, %c0_112] : memref<16x640xbf16, #tpu.memory_space<vmem>>, vector<16x128xbf16>
    tpu.vector_store %arg12[%c0_111, %c0_112], %223 {strides = array<i32>} : memref<16x640xbf16, #tpu.memory_space<vmem>>, vector<16x128xbf16>,
    %c0_113 = arith.constant 0 : index
    %c512_114 = arith.constant 512 : index
    %225 = vector.load %arg11[%c0_113, %c512_114] : memref<16x3072xbf16, #tpu.memory_space<vmem>>, vector<16x768xbf16>
    %cst_115 = arith.constant dense<0.000000e+00> : vector<16x128xf32>
    %226 = tpu.matmul %225, %2, %cst_115 {dimension_numbers = #tpu.dot_dimension_numbers<[1], [0], [0], [1], [0, 0, 1, 1], [], []>} : vector<16x768xbf16>, vector<768x128xbf16>, vector<16x128xf32> -> vector<16x128xf32>
    %227 = vector.broadcast %3 : vector<1x128xf32> to vector<16x128xf32>
    %228 = arith.addf %226, %227 : vector<16x128xf32>
    %cst_116 = arith.constant 0.000000e+00 : f32
    %229 = vector.broadcast %cst_116 : f32 to vector<16x128xf32>
    %230 = arith.maximumf %228, %229 : vector<16x128xf32>
    %c0_117 = arith.constant 0 : index
    %c768_118 = arith.constant 768 : index
    %231 = vector.load %arg11[%c0_117, %c768_118] : memref<16x3072xbf16, #tpu.memory_space<vmem>>, vector<16x768xbf16>
    %cst_119 = arith.constant dense<0.000000e+00> : vector<16x128xf32>
    %232 = tpu.matmul %231, %2, %cst_119 {dimension_numbers = #tpu.dot_dimension_numbers<[1], [0], [0], [1], [0, 0, 1, 1], [], []>} : vector<16x768xbf16>, vector<768x128xbf16>, vector<16x128xf32> -> vector<16x128xf32>
    %233 = vector.broadcast %3 : vector<1x128xf32> to vector<16x128xf32>
    %234 = arith.addf %232, %233 : vector<16x128xf32>
    %cst_120 = arith.constant 0.000000e+00 : f32
    %235 = vector.broadcast %cst_120 : f32 to vector<16x128xf32>
    %236 = arith.maximumf %234, %235 : vector<16x128xf32>
    %237 = arith.maximumf %230, %236 : vector<16x128xf32>
    %c116_i32_121 = arith.constant 116 : i32
    %238 = tpu.dynamic_rotate %237 by %c116_i32_121 dim 1 : vector<16x128xf32>, i32 -> vector<16x128xf32>
    %239 = arith.maximumf %237, %238 : vector<16x128xf32>
    %240 = arith.truncf %239 : vector<16x128xf32> to vector<16x128xbf16>
    %c0_122 = arith.constant 0 : index
    %c128 = arith.constant 128 : index
    %241 = vector.load %arg12[%c0_122, %c128] : memref<16x640xbf16, #tpu.memory_space<vmem>>, vector<16x128xbf16>
    tpu.vector_store %arg12[%c0_122, %c128], %240 {strides = array<i32>} : memref<16x640xbf16, #tpu.memory_space<vmem>>, vector<16x128xbf16>,
    %c0_123 = arith.constant 0 : index
    %c1024_124 = arith.constant 1024 : index
    %242 = vector.load %arg11[%c0_123, %c1024_124] : memref<16x3072xbf16, #tpu.memory_space<vmem>>, vector<16x768xbf16>
    %cst_125 = arith.constant dense<0.000000e+00> : vector<16x128xf32>
    %243 = tpu.matmul %242, %2, %cst_125 {dimension_numbers = #tpu.dot_dimension_numbers<[1], [0], [0], [1], [0, 0, 1, 1], [], []>} : vector<16x768xbf16>, vector<768x128xbf16>, vector<16x128xf32> -> vector<16x128xf32>
    %244 = vector.broadcast %3 : vector<1x128xf32> to vector<16x128xf32>
    %245 = arith.addf %243, %244 : vector<16x128xf32>
    %cst_126 = arith.constant 0.000000e+00 : f32
    %246 = vector.broadcast %cst_126 : f32 to vector<16x128xf32>
    %247 = arith.maximumf %245, %246 : vector<16x128xf32>
    %c0_127 = arith.constant 0 : index
    %c1280_128 = arith.constant 1280 : index
    %248 = vector.load %arg11[%c0_127, %c1280_128] : memref<16x3072xbf16, #tpu.memory_space<vmem>>, vector<16x768xbf16>
    %cst_129 = arith.constant dense<0.000000e+00> : vector<16x128xf32>
    %249 = tpu.matmul %248, %2, %cst_129 {dimension_numbers = #tpu.dot_dimension_numbers<[1], [0], [0], [1], [0, 0, 1, 1], [], []>} : vector<16x768xbf16>, vector<768x128xbf16>, vector<16x128xf32> -> vector<16x128xf32>
    %250 = vector.broadcast %3 : vector<1x128xf32> to vector<16x128xf32>
    %251 = arith.addf %249, %250 : vector<16x128xf32>
    %cst_130 = arith.constant 0.000000e+00 : f32
    %252 = vector.broadcast %cst_130 : f32 to vector<16x128xf32>
    %253 = arith.maximumf %251, %252 : vector<16x128xf32>
    %254 = arith.maximumf %247, %253 : vector<16x128xf32>
    %c116_i32_131 = arith.constant 116 : i32
    %255 = tpu.dynamic_rotate %254 by %c116_i32_131 dim 1 : vector<16x128xf32>, i32 -> vector<16x128xf32>
    %256 = arith.maximumf %254, %255 : vector<16x128xf32>
    %257 = arith.truncf %256 : vector<16x128xf32> to vector<16x128xbf16>
    %c0_132 = arith.constant 0 : index
    %c256_133 = arith.constant 256 : index
    %258 = vector.load %arg12[%c0_132, %c256_133] : memref<16x640xbf16, #tpu.memory_space<vmem>>, vector<16x128xbf16>
    tpu.vector_store %arg12[%c0_132, %c256_133], %257 {strides = array<i32>} : memref<16x640xbf16, #tpu.memory_space<vmem>>, vector<16x128xbf16>,
    %c0_134 = arith.constant 0 : index
    %c1536_135 = arith.constant 1536 : index
    %259 = vector.load %arg11[%c0_134, %c1536_135] : memref<16x3072xbf16, #tpu.memory_space<vmem>>, vector<16x768xbf16>
    %cst_136 = arith.constant dense<0.000000e+00> : vector<16x128xf32>
    %260 = tpu.matmul %259, %2, %cst_136 {dimension_numbers = #tpu.dot_dimension_numbers<[1], [0], [0], [1], [0, 0, 1, 1], [], []>} : vector<16x768xbf16>, vector<768x128xbf16>, vector<16x128xf32> -> vector<16x128xf32>
    %261 = vector.broadcast %3 : vector<1x128xf32> to vector<16x128xf32>
    %262 = arith.addf %260, %261 : vector<16x128xf32>
    %cst_137 = arith.constant 0.000000e+00 : f32
    %263 = vector.broadcast %cst_137 : f32 to vector<16x128xf32>
    %264 = arith.maximumf %262, %263 : vector<16x128xf32>
    %c0_138 = arith.constant 0 : index
    %c1792_139 = arith.constant 1792 : index
    %265 = vector.load %arg11[%c0_138, %c1792_139] : memref<16x3072xbf16, #tpu.memory_space<vmem>>, vector<16x768xbf16>
    %cst_140 = arith.constant dense<0.000000e+00> : vector<16x128xf32>
    %266 = tpu.matmul %265, %2, %cst_140 {dimension_numbers = #tpu.dot_dimension_numbers<[1], [0], [0], [1], [0, 0, 1, 1], [], []>} : vector<16x768xbf16>, vector<768x128xbf16>, vector<16x128xf32> -> vector<16x128xf32>
    %267 = vector.broadcast %3 : vector<1x128xf32> to vector<16x128xf32>
    %268 = arith.addf %266, %267 : vector<16x128xf32>
    %cst_141 = arith.constant 0.000000e+00 : f32
    %269 = vector.broadcast %cst_141 : f32 to vector<16x128xf32>
    %270 = arith.maximumf %268, %269 : vector<16x128xf32>
    %271 = arith.maximumf %264, %270 : vector<16x128xf32>
    %c116_i32_142 = arith.constant 116 : i32
    %272 = tpu.dynamic_rotate %271 by %c116_i32_142 dim 1 : vector<16x128xf32>, i32 -> vector<16x128xf32>
    %273 = arith.maximumf %271, %272 : vector<16x128xf32>
    %274 = arith.truncf %273 : vector<16x128xf32> to vector<16x128xbf16>
    %c0_143 = arith.constant 0 : index
    %c384 = arith.constant 384 : index
    %275 = vector.load %arg12[%c0_143, %c384] : memref<16x640xbf16, #tpu.memory_space<vmem>>, vector<16x128xbf16>
    tpu.vector_store %arg12[%c0_143, %c384], %274 {strides = array<i32>} : memref<16x640xbf16, #tpu.memory_space<vmem>>, vector<16x128xbf16>,
    %c0_144 = arith.constant 0 : index
    %c2048_145 = arith.constant 2048 : index
    %276 = vector.load %arg11[%c0_144, %c2048_145] : memref<16x3072xbf16, #tpu.memory_space<vmem>>, vector<16x768xbf16>
    %cst_146 = arith.constant dense<0.000000e+00> : vector<16x128xf32>
    %277 = tpu.matmul %276, %2, %cst_146 {dimension_numbers = #tpu.dot_dimension_numbers<[1], [0], [0], [1], [0, 0, 1, 1], [], []>} : vector<16x768xbf16>, vector<768x128xbf16>, vector<16x128xf32> -> vector<16x128xf32>
    %278 = vector.broadcast %3 : vector<1x128xf32> to vector<16x128xf32>
    %279 = arith.addf %277, %278 : vector<16x128xf32>
    %cst_147 = arith.constant 0.000000e+00 : f32
    %280 = vector.broadcast %cst_147 : f32 to vector<16x128xf32>
    %281 = arith.maximumf %279, %280 : vector<16x128xf32>
    %c0_148 = arith.constant 0 : index
    %c2304_149 = arith.constant 2304 : index
    %282 = vector.load %arg11[%c0_148, %c2304_149] : memref<16x3072xbf16, #tpu.memory_space<vmem>>, vector<16x768xbf16>
    %cst_150 = arith.constant dense<0.000000e+00> : vector<16x128xf32>
    %283 = tpu.matmul %282, %2, %cst_150 {dimension_numbers = #tpu.dot_dimension_numbers<[1], [0], [0], [1], [0, 0, 1, 1], [], []>} : vector<16x768xbf16>, vector<768x128xbf16>, vector<16x128xf32> -> vector<16x128xf32>
    %284 = vector.broadcast %3 : vector<1x128xf32> to vector<16x128xf32>
    %285 = arith.addf %283, %284 : vector<16x128xf32>
    %cst_151 = arith.constant 0.000000e+00 : f32
    %286 = vector.broadcast %cst_151 : f32 to vector<16x128xf32>
    %287 = arith.maximumf %285, %286 : vector<16x128xf32>
    %288 = arith.maximumf %281, %287 : vector<16x128xf32>
    %c116_i32_152 = arith.constant 116 : i32
    %289 = tpu.dynamic_rotate %288 by %c116_i32_152 dim 1 : vector<16x128xf32>, i32 -> vector<16x128xf32>
    %290 = arith.maximumf %288, %289 : vector<16x128xf32>
    %291 = arith.truncf %290 : vector<16x128xf32> to vector<16x128xbf16>
    %c0_153 = arith.constant 0 : index
    %c512_154 = arith.constant 512 : index
    %292 = vector.load %arg12[%c0_153, %c512_154] : memref<16x640xbf16, #tpu.memory_space<vmem>>, vector<16x128xbf16>
    tpu.vector_store %arg12[%c0_153, %c512_154], %291 {strides = array<i32>} : memref<16x640xbf16, #tpu.memory_space<vmem>>, vector<16x128xbf16>,
    %c0_155 = arith.constant 0 : index
    %c0_156 = arith.constant 0 : index
    %293 = vector.load %arg12[%c0_155, %c0_156] : memref<16x640xbf16, #tpu.memory_space<vmem>>, vector<16x640xbf16>
    %c0_157 = arith.constant 0 : index
    %c0_158 = arith.constant 0 : index
    %294 = vector.load %arg6[%c0_157, %c0_158] : memref<640x128xbf16, #tpu.memory_space<vmem>>, vector<640x128xbf16>
    %cst_159 = arith.constant dense<0.000000e+00> : vector<16x128xf32>
    %295 = tpu.matmul %293, %294, %cst_159 {dimension_numbers = #tpu.dot_dimension_numbers<[1], [0], [0], [1], [0, 0, 1, 1], [], []>} : vector<16x640xbf16>, vector<640x128xbf16>, vector<16x128xf32> -> vector<16x128xf32>
    %c0_160 = arith.constant 0 : index
    %c0_161 = arith.constant 0 : index
    %296 = vector.load %arg7[%c0_160, %c0_161] : memref<1x128xf32, #tpu.memory_space<vmem>>, vector<1x128xf32>
    %297 = vector.broadcast %296 : vector<1x128xf32> to vector<16x128xf32>
    %298 = arith.addf %295, %297 : vector<16x128xf32>
    %cst_162 = arith.constant 0.000000e+00 : f32
    %299 = vector.broadcast %cst_162 : f32 to vector<16x128xf32>
    %300 = arith.maximumf %298, %299 : vector<16x128xf32>
    %301 = arith.truncf %300 : vector<16x128xf32> to vector<16x128xbf16>
    %c0_163 = arith.constant 0 : index
    %c0_164 = arith.constant 0 : index
    %302 = vector.load %arg8[%c0_163, %c0_164] : memref<128x128xbf16, #tpu.memory_space<vmem>>, vector<128x128xbf16>
    %cst_165 = arith.constant dense<0.000000e+00> : vector<16x128xf32>
    %303 = tpu.matmul %301, %302, %cst_165 {dimension_numbers = #tpu.dot_dimension_numbers<[1], [0], [0], [1], [0, 0, 1, 1], [], []>} : vector<16x128xbf16>, vector<128x128xbf16>, vector<16x128xf32> -> vector<16x128xf32>
    %c0_166 = arith.constant 0 : index
    %c0_167 = arith.constant 0 : index
    %304 = vector.load %arg9[%c0_166, %c0_167] : memref<1x128xf32, #tpu.memory_space<vmem>>, vector<1x128xf32>
    %305 = vector.broadcast %304 : vector<1x128xf32> to vector<16x128xf32>
    %306 = arith.addf %303, %305 : vector<16x128xf32>
    %cst_168 = arith.constant dense<0xFF800000> : vector<16xf32>
    %307 = vector.multi_reduction <maximumf>, %306, %cst_168 [1] : vector<16x128xf32> to vector<16xf32>
    %308 = vector.shape_cast %307 : vector<16xf32> to vector<16x1xf32>
    %309 = vector.broadcast %308 : vector<16x1xf32> to vector<16x128xf32>
    %310 = arith.subf %306, %309 : vector<16x128xf32>
    %311 = math.exp %310 : vector<16x128xf32>
    %cst_169 = arith.constant dense<0.000000e+00> : vector<16xf32>
    %312 = vector.multi_reduction <add>, %311, %cst_169 [1] : vector<16x128xf32> to vector<16xf32>
    %313 = vector.shape_cast %312 : vector<16xf32> to vector<16x1xf32>
    %314 = math.log %313 : vector<16x1xf32>
    %315 = vector.broadcast %314 : vector<16x1xf32> to vector<16x128xf32>
    %316 = arith.subf %310, %315 : vector<16x128xf32>
    %c0_170 = arith.constant 0 : index
    %c0_171 = arith.constant 0 : index
    %317 = vector.load %arg10[%c0_170, %c0_171] : memref<16x128xf32, #tpu.memory_space<vmem>>, vector<16x128xf32>
    tpu.vector_store %arg10[%c0_170, %c0_171], %316 {strides = array<i32>} : memref<16x128xf32, #tpu.memory_space<vmem>>, vector<16x128xf32>,
    return
  }
  func.func @transform_0(%arg0: i32) -> (i32, i32) {
    %c0_i32 = arith.constant 0 : i32
    %c0_i32_0 = arith.constant 0 : i32
    return %arg0, %c0_i32 : i32, i32
  }
  func.func @transform_1(%arg0: i32) -> (i32, i32) {
    %c0_i32 = arith.constant 0 : i32
    %c0_i32_0 = arith.constant 0 : i32
    %c0_i32_1 = arith.constant 0 : i32
    return %c0_i32, %c0_i32_0 : i32, i32
  }
  func.func @transform_2(%arg0: i32) -> (i32, i32) {
    %c0_i32 = arith.constant 0 : i32
    %c0_i32_0 = arith.constant 0 : i32
    %c0_i32_1 = arith.constant 0 : i32
    return %c0_i32, %c0_i32_0 : i32, i32
  }
  func.func @transform_3(%arg0: i32) -> (i32, i32) {
    %c0_i32 = arith.constant 0 : i32
    %c0_i32_0 = arith.constant 0 : i32
    %c0_i32_1 = arith.constant 0 : i32
    return %c0_i32, %c0_i32_0 : i32, i32
  }
  func.func @transform_4(%arg0: i32) -> (i32, i32) {
    %c0_i32 = arith.constant 0 : i32
    %c0_i32_0 = arith.constant 0 : i32
    %c0_i32_1 = arith.constant 0 : i32
    return %c0_i32, %c0_i32_0 : i32, i32
  }
  func.func @transform_5(%arg0: i32) -> (i32, i32) {
    %c0_i32 = arith.constant 0 : i32
    %c0_i32_0 = arith.constant 0 : i32
    %c0_i32_1 = arith.constant 0 : i32
    return %c0_i32, %c0_i32_0 : i32, i32
  }
  func.func @transform_6(%arg0: i32) -> (i32, i32) {
    %c0_i32 = arith.constant 0 : i32
    %c0_i32_0 = arith.constant 0 : i32
    %c0_i32_1 = arith.constant 0 : i32
    return %c0_i32, %c0_i32_0 : i32, i32
  }
  func.func @transform_7(%arg0: i32) -> (i32, i32) {
    %c0_i32 = arith.constant 0 : i32
    %c0_i32_0 = arith.constant 0 : i32
    %c0_i32_1 = arith.constant 0 : i32
    return %c0_i32, %c0_i32_0 : i32, i32
  }
  func.func @transform_8(%arg0: i32) -> (i32, i32) {
    %c0_i32 = arith.constant 0 : i32
    %c0_i32_0 = arith.constant 0 : i32
    %c0_i32_1 = arith.constant 0 : i32
    return %c0_i32, %c0_i32_0 : i32, i32
  }
  func.func @transform_9(%arg0: i32) -> (i32, i32) {
    %c0_i32 = arith.constant 0 : i32
    %c0_i32_0 = arith.constant 0 : i32
    return %arg0, %c0_i32 : i32, i32
  }
}

</mosaic_0001>

<bundles_post_ra>
// kernel: convnet_forward.1
= control target key start
LH: loop header
LB: loop body
LE: loop exit
PB: predicated region body
PF: predicated region fallthrough
CT: control target
= control target key end

     0   :  { %14 = vsyncpa [#allocation5], 0  ;;  %s8593_s0 = inlined_call_operand.vmem [shape: bf16[16,784], index: 0, kind: input, shape index: {}]   ;;  %s8594_s1 = inlined_call_operand.vmem [shape: bf16[140,256], index: 1, kind: input, shape index: {}]   ;;  %s8595_s2 = inlined_call_operand.hbm [shape: f32[1,256], index: 2, kind: input, shape index: {}]   ;;  %s8596_s3 = inlined_call_operand.hbm [shape: bf16[768,128], index: 3, kind: input, shape index: {}]   ;;  %s8597_s4 = inlined_call_operand.vmem [shape: f32[1,128], index: 4, kind: input, shape index: {}]   ;;  %s8598_s5 = inlined_call_operand.hbm [shape: bf16[640,128], index: 5, kind: input, shape index: {}]   ;;  %s8599_s6 = inlined_call_operand.hbm [shape: f32[1,128], index: 6, kind: input, shape index: {}]   ;;  %s8600_s7 = inlined_call_operand.vmem [shape: bf16[128,128], index: 7, kind: input, shape index: {}]   ;;  %s8601_s8 = inlined_call_operand.hbm [shape: f32[1,128], index: 8, kind: input, shape index: {}]   ;;  %s8602_s9 = inlined_call_operand.vmem [shape: f32[16,128], index: 9, kind: output, shape index: {}]  }
   0x1   :  { %15 = vsyncpa [#allocation7], 0 }
   0x2   :  { %16 = vsyncpa [#allocation10], 0  ;;  %s5894_s30 = smov [#allocation6]   ;;  %s5778_s13 = scalar_lea.hbm %s8596_s3, 6144 }
   0x3   :  { %s36_s10 = sshll.u32 %s5894_s30, 4  ;;  %p5779_p0 = scmp.ne.s32.totalorder %s8596_s3, %s5778_s13  ;;  %s37_s10 = int_to_ptr.vmem [resolvable:$true] %s36_s10 }
   0x4   :  { %p5782_p1 = scmp.lt.u32.totalorder %s5778_s13, %s8596_s3 }
   0x6   :  { %p5784_p2 = pnand %p5782_p1, %p5779_p0 }
   0x8   :  { %5787 = shalt.err (!%p5784_p2)
}
   0x9   :  { %s5788_s18 = scalar_lea.vmem %s37_s10, 6144  ;;  %p5793_p4 = scmp.lt.s32.totalorder %s37_s10, %s37_s10 }
   0xa   :  { %p5789_p3 = scmp.ne.s32.totalorder %s37_s10, %s5788_s18  ;;  %p5794_p5 = scmp.lt.s32.totalorder %s5788_s18, %s5788_s18 }
   0xc   :  { %p5795_p6 = por %p5794_p5, %p5793_p4 }
   0xe   :  { %p5796_p7 = pnand %p5795_p6, %p5789_p3 }
  0x10   :  { %5799 = shalt.err (!%p5796_p7)
}
  0x11   :  { %s5895_s19 = smov 64   ;;  %s5896_s20 = smov 4  }
  0x12   :  { %42 = dma.hbm_to_vmem [thread:$0]  %s8596_s3, 6144, %s37_s10, [#allocation7], %s5895_s19, %s5895_s19, %s5896_s20  }
  0x13   :  { %s5897_s23 = smov [#allocation9]   ;;  %s5898_s25 = smov [#allocation4]  }
  0x14   :  { %s63_s24 = sshll.u32 %s5897_s23, 4  ;;  %s27_s26 = sshll.u32 %s5898_s25, 4  ;;  %s64_s24 = int_to_ptr.vmem [resolvable:$true] %s63_s24  ;;  %s28_s26 = int_to_ptr.vmem [resolvable:$true] %s27_s26 }
  0x15   :  { %s5800_s29 = scalar_lea.hbm %s8599_s6, 16 }
  0x16   :  { %p5801_p8 = scmp.ne.s32.totalorder %s8599_s6, %s5800_s29  ;;  %p5804_p9 = scmp.lt.u32.totalorder %s5800_s29, %s8599_s6 }
  0x18   :  { %p5806_p10 = pnand %p5804_p9, %p5801_p8 }
  0x1a   :  { %5809 = shalt.err (!%p5806_p10)
}
  0x1b   :  { %s5810_s3 = scalar_lea.vmem %s64_s24, 16  ;;  %s5814_s10 = scalar_lea.vmem %s64_s24, 32 }
  0x1c   :  { %p5811_p11 = scmp.ne.s32.totalorder %s64_s24, %s5810_s3  ;;  %p5815_p12 = scmp.lt.s32.totalorder %s64_s24, %s64_s24 }
  0x1d   :  { %p5816_p13 = scmp.lt.s32.totalorder %s5814_s10, %s5810_s3 }
  0x1f   :  { %p5817_p0 = por %p5816_p13, %p5815_p12 }
  0x21   :  { %p5818_p1 = pnand %p5817_p0, %p5811_p11 }
  0x23   :  { %5821 = shalt.err (!%p5818_p1)
}
  0x24   :  { %66 = dma.hbm_to_vmem [thread:$0]  %s8599_s6, 16, %s64_s24, [#allocation10]  }
  0x25   :  { %s5822_s18 = scalar_lea.hbm %s8595_s2, 32 }
  0x26   :  { %p5823_p2 = scmp.ne.s32.totalorder %s8595_s2, %s5822_s18  ;;  %p5826_p3 = scmp.lt.u32.totalorder %s5822_s18, %s8595_s2 }
  0x28   :  { %p5828_p4 = pnand %p5826_p3, %p5823_p2 }
  0x2a   :  { %5831 = shalt.err (!%p5828_p4)
}
  0x2b   :  { %s5832_s27 = scalar_lea.vmem %s28_s26, 32  ;;  %p5837_p6 = scmp.lt.s32.totalorder %s28_s26, %s28_s26 }
  0x2c   :  { %p5833_p5 = scmp.ne.s32.totalorder %s28_s26, %s5832_s27  ;;  %p5838_p7 = scmp.lt.s32.totalorder %s5832_s27, %s5832_s27 }
  0x2e   :  { %p5839_p8 = por %p5838_p7, %p5837_p6 }
  0x30   :  { %p5840_p9 = pnand %p5839_p8, %p5833_p5 }
  0x32   :  { %5843 = shalt.err (!%p5840_p9)
}
  0x33   :  { %30 = dma.hbm_to_vmem [thread:$0]  %s8595_s2, 32, %s28_s26, [#allocation5]  }
  0x34   :  { %s5899_s28 = smov [#allocation8]   ;;  %s5900_s30 = smov [#allocation11]  }
  0x35   :  { %s50_s29 = sshll.u32 %s5899_s28, 4  ;;  %s75_s11 = sshll.u32 %s5900_s30, 4  ;;  %s51_s29 = int_to_ptr.vmem [resolvable:$true] %s50_s29  ;;  %s76_s11 = int_to_ptr.vmem [resolvable:$true] %s75_s11 }
  0x36   :  { %s5844_s3 = scalar_lea.hbm %s8598_s5, 5120 }
  0x37   :  { %p5845_p10 = scmp.ne.s32.totalorder %s8598_s5, %s5844_s3  ;;  %p5848_p11 = scmp.lt.u32.totalorder %s5844_s3, %s8598_s5 }
  0x39   :  { %p5850_p12 = pnand %p5848_p11, %p5845_p10 }
  0x3b   :  { %5853 = shalt.err (!%p5850_p12)
}
  0x3c   :  { %s5854_s2 = scalar_lea.vmem %s51_s29, 5120  ;;  %p5859_p0 = scmp.lt.s32.totalorder %s51_s29, %s51_s29 }
  0x3d   :  { %p5855_p13 = scmp.ne.s32.totalorder %s51_s29, %s5854_s2  ;;  %p5860_p1 = scmp.lt.s32.totalorder %s5854_s2, %s5854_s2 }
  0x3f   :  { %p5861_p2 = por %p5860_p1, %p5859_p0 }
  0x41   :  { %p5862_p3 = pnand %p5861_p2, %p5855_p13 }
  0x43   :  { %5865 = shalt.err (!%p5862_p3)
}
  0x44   :  { %56 = dma.hbm_to_vmem [thread:$0]  %s8598_s5, 5120, %s51_s29, [#allocation7], %s5895_s19, %s5895_s19, %s5896_s20  }
  0x45   :  { %s5866_s22 = scalar_lea.hbm %s8601_s8, 16 }
  0x46   :  { %p5867_p4 = scmp.ne.s32.totalorder %s8601_s8, %s5866_s22  ;;  %p5870_p5 = scmp.lt.u32.totalorder %s5866_s22, %s8601_s8 }
  0x48   :  { %p5872_p6 = pnand %p5870_p5, %p5867_p4 }
  0x4a   :  { %5875 = shalt.err (!%p5872_p6)
}
  0x4b   :  { %s5876_s24 = scalar_lea.vmem %s76_s11, 16  ;;  %s5880_s28 = scalar_lea.vmem %s76_s11, 32 }
  0x4c   :  { %p5877_p7 = scmp.ne.s32.totalorder %s76_s11, %s5876_s24  ;;  %p5881_p8 = scmp.lt.s32.totalorder %s76_s11, %s76_s11 }
  0x4d   :  { %p5882_p9 = scmp.lt.s32.totalorder %s5880_s28, %s5876_s24 }
  0x4f   :  { %p5883_p10 = por %p5882_p9, %p5881_p8 }
  0x51   :  { %p5884_p11 = pnand %p5883_p10, %p5877_p7 }
  0x53   :  { %5887 = shalt.err (!%p5884_p11)
}
  0x54   :  { %78 = dma.hbm_to_vmem [thread:$0]  %s8601_s8, 16, %s76_s11, [#allocation10]  }
  0x55   :  { %5888 = dma.done.wait [#allocation5], 32  }
  0x56   :  { %5889 = vsyncadd [#allocation5], 4294967264 }
  0x57   :  { %5890 = dma.done.wait [#allocation7], 11264  }
  0x58   :  { %5891 = vsyncadd [#allocation7], 4294956032 }
  0x59   :  { %5892 = dma.done.wait [#allocation10], 32  }
  0x5a   :  { %5893 = vsyncadd [#allocation10], 4294967264  ;;  %v6044_v0 = vld [vmem:[%s8593_s0] ss:$28 sps:$4 sm:$0xff]   ;;  %vm321_vm0 = vcmask 97280   ;;  %s5901_s10 = smov 72  }
  0x5b   :  { %v5543_v1 = vld [vmem:[%s8593_s0 + $0x4] ss:$28 sps:$4 sm:$0xff]   ;;  %473 = vrot.lane.b32.xlu1 %v6044_v0, %s5901_s10  ;;  %s5902_s8 = smov 100   ;;  %v6064_v4 = vld [vmem:[%s8594_s1 + $0x14] ss:$8 sps:$4 sm:$0xff]   ;;  %s5903_s27 = smov 44  }
  0x5c   :  { %379 = vrot.lane.b32.xlu0 %v6044_v0, %s5902_s8  ;;  %v6054_v2 = vld [vmem:[%s8594_s1 + $0x4] ss:$8 sps:$4 sm:$0xff]   ;;  %v6059_v3 = vld [vmem:[%s8594_s1] ss:$8 sps:$4 sm:$0xff]   ;;  %4425 = vmatprep.mubr.msk.bf16.mxu0 %vm321_vm0, %v5543_v1  ;;  %v6073_v5 = vld [vmem:[%s8594_s1 + $0x10] ss:$8 sps:$4 sm:$0xff]  }
  0x5d   :  { %332 = vmatprep.subr.bf16.mxu0 %v6054_v2  ;;  %389 = vmatprep.subr.bf16.mxu1 %v6054_v2  ;;  %v6080_v6 = vld [vmem:[%s8594_s1 + $0x24] ss:$8 sps:$4 sm:$0xff]   ;;  %v6087_v7 = vld [vmem:[%s8594_s1 + $0x20] ss:$8 sps:$4 sm:$0xff]   ;;  %v6095_v8 = vld [vmem:[%s8594_s1 + $0x34] ss:$8 sps:$4 sm:$0xff]  }
  0x5e   :  { %333 = vmatpush1.bf16.msra.mxu0 %v6059_v3  ;;  %390 = vmatpush1.bf16.msra.mxu1 %v6059_v3  ;;  %v6101_v9 = vld [vmem:[%s8594_s1 + $0x30] ss:$8 sps:$4 sm:$0xff]   ;;  %v6107_v10 = vld [vmem:[%s8594_s1 + $0x44] ss:$8 sps:$4 sm:$0xff]   ;;  %s5904_s12 = smov 16   ;;  %s5905_s2 = smov 116  }
  0x5f   :  { %475 = vrot.lane.b32.xlu1 %v5543_v1, %s5901_s10  ;;  %334 = vmatprep.subr.bf16.mxu0 %v6064_v4  ;;  %v5564_v11 = vld [vmem:[%s8593_s0 + $0x8] ss:$28 sps:$4 sm:$0xff]   ;;  %v6128_v14 = vld [vmem:[%s8594_s1 + $0x54] ss:$8 sps:$4 sm:$0xff]   ;;  %vm325_vm1 = vcmask 1045504   ;;  %s5906_s25 = smov 88  }
  0x60   :  { %381 = vrot.lane.b32.xlu0 %v5543_v1, %s5902_s8  ;;  %391 = vmatprep.subr.bf16.mxu1 %v6064_v4  ;;  %v5566_v12 = vld [vmem:[%s8593_s0 + $0x4] ss:$28 sps:$4 sm:$0xff]   ;;  %v6138_v15 = vld [vmem:[%s8594_s1 + $0x50] ss:$8 sps:$4 sm:$0xff]   ;;  %v6160_v19 = vld [vmem:[%s8594_s1 + $0x74] ss:$8 sps:$4 sm:$0xff]  }
  0x61   :  { %v6122_v13 = vld [vmem:[%s8594_s1 + $0x40] ss:$8 sps:$4 sm:$0xff]   ;;  %v6143_v16 = vld [vmem:[%s8594_s1 + $0x64] ss:$8 sps:$4 sm:$0xff]   ;;  %v6169_v20 = vld [vmem:[%s8594_s1 + $0x70] ss:$8 sps:$4 sm:$0xff]  }
  0x62   :  { %335 = vmatpush1.bf16.msra.mxu0 %v6073_v5  ;;  %392 = vmatpush1.bf16.msra.mxu1 %v6073_v5  ;;  %v5573_v17 = vld [vmem:[%s8594_s1 + $0x80] ss:$8 sps:$4 sm:$0x3f]   ;;  %s5907_s30 = smov 60   ;;  %s5908_s8 = smov 32   ;;  %vm477_vm2 = vcmask 588800  }
  0x63   :  { %532 = vrot.lane.b32.xlu1 %v5543_v1, %s5903_s27  ;;  %336 = vmatprep.subr.bf16.mxu0 %v6080_v6  ;;  %v6154_v18 = vld [vmem:[%s8594_s1 + $0x60] ss:$8 sps:$4 sm:$0xff]   ;;  %v6172_v21 = vsel %vm325_vm1, %v5573_v17, 0  ;;  %v6177_v22 = vld [vmem:[%s8594_s1 + $0x84] ss:$8 sps:$4 sm:$0x3f]  }
  0x64   :  { %530 = vrot.lane.b32.xlu0 %v6044_v0, %s5903_s27  ;;  %393 = vmatprep.subr.bf16.mxu1 %v6080_v6  ;;  %v5574_v23 = vld [vmem:[%s8593_s0 + $0xc] ss:$28 sps:$4 sm:$0xff]   ;;  %s5909_s26 = smov 104   ;;  %s5911_s17 = smov 48   ;;  %vm383_vm3 = vcmask 818176   ;;  %vm534_vm4 = vcmask 359424  }
  0x65   :  { %v5575_v24 = vld [vmem:[%s8593_s0 + $0x8] ss:$28 sps:$4 sm:$0xff]   ;;  %s5912_s18 = smov 20   ;;  %v6233_v27 = vld [vmem:[%s8593_s0 + $0x10] ss:$28 sps:$4 sm:$0xff]   ;;  %s5913_s27 = smov 120  }
  0x66   :  { %337 = vmatpush1.bf16.msra.mxu0 %v6087_v7  ;;  %394 = vmatpush1.bf16.msra.mxu1 %v6087_v7  ;;  %v5577_v25 = vld [vmem:[%s8593_s0 + $0xc] ss:$28 sps:$4 sm:$0xff]   ;;  %s5914_s6 = smov 92   ;;  %vm625_vm5 = vcmask 130048   ;;  %s5916_s24 = smov 8   ;;  %vm692_vm6 = vcmask 949248  }
  0x67   :  { %623 = vrot.lane.b32.xlu1 %v5543_v1, %s5904_s12  ;;  %338 = vmatprep.subr.bf16.mxu0 %v6095_v8  ;;  %v6228_v26 = vld [vmem:[%s8593_s0 + $0xc] ss:$28 sps:$4 sm:$0xff]   ;;  %v5581_v42 = vld [vmem:[%s8593_s0 + $0x14] ss:$28 sps:$4 sm:$0xff]   ;;  %vm783_vm7 = vcmask 719872   ;;  %s5917_s3 = smov 108  }
  0x68   :  { %621 = vrot.lane.b32.xlu0 %v6044_v0, %s5904_s12  ;;  %395 = vmatprep.subr.bf16.mxu1 %v6095_v8  ;;  %v5582_v49 = vld [vmem:[%s8593_s0 + $0x10] ss:$28 sps:$4 sm:$0xff]   ;;  %s5918_s10 = smov 80   ;;  %s5920_s11 = smov 24   ;;  %v5587_v53 = vld [vmem:[%s8593_s0 + $0x18] ss:$28 sps:$4 sm:$0xff]  }
  0x69   :  { %v5584_v50 = vld [vmem:[%s8593_s0 + $0x14] ss:$28 sps:$4 sm:$0xff]   ;;  %vm840_vm8 = vcmask 490496   ;;  %vm931_vm9 = vcmask 261120   ;;  %vm1007_vm10 = vcmask 31744   ;;  %vm1099_vm11 = vcmask 850944  }
  0x6a   :  { %339 = vmatpush1.bf16.msra.mxu0 %v6101_v9  ;;  %396 = vmatpush1.bf16.msra.mxu1 %v6101_v9  ;;  %v5585_v52 = vld [vmem:[%s8593_s0 + $0x14] ss:$28 sps:$4 sm:$0xff]   ;;  %v6397_v60 = vld [vmem:[%s8594_s1 + $0x4] ss:$8 sps:$4 sm:$0xff]   ;;  %v6406_v63 = vld [vmem:[%s8594_s1] ss:$8 sps:$4 sm:$0xff]  }
  0x6b   :  { %340 = vmatprep.subr.bf16.mxu0 %v6107_v10  ;;  %690 = vrot.lane.b32.xlu1 %v5564_v11, %s5905_s2  ;;  %v6422_v1 = vld [vmem:[%s8594_s1 + $0x10] ss:$8 sps:$4 sm:$0xff]   ;;  %v6522_v17 = vld [vmem:[%s8594_s1 + $0x54] ss:$8 sps:$4 sm:$0xff]   ;;  %vm1156_vm12 = vcmask 621568   ;;  %vm1247_vm13 = vcmask 392192  }
  0x6c   :  { %688 = vrot.lane.b32.xlu0 %v5566_v12, %s5905_s2  ;;  %397 = vmatprep.subr.bf16.mxu1 %v6107_v10  ;;  %vm1304_vm14 = vcmask 162816   ;;  %vm1395_vm15 = vcmask 982016  }
  0x6e   :  { %341 = vmatpush1.bf16.msra.mxu0 %v6122_v13  ;;  %398 = vmatpush1.bf16.msra.mxu1 %v6122_v13 }
  0x6f   :  { %342 = vmatprep.subr.bf16.mxu0 %v6128_v14  ;;  %781 = vrot.lane.b32.xlu1 %v5564_v11, %s5906_s25 }
  0x70   :  { %779 = vrot.lane.b32.xlu0 %v5566_v12, %s5906_s25  ;;  %399 = vmatprep.subr.bf16.mxu1 %v6128_v14 }
  0x72   :  { %343 = vmatpush1.bf16.msra.mxu0 %v6138_v15  ;;  %400 = vmatpush1.bf16.msra.mxu1 %v6138_v15 }
  0x73   :  { %344 = vmatprep.subr.bf16.mxu0 %v6143_v16  ;;  %401 = vmatprep.subr.bf16.mxu1 %v6143_v16 }
  0x74   :  { %838 = vrot.lane.b32.xlu1 %v5564_v11, %s5907_s30  ;;  %836 = vrot.lane.b32.xlu0 %v5566_v12, %s5907_s30 }
  0x76   :  { %345 = vmatpush1.bf16.msra.mxu0 %v6154_v18  ;;  %402 = vmatpush1.bf16.msra.mxu1 %v6154_v18 }
  0x77   :  { %346 = vmatprep.subr.bf16.mxu0 %v6160_v19  ;;  %403 = vmatprep.subr.bf16.mxu1 %v6160_v19 }
  0x78   :  { %929 = vrot.lane.b32.xlu1 %v5564_v11, %s5908_s8  ;;  %927 = vrot.lane.b32.xlu0 %v5566_v12, %s5908_s8  ;;  %s5919_s8 = smov 52  }
  0x7a   :  { %347 = vmatpush1.bf16.msra.mxu0 %v6169_v20  ;;  %404 = vmatpush1.bf16.msra.mxu1 %v6169_v20 }
  0x7b   :  { %4424 = vmatprep.subr.msk.bf16.mxu0 %vm325_vm1, %v6177_v22  ;;  %4426 = vmatprep.subr.msk.bf16.mxu1 %vm325_vm1, %v6177_v22 }
  0x7c   :  { %1003 = vrot.lane.b32.xlu0 %v5564_v11, %s5896_s20  ;;  %1005 = vrot.lane.b32.xlu1 %v5574_v23, %s5896_s20 }
  0x7e   :  { %349 = vmatpush1.bf16.msra.mxu0 %v6172_v21  ;;  %406 = vmatpush1.bf16.msra.mxu1 %v6172_v21 }
  0x7f   :  { %483 = vmatprep.subr.bf16.mxu0 %v6054_v2  ;;  %540 = vmatprep.subr.bf16.mxu1 %v6054_v2 }
  0x80   :  { %1001 = vrot.lane.b32.xlu0 %v5566_v12, %s5896_s20  ;;  %1095 = vrot.lane.b32.xlu1 %v5575_v24, %s5909_s26  ;;  %s5910_s20 = smov 76  }
  0x81   :  { %365 = vmatmul.mubr.bf16.vlgmr.msra.gmra.mrb[0].mxu0 %v6044_v0  ;;  %v6413_v0 = vld [vmem:[%s8594_s1 + $0x14] ss:$8 sps:$4 sm:$0xff]  }
  0x82   :  { %484 = vmatpush1.bf16.msra.mxu0 %v6059_v3 }
  0x83   :  { %485 = vmatprep.subr.bf16.mxu0 %v6064_v4 }
  0x84   :  { %1097 = vrot.lane.b32.xlu0 %v5577_v25, %s5909_s26  ;;  %1152 = vrot.lane.b32.xlu1 %v5575_v24, %s5910_s20 }
  0x86   :  { %486 = vmatpush1.bf16.msra.mxu0 %v6073_v5 }
  0x87   :  { %487 = vmatprep.subr.bf16.mxu0 %v6080_v6 }
  0x88   :  { %1154 = vrot.lane.b32.xlu0 %v5577_v25, %s5910_s20  ;;  %1243 = vrot.lane.b32.xlu1 %v5575_v24, %s5911_s17  ;;  %s5921_s20 = smov 124  }
  0x8a   :  { %488 = vmatpush1.bf16.msra.mxu0 %v6087_v7 }
  0x8b   :  { %489 = vmatprep.subr.bf16.mxu0 %v6095_v8 }
  0x8c   :  { %1245 = vrot.lane.b32.xlu0 %v5577_v25, %s5911_s17  ;;  %1300 = vrot.lane.b32.xlu1 %v5575_v24, %s5912_s18  ;;  %v6543_v24 = vld [vmem:[%s8594_s1 + $0x60] ss:$8 sps:$4 sm:$0xff]  }
  0x8e   :  { %490 = vmatpush1.bf16.msra.mxu0 %v6101_v9 }
  0x8f   :  { %491 = vmatprep.subr.bf16.mxu0 %v6107_v10 }
  0x90   :  { %1302 = vrot.lane.b32.xlu0 %v5577_v25, %s5912_s18  ;;  %1391 = vrot.lane.b32.xlu1 %v6228_v26, %s5913_s27  ;;  %v6550_v25 = vld [vmem:[%s8594_s1 + $0x74] ss:$8 sps:$4 sm:$0xff]  }
  0x92   :  { %492 = vmatpush1.bf16.msra.mxu0 %v6122_v13 }
  0x93   :  { %493 = vmatprep.subr.bf16.mxu0 %v6128_v14 }
  0x94   :  { %1393 = vrot.lane.b32.xlu0 %v6233_v27, %s5913_s27  ;;  %1448 = vrot.lane.b32.xlu1 %v6228_v26, %s5914_s6 }
  0x96   :  { %494 = vmatpush1.bf16.msra.mxu0 %v6138_v15 }
  0x97   :  { %495 = vmatprep.subr.bf16.mxu0 %v6143_v16 }
  0x98   :  { %1450 = vrot.lane.b32.xlu0 %v6233_v27, %s5914_s6  ;;  %1539 = vrot.lane.b32.xlu1 %v6228_v26, %s5895_s19  ;;  %s5922_s6 = smov 118  }
  0x9a   :  { %496 = vmatpush1.bf16.msra.mxu0 %v6154_v18 }
  0x9b   :  { %497 = vmatprep.subr.bf16.mxu0 %v6160_v19 }
  0x9c   :  { %1541 = vrot.lane.b32.xlu0 %v6233_v27, %s5895_s19  ;;  %s5915_s19 = smov 36  }
  0x9d   :  { %1596 = vrot.lane.b32.xlu1 %v6228_v26, %s5915_s19 }
  0x9e   :  { %498 = vmatpush1.bf16.msra.mxu0 %v6169_v20 }
  0x9f   :  { %4430 = vmatprep.subr.msk.bf16.mxu0 %vm325_vm1, %v6177_v22 }
  0xa0   :  { %1598 = vrot.lane.b32.xlu0 %v6233_v27, %s5915_s19 }
  0xa1   :  { %1696 = vrot.lane.b32.xlu1 %v6233_v27, %s5916_s24 }
  0xa2   :  { %500 = vmatpush1.bf16.msra.mxu0 %v6172_v21 }
  0xa3   :  { %631 = vmatprep.subr.bf16.mxu0 %v6054_v2 }
  0xa4   :  { %1698 = vrot.lane.b32.xlu0 %v5581_v42, %s5916_s24 }
  0xa5   :  { %1694 = vrot.lane.b32.xlu1 %v6228_v26, %s5916_s24 }
  0xa8   :  { %1764 = vrot.lane.b32.xlu0 %v5582_v49, %s5917_s3 }
  0xa9   :  { %1766 = vrot.lane.b32.xlu1 %v5584_v50, %s5917_s3 }
  0xac   :  { %1855 = vrot.lane.b32.xlu0 %v5582_v49, %s5918_s10 }
  0xad   :  { %1857 = vrot.lane.b32.xlu1 %v5584_v50, %s5918_s10 }
  0xb0   :  { %1912 = vrot.lane.b32.xlu0 %v5582_v49, %s5919_s8 }
  0xb1   :  { %1914 = vrot.lane.b32.xlu1 %v5584_v50, %s5919_s8 }
  0xb4   :  { %2003 = vrot.lane.b32.xlu0 %v5582_v49, %s5920_s11 }
  0xb5   :  { %2005 = vrot.lane.b32.xlu1 %v5584_v50, %s5920_s11 }
  0xb8   :  { %2070 = vrot.lane.b32.xlu0 %v5585_v52, %s5921_s20 }
  0xb9   :  { %2072 = vrot.lane.b32.xlu1 %v5587_v53, %s5921_s20 }
  0xcd   :  { %v474_v28 = vpop.permute.xlu1 %473 }
  0xce   :  { %v380_v29 = vpop.permute.xlu0 %379 }
  0xd1   :  { %v476_v30 = vpop.permute.xlu1 %475 }
  0xd2   :  { %v382_v31 = vpop.permute.xlu0 %381  ;;  %v478_v32 = vsel %vm477_vm2, %v474_v28, %v476_v30  ;;  %4431 = vmatprep.mubr.msk.bf16.mxu0 %vm321_vm0, %v476_v30  ;;  %vm1452_vm2 = vcmask 752640  }
  0xd3   :  { %4427 = vmatprep.mubr.msk.bf16.mxu1 %vm321_vm0, %v382_v31  ;;  %v384_v33 = vsel %vm383_vm3, %v380_v29, %v382_v31  ;;  %516 = vmatmul.mubr.bf16.vlgmr.msra.gmra.mrb[4].mxu0 %v478_v32  ;;  %v113_v32 = vld [vmem:[#allocation4] sm:$0x3]  ;;  %vm1543_vm3 = vcmask 523264  }
  0xd4   :  { %422 = vmatmul.mubr.bf16.vlgmr.msra.gmra.mrb[0].mxu1 %v384_v33  ;;  %632 = vmatpush1.bf16.msra.mxu0 %v6059_v3 }
  0xd5   :  { %541 = vmatpush1.bf16.msra.mxu1 %v6059_v3  ;;  %633 = vmatprep.subr.bf16.mxu0 %v6064_v4  ;;  %v533_v34 = vpop.permute.xlu1 %532 }
  0xd6   :  { %542 = vmatprep.subr.bf16.mxu1 %v6064_v4  ;;  %4433 = vmatprep.mubr.msk.bf16.mxu1 %vm321_vm0, %v533_v34  ;;  %v531_v36 = vpop.permute.xlu0 %530 }
  0xd7   :  { %v535_v39 = vsel %vm534_vm4, %v531_v36, %v533_v34  ;;  %vm1700_vm4 = vcmask 64512  }
  0xd8   :  { %634 = vmatpush1.bf16.msra.mxu0 %v6073_v5 }
  0xd9   :  { %543 = vmatpush1.bf16.msra.mxu1 %v6073_v5  ;;  %635 = vmatprep.subr.bf16.mxu0 %v6080_v6  ;;  %v624_v35 = vpop.permute.xlu1 %623 }
  0xda   :  { %544 = vmatprep.subr.bf16.mxu1 %v6080_v6  ;;  %4437 = vmatprep.mubr.msk.bf16.mxu0 %vm321_vm0, %v624_v35  ;;  %v622_v37 = vpop.permute.xlu0 %621 }
  0xdb   :  { %v626_v40 = vsel %vm625_vm5, %v622_v37, %v624_v35  ;;  %v6608_v37 = vld [vmem:[%s8594_s1 + $0x70] ss:$8 sps:$4 sm:$0xff]   ;;  %vm1600_vm5 = vcmask 293888  }
  0xdc   :  { %636 = vmatpush1.bf16.msra.mxu0 %v6087_v7 }
  0xdd   :  { %545 = vmatpush1.bf16.msra.mxu1 %v6087_v7  ;;  %637 = vmatprep.subr.bf16.mxu0 %v6095_v8  ;;  %v691_v38 = vpop.permute.xlu1 %690 }
  0xde   :  { %546 = vmatprep.subr.bf16.mxu1 %v6095_v8  ;;  %v689_v43 = vpop.permute.xlu0 %688 }
  0xdf   :  { %v693_v46 = vsel %vm692_vm6, %v689_v43, %v691_v38  ;;  %vm1768_vm6 = vcmask 883712  }
  0xe0   :  { %638 = vmatpush1.bf16.msra.mxu0 %v6101_v9 }
  0xe1   :  { %547 = vmatpush1.bf16.msra.mxu1 %v6101_v9  ;;  %639 = vmatprep.subr.bf16.mxu0 %v6107_v10  ;;  %v782_v41 = vpop.permute.xlu1 %781 }
  0xe2   :  { %548 = vmatprep.subr.bf16.mxu1 %v6107_v10  ;;  %v780_v44 = vpop.permute.xlu0 %779 }
  0xe3   :  { %v784_v47 = vsel %vm783_vm7, %v780_v44, %v782_v41  ;;  %vm1859_vm7 = vcmask 654336  }
  0xe4   :  { %640 = vmatpush1.bf16.msra.mxu0 %v6122_v13 }
  0xe5   :  { %549 = vmatpush1.bf16.msra.mxu1 %v6122_v13  ;;  %641 = vmatprep.subr.bf16.mxu0 %v6128_v14 }
  0xe6   :  { %550 = vmatprep.subr.bf16.mxu1 %v6128_v14  ;;  %v6328_v45 = vpop.permute.xlu1 %838  ;;  %v837_v51 = vpop.permute.xlu0 %836 }
  0xe7   :  { %v841_v57 = vsel %vm840_vm8, %v837_v51, %v6328_v45 }
  0xe8   :  { %642 = vmatpush1.bf16.msra.mxu0 %v6138_v15 }
  0xe9   :  { %551 = vmatpush1.bf16.msra.mxu1 %v6138_v15  ;;  %643 = vmatprep.subr.bf16.mxu0 %v6143_v16 }
  0xea   :  { %552 = vmatprep.subr.bf16.mxu1 %v6143_v16  ;;  %v6334_v48 = vpop.permute.xlu1 %929  ;;  %v928_v54 = vpop.permute.xlu0 %927 }
  0xeb   :  { %v932_v58 = vsel %vm931_vm9, %v928_v54, %v6334_v48  ;;  %vm1916_vm9 = vcmask 424960  }
  0xec   :  { %644 = vmatpush1.bf16.msra.mxu0 %v6154_v18 }
  0xed   :  { %553 = vmatpush1.bf16.msra.mxu1 %v6154_v18  ;;  %645 = vmatprep.subr.bf16.mxu0 %v6160_v19 }
  0xee   :  { %554 = vmatprep.subr.bf16.mxu1 %v6160_v19  ;;  %v6376_v55 = vpop.permute.xlu0 %1003  ;;  %v1006_v59 = vpop.permute.xlu1 %1005 }
  0xef   :  { %v1009_v61 = vsel %vm1007_vm10, %v6376_v55, %v1006_v59 }
  0xf0   :  { %646 = vmatpush1.bf16.msra.mxu0 %v6169_v20 }
  0xf1   :  { %555 = vmatpush1.bf16.msra.mxu1 %v6169_v20  ;;  %4436 = vmatprep.subr.msk.bf16.mxu0 %vm325_vm1, %v6177_v22 }
  0xf2   :  { %4432 = vmatprep.subr.msk.bf16.mxu1 %vm325_vm1, %v6177_v22  ;;  %v6388_v56 = vpop.permute.xlu0 %1001  ;;  %v1096_v11 = vpop.permute.xlu1 %1095 }
  0xf4   :  { %648 = vmatpush1.bf16.msra.mxu0 %v6172_v21 }
  0xf5   :  { %557 = vmatpush1.bf16.msra.mxu1 %v6172_v21  ;;  %789 = vmatprep.subr.bf16.mxu0 %v6054_v2 }
  0xf6   :  { %698 = vmatprep.subr.bf16.mxu1 %v6054_v2  ;;  %v1098_v62 = vpop.permute.xlu0 %1097  ;;  %v1153_v23 = vpop.permute.xlu1 %1152 }
  0xf7   :  { %664 = vmatmul.mubr.bf16.vlgmr.msra.gmra.mrb[8].mxu0 %v626_v40 }
  0xf8   :  { %573 = vmatmul.mubr.bf16.vlgmr.msra.gmra.mrb[4].mxu1 %v535_v39  ;;  %790 = vmatpush1.bf16.msra.mxu0 %v6059_v3  ;;  %v6617_v39 = vld [vmem:[%s8594_s1 + $0x84] ss:$8 sps:$4 sm:$0x3f]  }
  0xf9   :  { %699 = vmatpush1.bf16.msra.mxu1 %v6059_v3  ;;  %791 = vmatprep.subr.bf16.mxu0 %v6064_v4 }
  0xfa   :  { %700 = vmatprep.subr.bf16.mxu1 %v6064_v4  ;;  %4441 = vmatprep.mubr.msk.bf16.mxu1 %vm321_vm0, %v691_v38  ;;  %v1155_v12 = vpop.permute.xlu0 %1154  ;;  %v1244_v26 = vpop.permute.xlu1 %1243 }
  0xfb   :  { %4445 = vmatprep.mubr.msk.bf16.mxu0 %vm321_vm0, %v782_v41  ;;  %v1157_v28 = vsel %vm1156_vm12, %v1153_v23, %v1155_v12 }
  0xfc   :  { %792 = vmatpush1.bf16.msra.mxu0 %v6073_v5 }
  0xfd   :  { %701 = vmatpush1.bf16.msra.mxu1 %v6073_v5  ;;  %793 = vmatprep.subr.bf16.mxu0 %v6080_v6 }
  0xfe   :  { %702 = vmatprep.subr.bf16.mxu1 %v6080_v6  ;;  %v1301_v34 = vpop.permute.xlu1 %1300 }
 0x100   :  { %794 = vmatpush1.bf16.msra.mxu0 %v6087_v7 }
 0x101   :  { %703 = vmatpush1.bf16.msra.mxu1 %v6087_v7  ;;  %795 = vmatprep.subr.bf16.mxu0 %v6095_v8 }
 0x102   :  { %704 = vmatprep.subr.bf16.mxu1 %v6095_v8  ;;  %v1392_v40 = vpop.permute.xlu1 %1391 }
 0x104   :  { %796 = vmatpush1.bf16.msra.mxu0 %v6101_v9 }
 0x105   :  { %705 = vmatpush1.bf16.msra.mxu1 %v6101_v9  ;;  %797 = vmatprep.subr.bf16.mxu0 %v6107_v10 }
 0x106   :  { %706 = vmatprep.subr.bf16.mxu1 %v6107_v10 }
 0x108   :  { %798 = vmatpush1.bf16.msra.mxu0 %v6122_v13 }
 0x109   :  { %707 = vmatpush1.bf16.msra.mxu1 %v6122_v13  ;;  %799 = vmatprep.subr.bf16.mxu0 %v6128_v14 }
 0x10a   :  { %708 = vmatprep.subr.bf16.mxu1 %v6128_v14 }
 0x10c   :  { %800 = vmatpush1.bf16.msra.mxu0 %v6138_v15 }
 0x10d   :  { %709 = vmatpush1.bf16.msra.mxu1 %v6138_v15  ;;  %801 = vmatprep.subr.bf16.mxu0 %v6143_v16 }
 0x10e   :  { %710 = vmatprep.subr.bf16.mxu1 %v6143_v16 }
 0x110   :  { %802 = vmatpush1.bf16.msra.mxu0 %v6154_v18 }
 0x111   :  { %711 = vmatpush1.bf16.msra.mxu1 %v6154_v18  ;;  %803 = vmatprep.subr.bf16.mxu0 %v6160_v19 }
 0x112   :  { %712 = vmatprep.subr.bf16.mxu1 %v6160_v19 }
 0x114   :  { %804 = vmatpush1.bf16.msra.mxu0 %v6169_v20 }
 0x115   :  { %713 = vmatpush1.bf16.msra.mxu1 %v6169_v20  ;;  %4444 = vmatprep.subr.msk.bf16.mxu0 %vm325_vm1, %v6177_v22 }
 0x116   :  { %4440 = vmatprep.subr.msk.bf16.mxu1 %vm325_vm1, %v6177_v22 }
 0x118   :  { %806 = vmatpush1.bf16.msra.mxu0 %v6172_v21 }
 0x119   :  { %715 = vmatpush1.bf16.msra.mxu1 %v6172_v21  ;;  %937 = vmatprep.subr.bf16.mxu0 %v6054_v2 }
 0x11a   :  { %846 = vmatprep.subr.bf16.mxu1 %v6054_v2  ;;  %v6429_v2 = vld [vmem:[%s8594_s1 + $0x24] ss:$8 sps:$4 sm:$0xff]  }
 0x11b   :  { %822 = vmatmul.mubr.bf16.vlgmr.msra.gmra.mrb[12].mxu0 %v784_v47 }
 0x11c   :  { %731 = vmatmul.mubr.bf16.vlgmr.msra.gmra.mrb[8].mxu1 %v693_v46  ;;  %938 = vmatpush1.bf16.msra.mxu0 %v6059_v3 }
 0x11d   :  { %847 = vmatpush1.bf16.msra.mxu1 %v6059_v3  ;;  %939 = vmatprep.subr.bf16.mxu0 %v6064_v4  ;;  %v6436_v3 = vld [vmem:[%s8594_s1 + $0x20] ss:$8 sps:$4 sm:$0xff]  }
 0x11e   :  { %848 = vmatprep.subr.bf16.mxu1 %v6064_v4  ;;  %4447 = vmatprep.mubr.msk.bf16.mxu1 %vm321_vm0, %v6328_v45  ;;  %v6443_v4 = vld [vmem:[%s8594_s1 + $0x34] ss:$8 sps:$4 sm:$0xff]  }
 0x11f   :  { %4451 = vmatprep.mubr.msk.bf16.mxu0 %vm321_vm0, %v6334_v48 }
 0x120   :  { %940 = vmatpush1.bf16.msra.mxu0 %v6073_v5 }
 0x121   :  { %849 = vmatpush1.bf16.msra.mxu1 %v6073_v5  ;;  %941 = vmatprep.subr.bf16.mxu0 %v6080_v6  ;;  %v6450_v5 = vld [vmem:[%s8594_s1 + $0x30] ss:$8 sps:$4 sm:$0xff]  }
 0x122   :  { %850 = vmatprep.subr.bf16.mxu1 %v6080_v6  ;;  %v6457_v6 = vld [vmem:[%s8594_s1 + $0x44] ss:$8 sps:$4 sm:$0xff]  }
 0x124   :  { %942 = vmatpush1.bf16.msra.mxu0 %v6087_v7 }
 0x125   :  { %851 = vmatpush1.bf16.msra.mxu1 %v6087_v7  ;;  %943 = vmatprep.subr.bf16.mxu0 %v6095_v8 }
 0x126   :  { %852 = vmatprep.subr.bf16.mxu1 %v6095_v8 }
 0x128   :  { %944 = vmatpush1.bf16.msra.mxu0 %v6101_v9 }
 0x129   :  { %853 = vmatpush1.bf16.msra.mxu1 %v6101_v9  ;;  %945 = vmatprep.subr.bf16.mxu0 %v6107_v10 }
 0x12a   :  { %854 = vmatprep.subr.bf16.mxu1 %v6107_v10 }
 0x12c   :  { %946 = vmatpush1.bf16.msra.mxu0 %v6122_v13 }
 0x12d   :  { %855 = vmatpush1.bf16.msra.mxu1 %v6122_v13  ;;  %947 = vmatprep.subr.bf16.mxu0 %v6128_v14 }
 0x12e   :  { %856 = vmatprep.subr.bf16.mxu1 %v6128_v14 }
 0x130   :  { %948 = vmatpush1.bf16.msra.mxu0 %v6138_v15 }
 0x131   :  { %857 = vmatpush1.bf16.msra.mxu1 %v6138_v15  ;;  %949 = vmatprep.subr.bf16.mxu0 %v6143_v16 }
 0x132   :  { %858 = vmatprep.subr.bf16.mxu1 %v6143_v16 }
 0x134   :  { %950 = vmatpush1.bf16.msra.mxu0 %v6154_v18 }
 0x135   :  { %859 = vmatpush1.bf16.msra.mxu1 %v6154_v18  ;;  %951 = vmatprep.subr.bf16.mxu0 %v6160_v19 }
 0x136   :  { %860 = vmatprep.subr.bf16.mxu1 %v6160_v19 }
 0x138   :  { %952 = vmatpush1.bf16.msra.mxu0 %v6169_v20 }
 0x139   :  { %861 = vmatpush1.bf16.msra.mxu1 %v6169_v20  ;;  %4450 = vmatprep.subr.msk.bf16.mxu0 %vm325_vm1, %v6177_v22 }
 0x13a   :  { %4446 = vmatprep.subr.msk.bf16.mxu1 %vm325_vm1, %v6177_v22 }
 0x13c   :  { %954 = vmatpush1.bf16.msra.mxu0 %v6172_v21 }
 0x13d   :  { %863 = vmatpush1.bf16.msra.mxu1 %v6172_v21  ;;  %1105 = vmatprep.subr.bf16.mxu0 %v6397_v60 }
 0x13e   :  { %1014 = vmatprep.subr.bf16.mxu1 %v6397_v60 }
 0x13f   :  { %970 = vmatmul.mubr.bf16.vlgmr.msra.gmra.mrb[16].mxu0 %v932_v58 }
 0x140   :  { %879 = vmatmul.mubr.bf16.vlgmr.msra.gmra.mrb[12].mxu1 %v841_v57  ;;  %1106 = vmatpush1.bf16.msra.mxu0 %v6406_v63 }
 0x141   :  { %1015 = vmatpush1.bf16.msra.mxu1 %v6406_v63  ;;  %1107 = vmatprep.subr.bf16.mxu0 %v6413_v0 }
 0x142   :  { %1016 = vmatprep.subr.bf16.mxu1 %v6413_v0  ;;  %4456 = vmatprep.mubr.msk.bf16.mxu1 %vm321_vm0, %v1009_v61 }
 0x143   :  { %4460 = vmatprep.mubr.msk.bf16.mxu0 %vm321_vm0, %v1098_v62 }
 0x144   :  { %1108 = vmatpush1.bf16.msra.mxu0 %v6422_v1 }
 0x145   :  { %1017 = vmatpush1.bf16.msra.mxu1 %v6422_v1  ;;  %1109 = vmatprep.subr.bf16.mxu0 %v6429_v2 }
 0x146   :  { %1018 = vmatprep.subr.bf16.mxu1 %v6429_v2 }
 0x148   :  { %1110 = vmatpush1.bf16.msra.mxu0 %v6436_v3 }
 0x149   :  { %1019 = vmatpush1.bf16.msra.mxu1 %v6436_v3  ;;  %1111 = vmatprep.subr.bf16.mxu0 %v6443_v4 }
 0x14a   :  { %1020 = vmatprep.subr.bf16.mxu1 %v6443_v4 }
 0x14c   :  { %1112 = vmatpush1.bf16.msra.mxu0 %v6450_v5 }
 0x14d   :  { %1021 = vmatpush1.bf16.msra.mxu1 %v6450_v5  ;;  %1113 = vmatprep.subr.bf16.mxu0 %v6457_v6 }
 0x14e   :  { %1022 = vmatprep.subr.bf16.mxu1 %v6457_v6 }
 0x150   :  { %1114 = vmatpush1.bf16.msra.mxu0 %v6122_v13 }
 0x151   :  { %1023 = vmatpush1.bf16.msra.mxu1 %v6122_v13  ;;  %1115 = vmatprep.subr.bf16.mxu0 %v6128_v14  ;;  %v1100_v13 = vsel %vm1099_vm11, %v1096_v11, %v1098_v62 }
 0x152   :  { %1024 = vmatprep.subr.bf16.mxu1 %v6128_v14  ;;  %v1008_v14 = vsel %vm1007_vm10, %v6388_v56, %v6376_v55  ;;  %vm2007_vm10 = vcmask 195584  }
 0x154   :  { %1116 = vmatpush1.bf16.msra.mxu0 %v6138_v15  ;;  %v6467_v7 = vpop.f32.mrb[0].mxu0 }
 0x155   :  { %1025 = vmatpush1.bf16.msra.mxu1 %v6138_v15  ;;  %1117 = vmatprep.subr.bf16.mxu0 %v6143_v16  ;;  %v6471_v8 = vpop.f32.mrb[1].mxu0  ;;  %v1246_v15 = vpop.permute.xlu0 %1245 }
 0x156   :  { %1026 = vmatprep.subr.bf16.mxu1 %v6143_v16  ;;  %v6473_v9 = vpop.f32.mrb[2].mxu0  ;;  %v6515_v16 = vld [vmem:[%s8594_s1 + $0x40] ss:$8 sps:$4 sm:$0xff]   ;;  %v1248_v29 = vsel %vm1247_vm13, %v1244_v26, %v1246_v15 }
 0x157   :  { %v6475_v10 = vpop.f32.mrb[3].mxu0 }
 0x158   :  { %1118 = vmatpush1.bf16.msra.mxu0 %v6154_v18 }
 0x159   :  { %1027 = vmatpush1.bf16.msra.mxu1 %v6154_v18  ;;  %1119 = vmatprep.subr.bf16.mxu0 %v6160_v19  ;;  %v6529_v18 = vld [vmem:[%s8594_s1 + $0x50] ss:$8 sps:$4 sm:$0xff]   ;;  %v6560_v27 = vpop.permute.xlu0 %1302 }
 0x15a   :  { %1028 = vmatprep.subr.bf16.mxu1 %v6160_v19  ;;  %v6536_v19 = vld [vmem:[%s8594_s1 + $0x64] ss:$8 sps:$4 sm:$0xff]   ;;  %v1305_v46 = vsel %vm1304_vm14, %v1301_v34, %v6560_v27 }
 0x15c   :  { %1120 = vmatpush1.bf16.msra.mxu0 %v6169_v20 }
 0x15d   :  { %1029 = vmatpush1.bf16.msra.mxu1 %v6169_v20  ;;  %4459 = vmatprep.subr.msk.bf16.mxu0 %vm325_vm1, %v6177_v22 }
 0x15e   :  { %4455 = vmatprep.subr.msk.bf16.mxu1 %vm325_vm1, %v6177_v22 }
 0x160   :  { %1122 = vmatpush1.bf16.msra.mxu0 %v6172_v21 }
 0x161   :  { %1031 = vmatpush1.bf16.msra.mxu1 %v6172_v21  ;;  %1253 = vmatprep.subr.bf16.mxu0 %v6397_v60 }
 0x162   :  { %1162 = vmatprep.subr.bf16.mxu1 %v6397_v60 }
 0x163   :  { %1138 = vmatmul.mubr.bf16.vlgmr.msra.gmra.mrb[20].mxu0 %v1100_v13 }
 0x164   :  { %1047 = vmatmul.mubr.bf16.vlgmr.msra.gmra.mrb[16].mxu1 %v1008_v14  ;;  %1254 = vmatpush1.bf16.msra.mxu0 %v6406_v63 }
 0x165   :  { %1163 = vmatpush1.bf16.msra.mxu1 %v6406_v63  ;;  %1255 = vmatprep.subr.bf16.mxu0 %v6413_v0 }
 0x166   :  { %1164 = vmatprep.subr.bf16.mxu1 %v6413_v0  ;;  %4462 = vmatprep.mubr.msk.bf16.mxu1 %vm321_vm0, %v1155_v12 }
 0x167   :  { %4466 = vmatprep.mubr.msk.bf16.mxu0 %vm321_vm0, %v1246_v15 }
 0x168   :  { %1256 = vmatpush1.bf16.msra.mxu0 %v6422_v1 }
 0x169   :  { %1165 = vmatpush1.bf16.msra.mxu1 %v6422_v1  ;;  %1257 = vmatprep.subr.bf16.mxu0 %v6429_v2 }
 0x16a   :  { %1166 = vmatprep.subr.bf16.mxu1 %v6429_v2 }
 0x16c   :  { %1258 = vmatpush1.bf16.msra.mxu0 %v6436_v3 }
 0x16d   :  { %1167 = vmatpush1.bf16.msra.mxu1 %v6436_v3  ;;  %1259 = vmatprep.subr.bf16.mxu0 %v6443_v4 }
 0x16e   :  { %1168 = vmatprep.subr.bf16.mxu1 %v6443_v4 }
 0x170   :  { %1260 = vmatpush1.bf16.msra.mxu0 %v6450_v5 }
 0x171   :  { %1169 = vmatpush1.bf16.msra.mxu1 %v6450_v5  ;;  %1261 = vmatprep.subr.bf16.mxu0 %v6457_v6 }
 0x172   :  { %1170 = vmatprep.subr.bf16.mxu1 %v6457_v6 }
 0x174   :  { %1262 = vmatpush1.bf16.msra.mxu0 %v6515_v16 }
 0x175   :  { %1171 = vmatpush1.bf16.msra.mxu1 %v6515_v16  ;;  %1263 = vmatprep.subr.bf16.mxu0 %v6522_v17 }
 0x176   :  { %1172 = vmatprep.subr.bf16.mxu1 %v6522_v17 }
 0x178   :  { %1264 = vmatpush1.bf16.msra.mxu0 %v6529_v18 }
 0x179   :  { %1173 = vmatpush1.bf16.msra.mxu1 %v6529_v18  ;;  %1265 = vmatprep.subr.bf16.mxu0 %v6536_v19 }
 0x17a   :  { %1174 = vmatprep.subr.bf16.mxu1 %v6536_v19 }
 0x17c   :  { %1266 = vmatpush1.bf16.msra.mxu0 %v6543_v24 }
 0x17d   :  { %1175 = vmatpush1.bf16.msra.mxu1 %v6543_v24  ;;  %1267 = vmatprep.subr.bf16.mxu0 %v6550_v25 }
 0x17e   :  { %1176 = vmatprep.subr.bf16.mxu1 %v6550_v25 }
 0x180   :  { %1268 = vmatpush1.bf16.msra.mxu0 %v6169_v20 }
 0x181   :  { %1177 = vmatpush1.bf16.msra.mxu1 %v6169_v20  ;;  %4465 = vmatprep.subr.msk.bf16.mxu0 %vm325_vm1, %v6177_v22  ;;  %v6566_v20 = vpop.permute.xlu0 %1393 }
 0x182   :  { %4461 = vmatprep.subr.msk.bf16.mxu1 %vm325_vm1, %v6177_v22  ;;  %v214_v22 = vlaneseq  ;;  %v1396_v53 = vsel %vm1395_vm15, %v1392_v40, %v6566_v20 }
 0x184   :  { %1270 = vmatpush1.bf16.msra.mxu0 %v6172_v21  ;;  %v215_v30 = vshrl.u32 %v214_v22, 7 }
 0x185   :  { %1179 = vmatpush1.bf16.msra.mxu1 %v6172_v21  ;;  %1401 = vmatprep.subr.bf16.mxu0 %v6397_v60  ;;  %v6623_v41 = vpop.permute.xlu0 %1450 }
 0x186   :  { %1310 = vmatprep.subr.bf16.mxu1 %v6397_v60  ;;  %v216_v31 = vsub.s32 0, %v215_v30  ;;  %v220_v33 = vsub.s32 1, %v215_v30 }
 0x187   :  { %1286 = vmatmul.mubr.bf16.vlgmr.msra.gmra.mrb[24].mxu0 %v1248_v29 }
 0x188   :  { %1195 = vmatmul.mubr.bf16.vlgmr.msra.gmra.mrb[20].mxu1 %v1157_v28  ;;  %1402 = vmatpush1.bf16.msra.mxu0 %v6406_v63  ;;  %v6599_v35 = vrot.slane %v113_v32, %v216_v31  ;;  %v6603_v36 = vrot.slane %v113_v32, %v220_v33  ;;  %v1449_v28 = vpop.permute.xlu1 %1448 }
 0x189   :  { %1311 = vmatpush1.bf16.msra.mxu1 %v6406_v63  ;;  %1403 = vmatprep.subr.bf16.mxu0 %v6413_v0  ;;  %v6651_v11 = vpop.permute.xlu0 %1541 }
 0x18a   :  { %1312 = vmatprep.subr.bf16.mxu1 %v6413_v0  ;;  %4468 = vmatprep.mubr.msk.bf16.mxu1 %vm321_vm0, %v6560_v27  ;;  %v367_v38 = vadd.f32 %v6467_v7, %v6599_v35  ;;  %v369_v42 = vadd.f32 %v6471_v8, %v6603_v36  ;;  %v371_v45 = vadd.f32 %v6473_v9, %v6599_v35 }
 0x18b   :  { %4472 = vmatprep.mubr.msk.bf16.mxu0 %vm321_vm0, %v6566_v20  ;;  %v373_v50 = vadd.f32 %v6475_v10, %v6603_v36 }
 0x18c   :  { %1404 = vmatpush1.bf16.msra.mxu0 %v6422_v1  ;;  %v375_v55 = vmax.f32 %v367_v38, 0.0  ;;  %v376_v61 = vmax.f32 %v369_v42, 0.0  ;;  %v377_v8 = vmax.f32 %v371_v45, 0.0  ;;  %v1540_v20 = vpop.permute.xlu1 %1539  ;;  %v1453_v42 = vsel %vm1452_vm2, %v1449_v28, %v6623_v41 }
 0x18d   :  { %1313 = vmatpush1.bf16.msra.mxu1 %v6422_v1  ;;  %1405 = vmatprep.subr.bf16.mxu0 %v6429_v2  ;;  %v378_v12 = vmax.f32 %v373_v50, 0.0  ;;  %v6693_v29 = vpop.permute.xlu0 %1598 }
 0x18e   :  { %1314 = vmatprep.subr.bf16.mxu1 %v6429_v2 }
 0x190   :  { %1406 = vmatpush1.bf16.msra.mxu0 %v6436_v3  ;;  %v6701_v30 = vpop.permute.xlu1 %1596 }
 0x191   :  { %1315 = vmatpush1.bf16.msra.mxu1 %v6436_v3  ;;  %1407 = vmatprep.subr.bf16.mxu0 %v6443_v4  ;;  %v1699_v32 = vpop.permute.xlu0 %1698 }
 0x192   :  { %1316 = vmatprep.subr.bf16.mxu1 %v6443_v4 }
 0x194   :  { %1408 = vmatpush1.bf16.msra.mxu0 %v6450_v5 }
 0x195   :  { %1317 = vmatpush1.bf16.msra.mxu1 %v6450_v5  ;;  %1409 = vmatprep.subr.bf16.mxu0 %v6457_v6 }
 0x196   :  { %1318 = vmatprep.subr.bf16.mxu1 %v6457_v6 }
 0x198   :  { %1410 = vmatpush1.bf16.msra.mxu0 %v6515_v16 }
 0x199   :  { %1319 = vmatpush1.bf16.msra.mxu1 %v6515_v16  ;;  %1411 = vmatprep.subr.bf16.mxu0 %v6522_v17 }
 0x19a   :  { %1320 = vmatprep.subr.bf16.mxu1 %v6522_v17 }
 0x19c   :  { %1412 = vmatpush1.bf16.msra.mxu0 %v6529_v18 }
 0x19d   :  { %1321 = vmatpush1.bf16.msra.mxu1 %v6529_v18  ;;  %1413 = vmatprep.subr.bf16.mxu0 %v6536_v19 }
 0x19e   :  { %1322 = vmatprep.subr.bf16.mxu1 %v6536_v19 }
 0x1a0   :  { %1414 = vmatpush1.bf16.msra.mxu0 %v6543_v24 }
 0x1a1   :  { %1323 = vmatpush1.bf16.msra.mxu1 %v6543_v24  ;;  %1415 = vmatprep.subr.bf16.mxu0 %v6550_v25 }
 0x1a2   :  { %1324 = vmatprep.subr.bf16.mxu1 %v6550_v25 }
 0x1a4   :  { %1416 = vmatpush1.bf16.msra.mxu0 %v6608_v37 }
 0x1a5   :  { %1325 = vmatpush1.bf16.msra.mxu1 %v6608_v37  ;;  %4471 = vmatprep.subr.msk.bf16.mxu0 %vm325_vm1, %v6617_v39 }
 0x1a6   :  { %4467 = vmatprep.subr.msk.bf16.mxu1 %vm325_vm1, %v6617_v39  ;;  %v6627_v44 = vpop.f32.mrb[4].mxu0 }
 0x1a7   :  { %v423_v43 = vpop.f32.mrb[0].mxu1  ;;  %v6633_v49 = vpop.f32.mrb[5].mxu0  ;;  %v518_v31 = vadd.f32 %v6627_v44, %v6599_v35 }
 0x1a8   :  { %v424_v47 = vadd.f32 %v423_v43, %v6599_v35  ;;  %v425_v48 = vpop.f32.mrb[1].mxu1  ;;  %1418 = vmatpush1.bf16.msra.mxu0 %v6172_v21  ;;  %v6641_v54 = vpop.f32.mrb[6].mxu0  ;;  %v520_v33 = vadd.f32 %v6633_v49, %v6603_v36  ;;  %v1544_v49 = vsel %vm1543_vm3, %v1540_v20, %v6651_v11 }
 0x1a9   :  { %v426_v51 = vadd.f32 %v425_v48, %v6603_v36  ;;  %1327 = vmatpush1.bf16.msra.mxu1 %v6172_v21  ;;  %v427_v52 = vpop.f32.mrb[2].mxu1  ;;  %1549 = vmatprep.subr.bf16.mxu0 %v6397_v60  ;;  %v6646_v59 = vpop.f32.mrb[7].mxu0  ;;  %v522_v40 = vadd.f32 %v6641_v54, %v6599_v35 }
 0x1aa   :  { %v432_v56 = vmax.f32 %v424_v47, 0.0  ;;  %v428_v57 = vadd.f32 %v427_v52, %v6599_v35  ;;  %v429_v58 = vpop.f32.mrb[3].mxu1  ;;  %1458 = vmatprep.subr.bf16.mxu1 %v6397_v60 }
 0x1ab   :  { %v433_v62 = vmax.f32 %v426_v51, 0.0  ;;  %v430_v7 = vadd.f32 %v429_v58, %v6603_v36  ;;  %1434 = vmatmul.mubr.bf16.vlgmr.msra.gmra.mrb[28].mxu0 %v1396_v53  ;;  %v6733_v58 = vpop.permute.xlu1 %1696 }
 0x1ac   :  { %v6649_v9 = vmax.f32 %v375_v55, %v432_v56  ;;  %v434_v10 = vmax.f32 %v428_v57, 0.0  ;;  %1343 = vmatmul.mubr.bf16.vlgmr.msra.gmra.mrb[24].mxu1 %v1305_v46  ;;  %1550 = vmatpush1.bf16.msra.mxu0 %v6406_v63  ;;  %v524_v46 = vadd.f32 %v6646_v59, %v6603_v36  ;;  %v527_v55 = vmax.f32 %v520_v33, 0.0 }
 0x1ad   :  { %v6653_v13 = vmax.f32 %v376_v61, %v433_v62  ;;  %v435_v14 = vmax.f32 %v430_v7, 0.0  ;;  %1459 = vmatpush1.bf16.msra.mxu1 %v6406_v63  ;;  %1551 = vmatprep.subr.bf16.mxu0 %v6413_v0  ;;  %v528_v59 = vmax.f32 %v522_v40, 0.0  ;;  %v1702_v7 = vsel %vm1700_vm4, %v6733_v58, %v1699_v32 }
 0x1ae   :  { %v6657_v15 = vmax.f32 %v377_v8, %v434_v10  ;;  %1460 = vmatprep.subr.bf16.mxu1 %v6413_v0  ;;  %4474 = vmatprep.mubr.msk.bf16.mxu1 %vm321_vm0, %v6623_v41  ;;  %v526_v41 = vmax.f32 %v518_v31, 0.0  ;;  %v529_v8 = vmax.f32 %v524_v46, 0.0 }
 0x1af   :  { %v6661_v23 = vmax.f32 %v378_v12, %v435_v14  ;;  %4478 = vmatprep.mubr.msk.bf16.mxu0 %vm321_vm0, %v6651_v11  ;;  %v1695_v28 = vpop.permute.xlu1 %1694 }
 0x1b0   :  { %v5396_v26 = vpack.i.bf16 %v6657_v15, %v6649_v9  ;;  %1552 = vmatpush1.bf16.msra.mxu0 %v6422_v1 }
 0x1b1   :  { %1461 = vmatpush1.bf16.msra.mxu1 %v6422_v1  ;;  %v5401_v27 = vpack.i.bf16 %v6661_v23, %v6653_v13  ;;  %1553 = vmatprep.subr.bf16.mxu0 %v6429_v2 }
 0x1b2   :  { %5397 = vrot.lane.b32.xlu0 %v5396_v26, %s5922_s6  ;;  %1462 = vmatprep.subr.bf16.mxu1 %v6429_v2 }
 0x1b3   :  { %5402 = vrot.lane.b32.xlu1 %v5401_v27, %s5922_s6  ;;  %v6790_v31 = vpop.permute.xlu1 %1766 }
 0x1b4   :  { %1554 = vmatpush1.bf16.msra.mxu0 %v6436_v3 }
 0x1b5   :  { %1463 = vmatpush1.bf16.msra.mxu1 %v6436_v3  ;;  %1555 = vmatprep.subr.bf16.mxu0 %v6443_v4 }
 0x1b6   :  { %1464 = vmatprep.subr.bf16.mxu1 %v6443_v4 }
 0x1b8   :  { %1556 = vmatpush1.bf16.msra.mxu0 %v6450_v5 }
 0x1b9   :  { %1465 = vmatpush1.bf16.msra.mxu1 %v6450_v5  ;;  %1557 = vmatprep.subr.bf16.mxu0 %v6457_v6 }
 0x1ba   :  { %1466 = vmatprep.subr.bf16.mxu1 %v6457_v6 }
 0x1bc   :  { %1558 = vmatpush1.bf16.msra.mxu0 %v6515_v16 }
 0x1bd   :  { %1467 = vmatpush1.bf16.msra.mxu1 %v6515_v16  ;;  %1559 = vmatprep.subr.bf16.mxu0 %v6522_v17 }
 0x1be   :  { %1468 = vmatprep.subr.bf16.mxu1 %v6522_v17 }
 0x1c0   :  { %1560 = vmatpush1.bf16.msra.mxu0 %v6529_v18 }
 0x1c1   :  { %1469 = vmatpush1.bf16.msra.mxu1 %v6529_v18  ;;  %1561 = vmatprep.subr.bf16.mxu0 %v6536_v19 }
 0x1c2   :  { %1470 = vmatprep.subr.bf16.mxu1 %v6536_v19 }
 0x1c4   :  { %1562 = vmatpush1.bf16.msra.mxu0 %v6543_v24 }
 0x1c5   :  { %1471 = vmatpush1.bf16.msra.mxu1 %v6543_v24  ;;  %1563 = vmatprep.subr.bf16.mxu0 %v6550_v25 }
 0x1c6   :  { %1472 = vmatprep.subr.bf16.mxu1 %v6550_v25 }
 0x1c8   :  { %1564 = vmatpush1.bf16.msra.mxu0 %v6608_v37 }
 0x1c9   :  { %1473 = vmatpush1.bf16.msra.mxu1 %v6608_v37  ;;  %4477 = vmatprep.subr.msk.bf16.mxu0 %vm325_vm1, %v6617_v39 }
 0x1ca   :  { %4473 = vmatprep.subr.msk.bf16.mxu1 %vm325_vm1, %v6617_v39  ;;  %v6711_v38 = vpop.f32.mrb[8].mxu0 }
 0x1cb   :  { %v574_v34 = vpop.f32.mrb[4].mxu1  ;;  %v6717_v45 = vpop.f32.mrb[9].mxu0  ;;  %v666_v20 = vadd.f32 %v6711_v38, %v6599_v35  ;;  %v1601_v38 = vsel %vm1600_vm5, %v6701_v30, %v6693_v29 }
 0x1cc   :  { %v575_v43 = vadd.f32 %v574_v34, %v6599_v35  ;;  %v576_v44 = vpop.f32.mrb[5].mxu1  ;;  %1566 = vmatpush1.bf16.msra.mxu0 %v6172_v21  ;;  %v6725_v50 = vpop.f32.mrb[10].mxu0  ;;  %v668_v32 = vadd.f32 %v6717_v45, %v6603_v36 }
 0x1cd   :  { %v577_v47 = vadd.f32 %v576_v44, %v6603_v36  ;;  %v578_v48 = vpop.f32.mrb[6].mxu1  ;;  %1475 = vmatpush1.bf16.msra.mxu1 %v6172_v21  ;;  %1707 = vmatprep.subr.bf16.mxu0 %v6397_v60  ;;  %v6730_v54 = vpop.f32.mrb[11].mxu0  ;;  %v670_v40 = vadd.f32 %v6725_v50, %v6599_v35 }
 0x1ce   :  { %v583_v51 = vmax.f32 %v575_v43, 0.0  ;;  %v579_v52 = vadd.f32 %v578_v48, %v6599_v35  ;;  %v580_v53 = vpop.f32.mrb[7].mxu1  ;;  %1606 = vmatprep.subr.bf16.mxu1 %v6397_v60  ;;  %v672_v46 = vadd.f32 %v6730_v54, %v6603_v36  ;;  %v1701_v48 = vsel %vm1700_vm4, %v1695_v28, %v6733_v58  ;;  %v6820_v58 = vpop.permute.xlu1 %1857 }
 0x1cf   :  { %v584_v56 = vmax.f32 %v577_v47, 0.0  ;;  %v581_v57 = vadd.f32 %v580_v53, %v6603_v36  ;;  %1582 = vmatmul.mubr.bf16.vlgmr.msra.gmra.mrb[32].mxu0 %v1544_v49  ;;  %v1765_v28 = vpop.permute.xlu0 %1764 }
 0x1d0   :  { %v6735_v61 = vmax.f32 %v526_v41, %v583_v51  ;;  %v585_v62 = vmax.f32 %v579_v52, 0.0  ;;  %1491 = vmatmul.mubr.bf16.vlgmr.msra.gmra.mrb[28].mxu1 %v1453_v42  ;;  %1708 = vmatpush1.bf16.msra.mxu0 %v6406_v63  ;;  %v675_v52 = vmax.f32 %v668_v32, 0.0 }
 0x1d1   :  { %v6739_v10 = vmax.f32 %v527_v55, %v584_v56  ;;  %v586_v11 = vmax.f32 %v581_v57, 0.0  ;;  %1607 = vmatpush1.bf16.msra.mxu1 %v6406_v63  ;;  %1709 = vmatprep.subr.bf16.mxu0 %v6413_v0  ;;  %v676_v55 = vmax.f32 %v670_v40, 0.0 }
 0x1d2   :  { %v6743_v12 = vmax.f32 %v528_v59, %v585_v62  ;;  %1608 = vmatprep.subr.bf16.mxu1 %v6413_v0  ;;  %4480 = vmatprep.mubr.msk.bf16.mxu1 %vm321_vm0, %v6693_v29  ;;  %v674_v29 = vmax.f32 %v666_v20, 0.0  ;;  %v677_v59 = vmax.f32 %v672_v46, 0.0 }
 0x1d3   :  { %v6747_v14 = vmax.f32 %v529_v8, %v586_v11  ;;  %4485 = vmatprep.mubr.msk.bf16.mxu0 %vm321_vm0, %v1702_v7  ;;  %v1856_v32 = vpop.permute.xlu0 %1855 }
 0x1d4   :  { %v5406_v26 = vpack.i.bf16 %v6743_v12, %v6735_v61  ;;  %1710 = vmatpush1.bf16.msra.mxu0 %v6422_v1 }
 0x1d5   :  { %1609 = vmatpush1.bf16.msra.mxu1 %v6422_v1  ;;  %v5411_v27 = vpack.i.bf16 %v6747_v14, %v6739_v10  ;;  %1711 = vmatprep.subr.bf16.mxu0 %v6429_v2 }
 0x1d6   :  { %5407 = vrot.lane.b32.xlu0 %v5406_v26, %s5922_s6  ;;  %1610 = vmatprep.subr.bf16.mxu1 %v6429_v2 }
 0x1d7   :  { %5412 = vrot.lane.b32.xlu1 %v5411_v27, %s5922_s6 }
 0x1d8   :  { %1712 = vmatpush1.bf16.msra.mxu0 %v6436_v3 }
 0x1d9   :  { %1611 = vmatpush1.bf16.msra.mxu1 %v6436_v3  ;;  %1713 = vmatprep.subr.bf16.mxu0 %v6443_v4 }
 0x1da   :  { %1612 = vmatprep.subr.bf16.mxu1 %v6443_v4 }
 0x1dc   :  { %1714 = vmatpush1.bf16.msra.mxu0 %v6450_v5 }
 0x1dd   :  { %1613 = vmatpush1.bf16.msra.mxu1 %v6450_v5  ;;  %1715 = vmatprep.subr.bf16.mxu0 %v6457_v6 }
 0x1de   :  { %1614 = vmatprep.subr.bf16.mxu1 %v6457_v6 }
 0x1e0   :  { %1716 = vmatpush1.bf16.msra.mxu0 %v6515_v16 }
 0x1e1   :  { %1615 = vmatpush1.bf16.msra.mxu1 %v6515_v16  ;;  %1717 = vmatprep.subr.bf16.mxu0 %v6522_v17 }
 0x1e2   :  { %1616 = vmatprep.subr.bf16.mxu1 %v6522_v17 }
 0x1e4   :  { %1718 = vmatpush1.bf16.msra.mxu0 %v6529_v18 }
 0x1e5   :  { %1617 = vmatpush1.bf16.msra.mxu1 %v6529_v18  ;;  %1719 = vmatprep.subr.bf16.mxu0 %v6536_v19 }
 0x1e6   :  { %1618 = vmatprep.subr.bf16.mxu1 %v6536_v19 }
 0x1e8   :  { %1720 = vmatpush1.bf16.msra.mxu0 %v6543_v24 }
 0x1e9   :  { %1619 = vmatpush1.bf16.msra.mxu1 %v6543_v24  ;;  %1721 = vmatprep.subr.bf16.mxu0 %v6550_v25 }
 0x1ea   :  { %1620 = vmatprep.subr.bf16.mxu1 %v6550_v25 }
 0x1ec   :  { %1722 = vmatpush1.bf16.msra.mxu0 %v6608_v37 }
 0x1ed   :  { %1621 = vmatpush1.bf16.msra.mxu1 %v6608_v37  ;;  %4484 = vmatprep.subr.msk.bf16.mxu0 %vm325_vm1, %v6617_v39 }
 0x1ee   :  { %4479 = vmatprep.subr.msk.bf16.mxu1 %vm325_vm1, %v6617_v39  ;;  %v6794_v34 = vpop.f32.mrb[12].mxu0 }
 0x1ef   :  { %v732_v33 = vpop.f32.mrb[8].mxu1  ;;  %v6801_v44 = vpop.f32.mrb[13].mxu0  ;;  %v824_v20 = vadd.f32 %v6794_v34, %v6599_v35  ;;  %v1769_v34 = vsel %vm1768_vm6, %v1765_v28, %v6790_v31 }
 0x1f0   :  { %v733_v42 = vadd.f32 %v732_v33, %v6599_v35  ;;  %v734_v43 = vpop.f32.mrb[9].mxu1  ;;  %1724 = vmatpush1.bf16.msra.mxu0 %v6172_v21  ;;  %v6810_v49 = vpop.f32.mrb[14].mxu0  ;;  %v826_v40 = vadd.f32 %v6801_v44, %v6603_v36  ;;  %v1860_v44 = vsel %vm1859_vm7, %v1856_v32, %v6820_v58 }
 0x1f1   :  { %v735_v47 = vadd.f32 %v734_v43, %v6603_v36  ;;  %v736_v45 = vpop.f32.mrb[10].mxu1  ;;  %1623 = vmatpush1.bf16.msra.mxu1 %v6172_v21  ;;  %1865 = vmatprep.subr.bf16.mxu0 %v6397_v60  ;;  %v6815_v51 = vpop.f32.mrb[15].mxu0  ;;  %v828_v43 = vadd.f32 %v6810_v49, %v6599_v35 }
 0x1f2   :  { %v741_v30 = vmax.f32 %v733_v42, 0.0  ;;  %v737_v50 = vadd.f32 %v736_v45, %v6599_v35  ;;  %v738_v41 = vpop.f32.mrb[11].mxu1  ;;  %1774 = vmatprep.subr.bf16.mxu1 %v6397_v60  ;;  %v6874_v33 = vpop.permute.xlu1 %1914 }
 0x1f3   :  { %v742_v53 = vmax.f32 %v735_v47, 0.0  ;;  %v739_v54 = vadd.f32 %v738_v41, %v6603_v36  ;;  %1740 = vmatmul.mubr.bf16.vlgmr.msra.gmra.mrb[36].mxu0 %v1701_v48  ;;  %v830_v48 = vadd.f32 %v6815_v51, %v6603_v36 }
 0x1f4   :  { %v6818_v56 = vmax.f32 %v674_v29, %v741_v30  ;;  %v743_v57 = vmax.f32 %v737_v50, 0.0  ;;  %1639 = vmatmul.mubr.bf16.vlgmr.msra.gmra.mrb[32].mxu1 %v1601_v38  ;;  %1866 = vmatpush1.bf16.msra.mxu0 %v6406_v63 }
 0x1f5   :  { %v6822_v62 = vmax.f32 %v675_v52, %v742_v53  ;;  %v744_v7 = vmax.f32 %v739_v54, 0.0  ;;  %1775 = vmatpush1.bf16.msra.mxu1 %v6406_v63  ;;  %1867 = vmatprep.subr.bf16.mxu0 %v6413_v0  ;;  %v833_v53 = vmax.f32 %v826_v40, 0.0  ;;  %v1913_v40 = vpop.permute.xlu0 %1912 }
 0x1f6   :  { %v6826_v8 = vmax.f32 %v676_v55, %v743_v57  ;;  %1776 = vmatprep.subr.bf16.mxu1 %v6413_v0  ;;  %4489 = vmatprep.mubr.msk.bf16.mxu1 %vm321_vm0, %v6790_v31  ;;  %v832_v31 = vmax.f32 %v824_v20, 0.0  ;;  %v834_v57 = vmax.f32 %v828_v43, 0.0  ;;  %v6910_v20 = vpop.permute.xlu1 %2005 }
 0x1f7   :  { %v6830_v11 = vmax.f32 %v677_v59, %v744_v7  ;;  %4493 = vmatprep.mubr.msk.bf16.mxu0 %vm321_vm0, %v6820_v58  ;;  %v835_v7 = vmax.f32 %v830_v48, 0.0 }
 0x1f8   :  { %v5416_v26 = vpack.i.bf16 %v6826_v8, %v6818_v56  ;;  %1868 = vmatpush1.bf16.msra.mxu0 %v6422_v1 }
 0x1f9   :  { %1777 = vmatpush1.bf16.msra.mxu1 %v6422_v1  ;;  %v5421_v27 = vpack.i.bf16 %v6830_v11, %v6822_v62  ;;  %1869 = vmatprep.subr.bf16.mxu0 %v6429_v2 }
 0x1fa   :  { %5417 = vrot.lane.b32.xlu0 %v5416_v26, %s5922_s6  ;;  %1778 = vmatprep.subr.bf16.mxu1 %v6429_v2 }
 0x1fb   :  { %5422 = vrot.lane.b32.xlu1 %v5421_v27, %s5922_s6 }
 0x1fc   :  { %1870 = vmatpush1.bf16.msra.mxu0 %v6436_v3 }
 0x1fd   :  { %1779 = vmatpush1.bf16.msra.mxu1 %v6436_v3  ;;  %1871 = vmatprep.subr.bf16.mxu0 %v6443_v4 }
 0x1fe   :  { %1780 = vmatprep.subr.bf16.mxu1 %v6443_v4 }
 0x200   :  { %1872 = vmatpush1.bf16.msra.mxu0 %v6450_v5 }
 0x201   :  { %1781 = vmatpush1.bf16.msra.mxu1 %v6450_v5  ;;  %1873 = vmatprep.subr.bf16.mxu0 %v6457_v6 }
 0x202   :  { %1782 = vmatprep.subr.bf16.mxu1 %v6457_v6 }
 0x204   :  { %1874 = vmatpush1.bf16.msra.mxu0 %v6515_v16 }
 0x205   :  { %1783 = vmatpush1.bf16.msra.mxu1 %v6515_v16  ;;  %1875 = vmatprep.subr.bf16.mxu0 %v6522_v17 }
 0x206   :  { %1784 = vmatprep.subr.bf16.mxu1 %v6522_v17 }
 0x208   :  { %1876 = vmatpush1.bf16.msra.mxu0 %v6529_v18 }
 0x209   :  { %1785 = vmatpush1.bf16.msra.mxu1 %v6529_v18  ;;  %1877 = vmatprep.subr.bf16.mxu0 %v6536_v19 }
 0x20a   :  { %1786 = vmatprep.subr.bf16.mxu1 %v6536_v19 }
 0x20c   :  { %1878 = vmatpush1.bf16.msra.mxu0 %v6543_v24 }
 0x20d   :  { %1787 = vmatpush1.bf16.msra.mxu1 %v6543_v24  ;;  %1879 = vmatprep.subr.bf16.mxu0 %v6550_v25 }
 0x20e   :  { %1788 = vmatprep.subr.bf16.mxu1 %v6550_v25 }
 0x210   :  { %1880 = vmatpush1.bf16.msra.mxu0 %v6608_v37 }
 0x211   :  { %1789 = vmatpush1.bf16.msra.mxu1 %v6608_v37  ;;  %4492 = vmatprep.subr.msk.bf16.mxu0 %vm325_vm1, %v6617_v39 }
 0x212   :  { %4488 = vmatprep.subr.msk.bf16.mxu1 %vm325_vm1, %v6617_v39  ;;  %v6878_v42 = vpop.f32.mrb[16].mxu0 }
 0x213   :  { %v880_v38 = vpop.f32.mrb[12].mxu1  ;;  %v6884_v45 = vpop.f32.mrb[17].mxu0  ;;  %v972_v48 = vadd.f32 %v6878_v42, %v6599_v35 }
 0x214   :  { %v881_v46 = vadd.f32 %v880_v38, %v6599_v35  ;;  %v882_v47 = vpop.f32.mrb[13].mxu1  ;;  %1882 = vmatpush1.bf16.msra.mxu0 %v6172_v21  ;;  %v6892_v49 = vpop.f32.mrb[18].mxu0 }
 0x215   :  { %v883_v29 = vadd.f32 %v882_v47, %v6603_v36  ;;  %v884_v30 = vpop.f32.mrb[14].mxu1  ;;  %1791 = vmatpush1.bf16.msra.mxu1 %v6172_v21  ;;  %2013 = vmatprep.subr.bf16.mxu0 %v6397_v60  ;;  %v6897_v51 = vpop.f32.mrb[19].mxu0 }
 0x216   :  { %v889_v50 = vmax.f32 %v881_v46, 0.0  ;;  %v885_v41 = vadd.f32 %v884_v30, %v6599_v35  ;;  %v886_v52 = vpop.f32.mrb[15].mxu1  ;;  %1922 = vmatprep.subr.bf16.mxu1 %v6397_v60  ;;  %v2004_v38 = vpop.permute.xlu0 %2003  ;;  %v1917_v30 = vsel %vm1916_vm9, %v1913_v40, %v6874_v33 }
 0x217   :  { %v890_v54 = vmax.f32 %v883_v29, 0.0  ;;  %v887_v55 = vadd.f32 %v886_v52, %v6603_v36  ;;  %1898 = vmatmul.mubr.bf16.vlgmr.msra.gmra.mrb[40].mxu0 %v1860_v44  ;;  %v6984_v29 = vld [vmem:[#allocation6 + $0x40] sm:$0xff]   ;;  %v974_v44 = vadd.f32 %v6884_v45, %v6603_v36  ;;  %v978_v45 = vadd.f32 %v6897_v51, %v6603_v36 }
 0x218   :  { %v6900_v59 = vmax.f32 %v832_v31, %v889_v50  ;;  %v891_v58 = vmax.f32 %v885_v41, 0.0  ;;  %1807 = vmatmul.mubr.bf16.vlgmr.msra.gmra.mrb[36].mxu1 %v1769_v34  ;;  %2014 = vmatpush1.bf16.msra.mxu0 %v6406_v63  ;;  %v976_v41 = vadd.f32 %v6892_v49, %v6599_v35  ;;  %v7004_v49 = vld [vmem:[#allocation6] sm:$0xff]  }
 0x219   :  { %v6902_v26 = vmax.f32 %v833_v53, %v890_v54  ;;  %v892_v27 = vmax.f32 %v887_v55, 0.0  ;;  %1923 = vmatpush1.bf16.msra.mxu1 %v6406_v63  ;;  %2015 = vmatprep.subr.bf16.mxu0 %v6413_v0 }
 0x21a   :  { %8749 = vst [vmem:[#allocation15_spill] sm:$0xff] %v6900_v59  ;;  %v6906_v28 = vmax.f32 %v834_v57, %v891_v58  ;;  %1924 = vmatprep.subr.bf16.mxu1 %v6413_v0  ;;  %4495 = vmatprep.mubr.msk.bf16.mxu1 %vm321_vm0, %v6874_v33  ;;  %v2008_v33 = vsel %vm2007_vm10, %v2004_v38, %v6910_v20  ;;  %v7014_v38 = vld [vmem:[#allocation6 + $0x48] sm:$0xff]  }
 0x21b   :  { %v6912_v32 = vmax.f32 %v835_v7, %v892_v27  ;;  %4499 = vmatprep.mubr.msk.bf16.mxu0 %vm321_vm0, %v6910_v20  ;;  %v981_v20 = vmax.f32 %v974_v44, 0.0  ;;  %v5709_v44 = vld [vmem:[%s8594_s1] ss:$8 sps:$4 sm:$0xff]  }
 0x21c   :  { %8750 = vst [vmem:[#allocation16_spill] sm:$0xff] %v6906_v28  ;;  %v5426_v63 = vpack.i.bf16 %v6906_v28, %v6900_v59  ;;  %2016 = vmatpush1.bf16.msra.mxu0 %v6422_v1 }
 0x21d   :  { %1925 = vmatpush1.bf16.msra.mxu1 %v6422_v1  ;;  %v5431_v0 = vpack.i.bf16 %v6912_v32, %v6902_v26  ;;  %2017 = vmatprep.subr.bf16.mxu0 %v6429_v2  ;;  %v6936_v1 = vpop.permute.xlu0 %2070 }
 0x21e   :  { %5427 = vrot.lane.b32.xlu0 %v5426_v63, %s5922_s6  ;;  %1926 = vmatprep.subr.bf16.mxu1 %v6429_v2  ;;  %v6938_v2 = vpop.permute.xlu1 %2072 }
 0x21f   :  { %5432 = vrot.lane.b32.xlu1 %v5431_v0, %s5922_s6 }
 0x220   :  { %2018 = vmatpush1.bf16.msra.mxu0 %v6436_v3 }
 0x221   :  { %1927 = vmatpush1.bf16.msra.mxu1 %v6436_v3  ;;  %2019 = vmatprep.subr.bf16.mxu0 %v6443_v4 }
 0x222   :  { %1928 = vmatprep.subr.bf16.mxu1 %v6443_v4  ;;  %v6949_v4 = vand.u32 127, %v214_v22 }
 0x224   :  { %2020 = vmatpush1.bf16.msra.mxu0 %v6450_v5  ;;  %v6946_v3 = vpop.permute.xlu0 %5397  ;;  %vm450_vm8 = vcmp.lt.s32.totalorder %v6949_v4, 118 }
 0x225   :  { %1929 = vmatpush1.bf16.msra.mxu1 %v6450_v5  ;;  %2021 = vmatprep.subr.bf16.mxu0 %v6457_v6  ;;  %v6951_v5 = vpop.permute.xlu1 %5402  ;;  %v5399_v43 = vunpack.i.l.bf16 %v6946_v3 }
 0x226   :  { %1930 = vmatprep.subr.bf16.mxu1 %v6457_v6  ;;  %v5400_v6 = vunpack.i.h.bf16 %v6946_v3  ;;  %v5405_v34 = vunpack.i.h.bf16 %v6951_v5  ;;  %v5404_v46 = vunpack.i.l.bf16 %v6951_v5 }
 0x228   :  { %2022 = vmatpush1.bf16.msra.mxu0 %v6515_v16  ;;  %v453_v22 = vsel %vm450_vm8, %v5404_v46, %v5399_v43  ;;  %v454_v47 = vsel %vm450_vm8, %v5405_v34, %v5400_v6 }
 0x229   :  { %1931 = vmatpush1.bf16.msra.mxu1 %v6515_v16  ;;  %2023 = vmatprep.subr.bf16.mxu0 %v6522_v17  ;;  %v456_v53 = vmax.f32 %v6653_v13, %v453_v22  ;;  %v458_v54 = vmax.f32 %v6661_v23, %v454_v47  ;;  %v980_v13 = vmax.f32 %v972_v48, 0.0  ;;  %v982_v22 = vmax.f32 %v976_v41, 0.0 }
 0x22a   :  { %1932 = vmatprep.subr.bf16.mxu1 %v6522_v17 }
 0x22c   :  { %2024 = vmatpush1.bf16.msra.mxu0 %v6529_v18 }
 0x22d   :  { %1933 = vmatpush1.bf16.msra.mxu1 %v6529_v18  ;;  %2025 = vmatprep.subr.bf16.mxu0 %v6536_v19 }
 0x22e   :  { %1934 = vmatprep.subr.bf16.mxu1 %v6536_v19 }
 0x230   :  { %2026 = vmatpush1.bf16.msra.mxu0 %v6543_v24 }
 0x231   :  { %1935 = vmatpush1.bf16.msra.mxu1 %v6543_v24  ;;  %2027 = vmatprep.subr.bf16.mxu0 %v6550_v25 }
 0x232   :  { %1936 = vmatprep.subr.bf16.mxu1 %v6550_v25 }
 0x234   :  { %2028 = vmatpush1.bf16.msra.mxu0 %v6608_v37 }
 0x235   :  { %1937 = vmatpush1.bf16.msra.mxu1 %v6608_v37  ;;  %4498 = vmatprep.subr.msk.bf16.mxu0 %vm325_vm1, %v6617_v39 }
 0x236   :  { %4494 = vmatprep.subr.msk.bf16.mxu1 %vm325_vm1, %v6617_v39  ;;  %v6989_v50 = vpop.f32.mrb[20].mxu0 }
 0x237   :  { %v1048_v31 = vpop.f32.mrb[16].mxu1  ;;  %v6996_v55 = vpop.f32.mrb[21].mxu0 }
 0x238   :  { %v1049_v42 = vadd.f32 %v1048_v31, %v6599_v35  ;;  %v1050_v52 = vpop.f32.mrb[17].mxu1  ;;  %2030 = vmatpush1.bf16.msra.mxu0 %v6172_v21  ;;  %v7006_v7 = vpop.f32.mrb[22].mxu0  ;;  %v460_v31 = vpack.c.bf16 %v458_v54, %v456_v53  ;;  %v7034_v54 = vld [vmem:[#allocation6 + $0x50] sm:$0xff]  }
 0x239   :  { %v1051_v57 = vadd.f32 %v1050_v52, %v6603_v36  ;;  %v1052_v58 = vpop.f32.mrb[18].mxu1  ;;  %1939 = vmatpush1.bf16.msra.mxu1 %v6172_v21  ;;  %4603 = vmatprep.subr.bf16.mxu0 %v6984_v29  ;;  %v7011_v51 = vpop.f32.mrb[23].mxu0  ;;  %8756 = vst [vmem:[#allocation22_spill] sm:$0xff] %v7034_v54 }
 0x23a   :  { %v1057_v23 = vmax.f32 %v1049_v42, 0.0  ;;  %v1053_v27 = vadd.f32 %v1052_v58, %v6599_v35  ;;  %v1054_v40 = vpop.f32.mrb[19].mxu1  ;;  %2080 = vmatprep.subr.bf16.mxu1 %v6397_v60  ;;  %v983_v42 = vmax.f32 %v978_v45, 0.0  ;;  %v5711_v45 = vld [vmem:[%s8594_s1 + $0x10] ss:$8 sps:$4 sm:$0xff]  }
 0x23b   :  { %v1058_v63 = vmax.f32 %v1051_v57, 0.0  ;;  %v1055_v0 = vadd.f32 %v1054_v40, %v6603_v36  ;;  %2046 = vmatmul.mubr.bf16.vlgmr.msra.gmra.mrb[44].mxu0 %v2008_v33  ;;  %v7024_v57 = vld [vmem:[#allocation6 + $0x8] sm:$0xff]  }
 0x23c   :  { %v7016_v47 = vmax.f32 %v980_v13, %v1057_v23  ;;  %v1059_v48 = vmax.f32 %v1053_v27, 0.0  ;;  %1955 = vmatmul.mubr.bf16.vlgmr.msra.gmra.mrb[40].mxu1 %v1917_v30  ;;  %4604 = vmatpush3.bf16.msra.mxu0 %v7004_v49  ;;  %8753 = vst [vmem:[#allocation19_spill] sm:$0xff] %v7024_v57  ;;  %v5710_v30 = vld [vmem:[%s8594_s1 + $0x14] ss:$8 sps:$4 sm:$0xff]   ;;  %v5712_v23 = vld [vmem:[%s8594_s1 + $0x24] ss:$8 sps:$4 sm:$0xff]  }
 0x23d   :  { %v7018_v52 = vmax.f32 %v981_v20, %v1058_v63  ;;  %v1060_v60 = vmax.f32 %v1055_v0, 0.0  ;;  %2081 = vmatpush1.bf16.msra.mxu1 %v5709_v44  ;;  %2483 = vmatprep.mubr.bf16.mxu0 %v460_v31  ;;  %v7046_v13 = vld [vmem:[#allocation6 + $0x10] sm:$0xff]   ;;  %v7052_v27 = vld [vmem:[#allocation6 + $0x58] sm:$0xff]   ;;  %v7066_v0 = vld [vmem:[#allocation6 + $0x60] sm:$0xff]  }
 0x23e   :  { %8751 = vst [vmem:[#allocation17_spill] sm:$0xff] %v7016_v47  ;;  %v7026_v41 = vmax.f32 %v982_v22, %v1059_v48  ;;  %2082 = vmatprep.subr.bf16.mxu1 %v5710_v30  ;;  %4605 = vmatprep.subr.bf16.mxu0 %v7014_v38  ;;  %8757 = vst [vmem:[#allocation23_spill] sm:$0xff] %v7046_v13  ;;  %v5713_v40 = vld [vmem:[%s8594_s1 + $0x20] ss:$8 sps:$4 sm:$0xff]   ;;  %v5714_v63 = vld [vmem:[%s8594_s1 + $0x34] ss:$8 sps:$4 sm:$0xff]  }
 0x23f   :  { %8752 = vst [vmem:[#allocation18_spill] sm:$0xff] %v7018_v52  ;;  %v7031_v53 = vmax.f32 %v983_v42, %v1060_v60  ;;  %4503 = vmatprep.mubr.msk.bf16.mxu1 %vm321_vm0, %v6938_v2  ;;  %v7060_v20 = vld [vmem:[#allocation6 + $0x18] sm:$0xff]   ;;  %v7072_v48 = vld [vmem:[#allocation6 + $0x20] sm:$0xff]   ;;  %v7078_v42 = vld [vmem:[#allocation6 + $0x68] sm:$0xff]   ;;  %vm2074_vm0 = vcmask 1014784  }
 0x240   :  { %8754 = vst [vmem:[#allocation20_spill] sm:$0xff] %v7026_v41  ;;  %v5436_v33 = vpack.i.bf16 %v7026_v41, %v7016_v47  ;;  %4606 = vmatpush3.bf16.msra.mxu0 %v7024_v57  ;;  %v5715_v22 = vld [vmem:[%s8594_s1 + $0x30] ss:$8 sps:$4 sm:$0xff]   ;;  %8758 = vst [vmem:[#allocation24_spill] sm:$0xff] %v7072_v48  ;;  %v5716_v31 = vld [vmem:[%s8594_s1 + $0x44] ss:$8 sps:$4 sm:$0xff]  }
 0x241   :  { %8755 = vst [vmem:[#allocation21_spill] sm:$0xff] %v7031_v53  ;;  %2083 = vmatpush1.bf16.msra.mxu1 %v5711_v45  ;;  %v5441_v58 = vpack.i.bf16 %v7031_v53, %v7018_v52  ;;  %4607 = vmatprep.subr.bf16.mxu0 %v7034_v54  ;;  %8759 = vst [vmem:[#allocation25_spill] sm:$0xff] %v7078_v42  ;;  %v7082_v60 = vld [vmem:[#allocation6 + $0x28] sm:$0xff]   ;;  %v7086_v44 = vld [vmem:[#allocation6 + $0x70] sm:$0xff]  }
 0x242   :  { %5437 = vrot.lane.b32.xlu0 %v5436_v33, %s5922_s6  ;;  %2084 = vmatprep.subr.bf16.mxu1 %v5712_v23  ;;  %8760 = vst [vmem:[#allocation26_spill] sm:$0xff] %v7082_v60  ;;  %8761 = vst [vmem:[#allocation27_spill] sm:$0xff] %v7086_v44  ;;  %v7094_v45 = vld [vmem:[#allocation6 + $0x30] sm:$0xff]   ;;  %v7246_v53 = vld [vmem:[#allocation6 + $0xe8] sm:$0xff]  }
 0x243   :  { %5442 = vrot.lane.b32.xlu1 %v5441_v58, %s5922_s6  ;;  %8762 = vst [vmem:[#allocation28_spill] sm:$0xff] %v7094_v45  ;;  %v7249_v52 = vld [vmem:[#allocation6 + $0x170] sm:$0xff]  }
 0x244   :  { %4608 = vmatpush3.bf16.msra.mxu0 %v7046_v13  ;;  %8780 = vst [vmem:[#allocation46_spill] sm:$0xff] %v7249_v52 }
 0x245   :  { %2085 = vmatpush1.bf16.msra.mxu1 %v5713_v40  ;;  %4609 = vmatprep.subr.bf16.mxu0 %v7052_v27 }
 0x246   :  { %2086 = vmatprep.subr.bf16.mxu1 %v5714_v63  ;;  %v7149_v63 = vld [vmem:[#allocation6 + $0x148] sm:$0xff]  }
 0x247   :  { %8764 = vst [vmem:[#allocation30_spill] sm:$0xff] %v7149_v63 }
 0x248   :  { %4610 = vmatpush3.bf16.msra.mxu0 %v7060_v20  ;;  %v7088_v30 = vpop.permute.xlu0 %5407 }
 0x249   :  { %2087 = vmatpush1.bf16.msra.mxu1 %v5715_v22  ;;  %4611 = vmatprep.subr.bf16.mxu0 %v7066_v0  ;;  %v7090_v33 = vpop.permute.xlu1 %5412  ;;  %v8605_v58 = vunpack.i.l.bf16 %v7088_v30 }
 0x24a   :  { %2088 = vmatprep.subr.bf16.mxu1 %v5716_v31  ;;  %v8604_v23 = vunpack.i.h.bf16 %v7090_v33  ;;  %v8606_v40 = vunpack.i.l.bf16 %v7090_v33 }
 0x24c   :  { %4612 = vmatpush3.bf16.msra.mxu0 %v7072_v48 }
 0x24d   :  { %2089 = vmatpush1.bf16.msra.mxu1 %v6515_v16  ;;  %4613 = vmatprep.subr.bf16.mxu0 %v7078_v42  ;;  %v7098_v16 = vld [vmem:[#allocation6 + $0x78] sm:$0xff]  }
 0x24e   :  { %2090 = vmatprep.subr.bf16.mxu1 %v6522_v17  ;;  %8763 = vst [vmem:[#allocation29_spill] sm:$0xff] %v7098_v16  ;;  %v451_v17 = vsel %vm450_vm8, %v5399_v43, %v5404_v46  ;;  %v7118_v43 = vld [vmem:[#allocation6 + $0x38] sm:$0xff]   ;;  %v7147_v46 = vld [vmem:[#allocation6 + $0xc0] sm:$0xff]  }
 0x24f   :  { %v455_v5 = vmax.f32 %v6649_v9, %v451_v17 }
 0x250   :  { %4614 = vmatpush3.bf16.msra.mxu0 %v7082_v60 }
 0x251   :  { %2091 = vmatpush1.bf16.msra.mxu1 %v6529_v18  ;;  %4615 = vmatprep.subr.bf16.mxu0 %v7086_v44  ;;  %v452_v18 = vsel %vm450_vm8, %v5400_v6, %v5405_v34  ;;  %v7124_v6 = vld [vmem:[#allocation6 + $0x140] sm:$0xff]  }
 0x252   :  { %2092 = vmatprep.subr.bf16.mxu1 %v6536_v19  ;;  %v8603_v19 = vunpack.i.h.bf16 %v7088_v30  ;;  %v457_v3 = vmax.f32 %v6657_v15, %v452_v18  ;;  %v1140_v15 = vadd.f32 %v6989_v50, %v6599_v35 }
 0x254   :  { %4616 = vmatpush3.bf16.msra.mxu0 %v7094_v45  ;;  %v602_v9 = vsel %vm450_vm8, %v8604_v23, %v8603_v19  ;;  %v459_v34 = vpack.c.bf16 %v457_v3, %v455_v5 }
 0x255   :  { %2093 = vmatpush1.bf16.msra.mxu1 %v6543_v24  ;;  %4617 = vmatprep.subr.bf16.mxu0 %v7098_v16  ;;  %v601_v24 = vsel %vm450_vm8, %v8606_v40, %v8605_v58  ;;  %v606_v17 = vmax.f32 %v6747_v14, %v602_v9 }
 0x256   :  { %2094 = vmatprep.subr.bf16.mxu1 %v6550_v25  ;;  %v7140_v25 = vld [vmem:[#allocation6 + $0x100] sm:$0xff]   ;;  %v604_v31 = vmax.f32 %v6739_v10, %v601_v24  ;;  %v1146_v10 = vadd.f32 %v7011_v51, %v6603_v36 }
 0x258   :  { %4618 = vmatpush3.bf16.msra.mxu0 %v7118_v43  ;;  %v7184_v40 = vpack.c.bf16 %v606_v17, %v604_v31  ;;  %v1151_v47 = vmax.f32 %v1146_v10, 0.0  ;;  %v7200_v31 = vld [vmem:[#allocation6 + $0x110] sm:$0xff]   ;;  %v7224_v10 = vld [vmem:[#allocation6 + $0x160] sm:$0xff]  }
 0x259   :  { %2095 = vmatpush1.bf16.msra.mxu1 %v6608_v37  ;;  %4647 = vmatprep.subr.bf16.mxu0 %v7124_v6  ;;  %v1142_v37 = vadd.f32 %v6996_v55, %v6603_v36  ;;  %v2075_v55 = vsel %vm2074_vm0, %v6936_v1, %v6938_v2  ;;  %v7177_v1 = vld [vmem:[#allocation6 + $0x108] sm:$0xff]   ;;  %8772 = vst [vmem:[#allocation38_spill] sm:$0xff] %v7200_v31  ;;  %v7205_v17 = vld [vmem:[#allocation6 + $0xd0] sm:$0xff]   ;;  %8776 = vst [vmem:[#allocation42_spill] sm:$0xff] %v7224_v10 }
 0x25a   :  { %4502 = vmatprep.subr.msk.bf16.mxu1 %vm325_vm1, %v6617_v39  ;;  %v7155_v18 = vpop.f32.mrb[24].mxu0  ;;  %v1144_v39 = vadd.f32 %v7006_v7, %v6599_v35  ;;  %v7170_v7 = vld [vmem:[#allocation6 + $0x80] sm:$0xff]   ;;  %8765 = vst [vmem:[#allocation31_spill] sm:$0xff] %v7177_v1  ;;  %v7179_v2 = vld [vmem:[#allocation6 + $0xc8] sm:$0xff]   ;;  %vm5924_vm1 = vmmov 0  }
 0x25b   :  { %v1196_v22 = vpop.f32.mrb[20].mxu1  ;;  %2484 = vmatmul.mubr.bf16.vlgmr.msra.gmra.mrb[48].mxu0 %v459_v34  ;;  %v7160_v3 = vpop.f32.mrb[25].mxu0  ;;  %v1148_v34 = vmax.f32 %v1140_v15, 0.0  ;;  %8766 = vst [vmem:[#allocation32_spill] sm:$0xff] %v7179_v2  ;;  %v1149_v51 = vmax.f32 %v1142_v37, 0.0  ;;  %v7186_v15 = vld [vmem:[#allocation6 + $0x150] sm:$0xff]  }
 0x25c   :  { %v1197_v50 = vadd.f32 %v1196_v22, %v6599_v35  ;;  %v1198_v5 = vpop.f32.mrb[21].mxu1  ;;  %4648 = vmatpush3.bf16.msra.mxu0 %v7140_v25  ;;  %v7172_v9 = vpop.f32.mrb[26].mxu0  ;;  %8767 = vst [vmem:[#allocation33_spill] sm:$0xff] %v7186_v15  ;;  %v7194_v37 = vld [vmem:[#allocation6 + $0x88] sm:$0xff]  }
 0x25d   :  { %v1199_v14 = vadd.f32 %v1198_v5, %v6603_v36  ;;  %v1200_v24 = vpop.f32.mrb[22].mxu1  ;;  %2097 = vmatpush1.bf16.msra.mxu1 %v6172_v21  ;;  %4649 = vmatprep.subr.bf16.mxu0 %v7149_v63  ;;  %v7181_v21 = vpop.f32.mrb[27].mxu0  ;;  %8770 = vst [vmem:[#allocation36_spill] sm:$0xff] %v7194_v37 }
 0x25e   :  { %v1205_v22 = vmax.f32 %v1197_v50, 0.0  ;;  %v1201_v19 = vadd.f32 %v1200_v24, %v6599_v35  ;;  %v1202_v23 = vpop.f32.mrb[23].mxu1  ;;  %4625 = vmatprep.subr.bf16.mxu1 %v7147_v46  ;;  %v1150_v50 = vmax.f32 %v1144_v39, 0.0  ;;  %v7209_v39 = vld [vmem:[#allocation6 + $0x158] sm:$0xff]  }
 0x25f   :  { %v1206_v5 = vmax.f32 %v1199_v14, 0.0  ;;  %v1203_v58 = vadd.f32 %v1202_v23, %v6603_v36  ;;  %8774 = vst [vmem:[#allocation40_spill] sm:$0xff] %v7209_v39  ;;  %v7228_v14 = vld [vmem:[#allocation6 + $0x98] sm:$0xff]  }
 0x260   :  { %v7188_v24 = vmax.f32 %v1148_v34, %v1205_v22  ;;  %v1207_v41 = vmax.f32 %v1201_v19, 0.0  ;;  %2113 = vmatmul.mubr.bf16.vlgmr.msra.gmra.mrb[44].mxu1 %v2075_v55  ;;  %4650 = vmatpush3.bf16.msra.mxu0 %v7177_v1  ;;  %v7214_v55 = vld [vmem:[#allocation6 + $0x90] sm:$0xff]   ;;  %v7232_v34 = vld [vmem:[#allocation6 + $0x120] sm:$0xff]  }
 0x261   :  { %v7190_v28 = vmax.f32 %v1149_v51, %v1206_v5  ;;  %v1208_v59 = vmax.f32 %v1203_v58, 0.0  ;;  %4626 = vmatpush3.bf16.msra.mxu1 %v7170_v7  ;;  %2524 = vmatprep.mubr.bf16.mxu1 %v7184_v40  ;;  %8777 = vst [vmem:[#allocation43_spill] sm:$0xff] %v7232_v34  ;;  %v7234_v22 = vld [vmem:[#allocation6 + $0xe0] sm:$0xff]   ;;  %v7237_v51 = vld [vmem:[#allocation6 + $0x168] sm:$0xff]  }
 0x262   :  { %8768 = vst [vmem:[#allocation34_spill] sm:$0xff] %v7188_v24  ;;  %v7196_v23 = vmax.f32 %v1150_v50, %v1207_v41  ;;  %4627 = vmatprep.subr.bf16.mxu1 %v7179_v2  ;;  %4651 = vmatprep.subr.bf16.mxu0 %v7186_v15  ;;  %8778 = vst [vmem:[#allocation44_spill] sm:$0xff] %v7237_v51  ;;  %v7269_v15 = vld [vmem:[#allocation6 + $0x178] sm:$0xff]  }
 0x263   :  { %8769 = vst [vmem:[#allocation35_spill] sm:$0xff] %v7190_v28  ;;  %v7202_v19 = vmax.f32 %v1151_v47, %v1208_v59  ;;  %v7218_v59 = vld [vmem:[#allocation6 + $0x118] sm:$0xff]  }
 0x264   :  { %8771 = vst [vmem:[#allocation37_spill] sm:$0xff] %v7196_v23  ;;  %v5446_v58 = vpack.i.bf16 %v7196_v23, %v7188_v24  ;;  %4652 = vmatpush3.bf16.msra.mxu0 %v7200_v31  ;;  %8775 = vst [vmem:[#allocation41_spill] sm:$0xff] %v7218_v59  ;;  %v7220_v47 = vld [vmem:[#allocation6 + $0xd8] sm:$0xff]   ;;  %v7240_v23 = vld [vmem:[#allocation6 + $0xa0] sm:$0xff]  }
 0x265   :  { %8773 = vst [vmem:[#allocation39_spill] sm:$0xff] %v7202_v19  ;;  %4628 = vmatpush3.bf16.msra.mxu1 %v7194_v37  ;;  %v5451_v41 = vpack.i.bf16 %v7202_v19, %v7190_v28  ;;  %4653 = vmatprep.subr.bf16.mxu0 %v7209_v39  ;;  %v7244_v28 = vld [vmem:[#allocation6 + $0x128] sm:$0xff]   ;;  %v7264_v39 = vld [vmem:[#allocation6 + $0xf0] sm:$0xff]  }
 0x266   :  { %5447 = vrot.lane.b32.xlu0 %v5446_v58, %s5922_s6  ;;  %4629 = vmatprep.subr.bf16.mxu1 %v7205_v17  ;;  %8779 = vst [vmem:[#allocation45_spill] sm:$0xff] %v7244_v28 }
 0x267   :  { %5452 = vrot.lane.b32.xlu1 %v5451_v41, %s5922_s6 }
 0x268   :  { %4654 = vmatpush3.bf16.msra.mxu0 %v7218_v59 }
 0x269   :  { %4630 = vmatpush3.bf16.msra.mxu1 %v7214_v55  ;;  %4655 = vmatprep.subr.bf16.mxu0 %v7224_v10 }
 0x26a   :  { %4631 = vmatprep.subr.bf16.mxu1 %v7220_v47 }
 0x26c   :  { %v5418_v5 = vpop.permute.xlu0 %5417  ;;  %4656 = vmatpush3.bf16.msra.mxu0 %v7232_v34 }
 0x26d   :  { %v5420_v50 = vunpack.i.h.bf16 %v5418_v5  ;;  %v5419_v58 = vunpack.i.l.bf16 %v5418_v5  ;;  %4632 = vmatpush3.bf16.msra.mxu1 %v7228_v14  ;;  %v5423_v41 = vpop.permute.xlu1 %5422  ;;  %4657 = vmatprep.subr.bf16.mxu0 %v7237_v51  ;;  %v7262_v51 = vld [vmem:[#allocation6 + $0x130] sm:$0xff]  }
 0x26e   :  { %v5425_v24 = vunpack.i.h.bf16 %v5423_v41  ;;  %v5424_v19 = vunpack.i.l.bf16 %v5423_v41  ;;  %4633 = vmatprep.subr.bf16.mxu1 %v7234_v22  ;;  %v7256_v41 = vld [vmem:[#allocation6 + $0xa8] sm:$0xff]   ;;  %8781 = vst [vmem:[#allocation47_spill] sm:$0xff] %v7262_v51 }
 0x270   :  { %v759_v5 = vsel %vm450_vm8, %v5424_v19, %v5419_v58  ;;  %v760_v10 = vsel %vm450_vm8, %v5425_v24, %v5420_v50  ;;  %4658 = vmatpush3.bf16.msra.mxu0 %v7244_v28  ;;  %v757_v1 = vsel %vm450_vm8, %v5419_v58, %v5424_v19  ;;  %v8783_v19 = vunpack.i.l.bf16 %v7088_v30  ;;  %v7301_v28 = vld [vmem:[#allocation6 + $0xb8] sm:$0xff]  }
 0x271   :  { %4634 = vmatpush3.bf16.msra.mxu1 %v7240_v23  ;;  %v762_v34 = vmax.f32 %v6822_v62, %v759_v5  ;;  %v764_v59 = vmax.f32 %v6830_v11, %v760_v10  ;;  %4659 = vmatprep.subr.bf16.mxu0 %v7249_v52  ;;  %v758_v62 = vsel %vm450_vm8, %v5420_v50, %v5425_v24  ;;  %v7277_v11 = vld [vmem:[#allocation6 + $0xb0] sm:$0xff]   ;;  %v7283_v10 = vld [vmem:[#allocation6 + $0xf8] sm:$0xff]   ;;  %v8784_v50 = vunpack.i.h.bf16 %v7090_v33 }
 0x272   :  { %4635 = vmatprep.subr.bf16.mxu1 %v7246_v53  ;;  %v8785_v58 = vunpack.i.h.bf16 %v7088_v30  ;;  %v763_v52 = vmax.f32 %v6826_v8, %v758_v62 }
 0x273   :  { %v7267_v31 = vpack.c.bf16 %v764_v59, %v762_v34  ;;  %v7281_v59 = vld [vmem:[#allocation6 + $0x138] sm:$0xff]   ;;  %v8782_v34 = vunpack.i.l.bf16 %v7090_v33  ;;  %v1292_v33 = vadd.f32 %v7172_v9, %v6599_v35 }
 0x274   :  { %4660 = vmatpush3.bf16.msra.mxu0 %v7262_v51  ;;  %v600_v5 = vsel %vm450_vm8, %v8785_v58, %v8784_v50  ;;  %v761_v51 = vmax.f32 %v6818_v56, %v757_v1  ;;  %v1288_v56 = vadd.f32 %v7155_v18, %v6599_v35 }
 0x275   :  { %4636 = vmatpush3.bf16.msra.mxu1 %v7256_v41  ;;  %2565 = vmatprep.mubr.bf16.mxu0 %v7267_v31  ;;  %v599_v24 = vsel %vm450_vm8, %v8783_v19, %v8782_v34  ;;  %v605_v34 = vmax.f32 %v6743_v12, %v600_v5  ;;  %v1290_v12 = vadd.f32 %v7160_v3, %v6603_v36 }
 0x276   :  { %4637 = vmatprep.subr.bf16.mxu1 %v7264_v39  ;;  %4661 = vmatprep.subr.bf16.mxu0 %v7269_v15  ;;  %v603_v63 = vmax.f32 %v6735_v61, %v599_v24  ;;  %v7307_v30 = vpack.c.bf16 %v763_v52, %v761_v51  ;;  %v1294_v3 = vadd.f32 %v7181_v21, %v6603_v36  ;;  %v1296_v9 = vmax.f32 %v1288_v56, 0.0 }
 0x277   :  { %v1297_v21 = vmax.f32 %v1290_v12, 0.0 }
 0x278   :  { %4662 = vmatpush3.bf16.msra.mxu0 %v7281_v59  ;;  %v7316_v61 = vpack.c.bf16 %v605_v34, %v603_v63 }
 0x279   :  { %4638 = vmatpush3.bf16.msra.mxu1 %v7277_v11  ;;  %4691 = vmatprep.subr.bf16.mxu0 %v7147_v46 }
 0x27a   :  { %4639 = vmatprep.subr.bf16.mxu1 %v7283_v10 }
 0x27b   :  { %2566 = vmatmul.mubr.bf16.vlgmr.msra.gmra.mrb[52].mxu0 %v7307_v30 }
 0x27c   :  { %4692 = vmatpush3.bf16.msra.mxu0 %v7170_v7  ;;  %2655 = vmatprep.mubr.bf16.mxu0 %v7267_v31 }
 0x27d   :  { %4640 = vmatpush3.bf16.msra.mxu1 %v7301_v28  ;;  %4693 = vmatprep.subr.bf16.mxu0 %v7179_v2 }
 0x27e   :  { %4669 = vmatprep.subr.bf16.mxu1 %v6984_v29  ;;  %v7322_v52 = vpop.f32.mrb[28].mxu0 }
 0x27f   :  { %v1344_v8 = vpop.f32.mrb[24].mxu1  ;;  %v7328_v63 = vpop.f32.mrb[29].mxu0 }
 0x280   :  { %v1345_v18 = vadd.f32 %v1344_v8, %v6599_v35  ;;  %v1346_v1 = vpop.f32.mrb[25].mxu1  ;;  %2525 = vmatmul.mubr.bf16.vlgmr.msra.gmra.mrb[48].mxu1 %v7316_v61  ;;  %v7335_v19 = vpop.f32.mrb[30].mxu0  ;;  %4694 = vmatpush3.bf16.msra.mxu0 %v7194_v37 }
 0x281   :  { %v1347_v51 = vadd.f32 %v1346_v1, %v6603_v36  ;;  %v1348_v62 = vpop.f32.mrb[26].mxu1  ;;  %4670 = vmatpush3.bf16.msra.mxu1 %v7004_v49  ;;  %2614 = vmatprep.mubr.bf16.mxu1 %v7184_v40  ;;  %v7340_v5 = vpop.f32.mrb[31].mxu0  ;;  %v1298_v40 = vmax.f32 %v1292_v33, 0.0 }
 0x282   :  { %v1353_v24 = vmax.f32 %v1345_v18, 0.0  ;;  %v1349_v50 = vadd.f32 %v1348_v62, %v6599_v35  ;;  %v1350_v58 = vpop.f32.mrb[27].mxu1  ;;  %4671 = vmatprep.subr.bf16.mxu1 %v7014_v38  ;;  %4695 = vmatprep.subr.bf16.mxu0 %v7205_v17  ;;  %v1299_v18 = vmax.f32 %v1294_v3, 0.0 }
 0x283   :  { %v1354_v34 = vmax.f32 %v1347_v51, 0.0  ;;  %v1351_v8 = vadd.f32 %v1350_v58, %v6603_v36 }
 0x284   :  { %v7344_v1 = vmax.f32 %v1296_v9, %v1353_v24  ;;  %v1355_v56 = vmax.f32 %v1349_v50, 0.0  ;;  %4696 = vmatpush3.bf16.msra.mxu0 %v7214_v55 }
 0x285   :  { %v7346_v2 = vmax.f32 %v1297_v21, %v1354_v34  ;;  %v1356_v62 = vmax.f32 %v1351_v8, 0.0  ;;  %4672 = vmatpush3.bf16.msra.mxu1 %v7024_v57  ;;  %4697 = vmatprep.subr.bf16.mxu0 %v7220_v47 }
 0x286   :  { %8786 = vst [vmem:[#allocation48_spill] sm:$0xff] %v7344_v1  ;;  %v7349_v37 = vmax.f32 %v1298_v40, %v1355_v56  ;;  %4673 = vmatprep.subr.bf16.mxu1 %v7034_v54 }
 0x287   :  { %8787 = vst [vmem:[#allocation49_spill] sm:$0xff] %v7346_v2  ;;  %v7353_v12 = vmax.f32 %v1299_v18, %v1356_v62 }
 0x288   :  { %8788 = vst [vmem:[#allocation50_spill] sm:$0xff] %v7349_v37  ;;  %v5456_v33 = vpack.i.bf16 %v7349_v37, %v7344_v1  ;;  %4698 = vmatpush3.bf16.msra.mxu0 %v7228_v14 }
 0x289   :  { %8789 = vst [vmem:[#allocation51_spill] sm:$0xff] %v7353_v12  ;;  %4674 = vmatpush3.bf16.msra.mxu1 %v7046_v13  ;;  %v5461_v3 = vpack.i.bf16 %v7353_v12, %v7346_v2  ;;  %4699 = vmatprep.subr.bf16.mxu0 %v7234_v22 }
 0x28a   :  { %5457 = vrot.lane.b32.xlu0 %v5456_v33, %s5922_s6  ;;  %4675 = vmatprep.subr.bf16.mxu1 %v7052_v27 }
 0x28b   :  { %5462 = vrot.lane.b32.xlu1 %v5461_v3, %s5922_s6 }
 0x28c   :  { %4700 = vmatpush3.bf16.msra.mxu0 %v7240_v23 }
 0x28d   :  { %4676 = vmatpush3.bf16.msra.mxu1 %v7060_v20  ;;  %4701 = vmatprep.subr.bf16.mxu0 %v7246_v53 }
 0x28e   :  { %4677 = vmatprep.subr.bf16.mxu1 %v7066_v0 }
 0x290   :  { %v7370_v51 = vpop.permute.xlu0 %5427  ;;  %4702 = vmatpush3.bf16.msra.mxu0 %v7256_v41 }
 0x291   :  { %v7372_v9 = vpop.permute.xlu1 %5432  ;;  %4678 = vmatpush3.bf16.msra.mxu1 %v7072_v48  ;;  %4703 = vmatprep.subr.bf16.mxu0 %v7264_v39  ;;  %v8645_v24 = vunpack.i.h.bf16 %v7370_v51  ;;  %v8647_v50 = vunpack.i.l.bf16 %v7370_v51 }
 0x292   :  { %4679 = vmatprep.subr.bf16.mxu1 %v7078_v42  ;;  %v8646_v58 = vunpack.i.h.bf16 %v7372_v9  ;;  %v8648_v21 = vunpack.i.l.bf16 %v7372_v9 }
 0x294   :  { %4704 = vmatpush3.bf16.msra.mxu0 %v7277_v11  ;;  %v907_v34 = vsel %vm450_vm8, %v8648_v21, %v8647_v50  ;;  %v908_v8 = vsel %vm450_vm8, %v8646_v58, %v8645_v24 }
 0x295   :  { %4680 = vmatpush3.bf16.msra.mxu1 %v7082_v60  ;;  %4705 = vmatprep.subr.bf16.mxu0 %v7283_v10  ;;  %v910_v40 = vmax.f32 %v6902_v26, %v907_v34  ;;  %v912_v56 = vmax.f32 %v6912_v32, %v908_v8  ;;  %v1436_v26 = vadd.f32 %v7322_v52, %v6599_v35  ;;  %v8790_v32 = vld [vmem:[#allocation30_spill] sm:$0xff] }
 0x296   :  { %4681 = vmatprep.subr.bf16.mxu1 %v7086_v44  ;;  %v1442_v52 = vadd.f32 %v7340_v5, %v6603_v36 }
 0x297   :  { %v7410_v18 = vpack.c.bf16 %v912_v56, %v910_v40  ;;  %v1444_v58 = vmax.f32 %v1436_v26, 0.0 }
 0x298   :  { %4706 = vmatpush3.bf16.msra.mxu0 %v7301_v28 }
 0x299   :  { %4682 = vmatpush3.bf16.msra.mxu1 %v7094_v45  ;;  %4735 = vmatprep.subr.bf16.mxu0 %v6984_v29 }
 0x29a   :  { %4683 = vmatprep.subr.bf16.mxu1 %v7098_v16 }
 0x29b   :  { %2656 = vmatmul.mubr.bf16.vlgmr.msra.gmra.mrb[56].mxu0 %v7307_v30 }
 0x29c   :  { %4736 = vmatpush3.bf16.msra.mxu0 %v7004_v49  ;;  %2755 = vmatprep.mubr.bf16.mxu0 %v7267_v31  ;;  %v1438_v31 = vadd.f32 %v7328_v63, %v6603_v36  ;;  %v8791_v63 = vld [vmem:[#allocation31_spill] sm:$0xff] }
 0x29d   :  { %4684 = vmatpush3.bf16.msra.mxu1 %v7118_v43  ;;  %4737 = vmatprep.subr.bf16.mxu0 %v7014_v38 }
 0x29e   :  { %4713 = vmatprep.subr.bf16.mxu1 %v7124_v6  ;;  %v1445_v1 = vmax.f32 %v1438_v31, 0.0  ;;  %v8797_v31 = vld [vmem:[#allocation40_spill] sm:$0xff] }
 0x2a0   :  { %2615 = vmatmul.mubr.bf16.vlgmr.msra.gmra.mrb[52].mxu1 %v7316_v61  ;;  %4738 = vmatpush3.bf16.msra.mxu0 %v7024_v57  ;;  %v1440_v61 = vadd.f32 %v7335_v19, %v6599_v35 }
 0x2a1   :  { %4714 = vmatpush3.bf16.msra.mxu1 %v7140_v25  ;;  %2696 = vmatprep.mubr.bf16.mxu1 %v7410_v18 }
 0x2a2   :  { %4715 = vmatprep.subr.bf16.mxu1 %v8790_v32  ;;  %4739 = vmatprep.subr.bf16.mxu0 %v7034_v54  ;;  %v7422_v33 = vpop.f32.mrb[32].mxu0  ;;  %v1446_v12 = vmax.f32 %v1440_v61, 0.0  ;;  %v8802_v61 = vld [vmem:[#allocation44_spill] sm:$0xff] }
 0x2a3   :  { %v1492_v62 = vpop.f32.mrb[28].mxu1  ;;  %v7427_v8 = vpop.f32.mrb[33].mxu0 }
 0x2a4   :  { %v1493_v3 = vadd.f32 %v1492_v62, %v6599_v35  ;;  %v1494_v34 = vpop.f32.mrb[29].mxu1  ;;  %v7433_v24 = vpop.f32.mrb[34].mxu0  ;;  %4740 = vmatpush3.bf16.msra.mxu0 %v7046_v13  ;;  %v8792_v62 = vld [vmem:[#allocation33_spill] sm:$0xff]  ;;  %v8795_v13 = vld [vmem:[#allocation38_spill] sm:$0xff] }
 0x2a5   :  { %v1495_v40 = vadd.f32 %v1494_v34, %v6603_v36  ;;  %v1496_v56 = vpop.f32.mrb[30].mxu1  ;;  %4716 = vmatpush3.bf16.msra.mxu1 %v8791_v63  ;;  %v7438_v37 = vpop.f32.mrb[35].mxu0  ;;  %4741 = vmatprep.subr.bf16.mxu0 %v7052_v27 }
 0x2a6   :  { %v1501_v50 = vmax.f32 %v1493_v3, 0.0  ;;  %v1497_v21 = vadd.f32 %v1496_v56, %v6599_v35  ;;  %v1498_v19 = vpop.f32.mrb[31].mxu1  ;;  %4717 = vmatprep.subr.bf16.mxu1 %v8792_v62  ;;  %v1447_v3 = vmax.f32 %v1442_v52, 0.0 }
 0x2a7   :  { %v1502_v5 = vmax.f32 %v1495_v40, 0.0  ;;  %v1499_v34 = vadd.f32 %v1498_v19, %v6603_v36 }
 0x2a8   :  { %v7442_v2 = vmax.f32 %v1444_v58, %v1501_v50  ;;  %v1503_v26 = vmax.f32 %v1497_v21, 0.0  ;;  %4742 = vmatpush3.bf16.msra.mxu0 %v7060_v20  ;;  %v8799_v58 = vld [vmem:[#allocation41_spill] sm:$0xff]  ;;  %v8801_v21 = vld [vmem:[#allocation43_spill] sm:$0xff] }
 0x2a9   :  { %v7444_v54 = vmax.f32 %v1445_v1, %v1502_v5  ;;  %v1504_v56 = vmax.f32 %v1499_v34, 0.0  ;;  %4718 = vmatpush3.bf16.msra.mxu1 %v8795_v13  ;;  %4743 = vmatprep.subr.bf16.mxu0 %v7066_v0  ;;  %v8807_v5 = vunpack.i.h.bf16 %v7372_v9 }
 0x2aa   :  { %8793 = vst [vmem:[#allocation30_spill] sm:$0xff] %v7442_v2  ;;  %v7447_v57 = vmax.f32 %v1446_v12, %v1503_v26  ;;  %4719 = vmatprep.subr.bf16.mxu1 %v8797_v31  ;;  %v8800_v12 = vld [vmem:[#allocation42_spill] sm:$0xff]  ;;  %v8803_v26 = vld [vmem:[#allocation45_spill] sm:$0xff] }
 0x2ab   :  { %8794 = vst [vmem:[#allocation52_spill] sm:$0xff] %v7444_v54  ;;  %v7451_v40 = vmax.f32 %v1447_v3, %v1504_v56 }
 0x2ac   :  { %8796 = vst [vmem:[#allocation53_spill] sm:$0xff] %v7447_v57  ;;  %v5466_v50 = vpack.i.bf16 %v7447_v57, %v7442_v2  ;;  %4744 = vmatpush3.bf16.msra.mxu0 %v7072_v48  ;;  %v8806_v57 = vunpack.i.l.bf16 %v7370_v51  ;;  %v8808_v2 = vunpack.i.h.bf16 %v7370_v51  ;;  %v8813_v51 = vld [vmem:[#allocation47_spill] sm:$0xff] }
 0x2ad   :  { %8798 = vst [vmem:[#allocation54_spill] sm:$0xff] %v7451_v40  ;;  %4720 = vmatpush3.bf16.msra.mxu1 %v8799_v58  ;;  %v5471_v1 = vpack.i.bf16 %v7451_v40, %v7444_v54  ;;  %4745 = vmatprep.subr.bf16.mxu0 %v7078_v42  ;;  %v8817_v42 = vld [vmem:[#allocation16_spill] sm:$0xff] }
 0x2ae   :  { %5467 = vrot.lane.b32.xlu0 %v5466_v50, %s5922_s6  ;;  %4721 = vmatprep.subr.bf16.mxu1 %v8800_v12  ;;  %v8804_v50 = vld [vmem:[#allocation46_spill] sm:$0xff]  ;;  %v906_v3 = vsel %vm450_vm8, %v8808_v2, %v8807_v5  ;;  %v8815_v5 = vld [vmem:[#allocation21_spill] sm:$0xff] }
 0x2af   :  { %5472 = vrot.lane.b32.xlu1 %v5471_v1, %s5922_s6  ;;  %v8805_v1 = vunpack.i.l.bf16 %v7372_v9  ;;  %v911_v48 = vmax.f32 %v8817_v42, %v906_v3  ;;  %v8818_v42 = vld [vmem:[#allocation32_spill] sm:$0xff] }
 0x2b0   :  { %4746 = vmatpush3.bf16.msra.mxu0 %v7082_v60 }
 0x2b1   :  { %4722 = vmatpush3.bf16.msra.mxu1 %v8801_v21  ;;  %4747 = vmatprep.subr.bf16.mxu0 %v7086_v44  ;;  %v905_v19 = vsel %vm450_vm8, %v8806_v57, %v8805_v1  ;;  %v8814_v1 = vld [vmem:[#allocation18_spill] sm:$0xff]  ;;  %v8816_v44 = vld [vmem:[#allocation15_spill] sm:$0xff] }
 0x2b2   :  { %4723 = vmatprep.subr.bf16.mxu1 %v8802_v61  ;;  %v909_v60 = vmax.f32 %v8816_v44, %v905_v19  ;;  %v8819_v44 = vld [vmem:[#allocation36_spill] sm:$0xff] }
 0x2b4   :  { %v7468_v52 = vpop.permute.xlu0 %5437  ;;  %4748 = vmatpush3.bf16.msra.mxu0 %v7094_v45 }
 0x2b5   :  { %v7472_v34 = vpop.permute.xlu1 %5442  ;;  %4724 = vmatpush3.bf16.msra.mxu1 %v8803_v26  ;;  %4749 = vmatprep.subr.bf16.mxu0 %v7098_v16  ;;  %v8809_v56 = vunpack.i.l.bf16 %v7468_v52  ;;  %v8811_v45 = vunpack.i.h.bf16 %v7468_v52 }
 0x2b6   :  { %4725 = vmatprep.subr.bf16.mxu1 %v8804_v50  ;;  %v8810_v40 = vunpack.i.l.bf16 %v7472_v34  ;;  %v8812_v57 = vunpack.i.h.bf16 %v7472_v34 }
 0x2b8   :  { %v1075_v54 = vsel %vm450_vm8, %v8810_v40, %v8809_v56  ;;  %v1076_v9 = vsel %vm450_vm8, %v8812_v57, %v8811_v45  ;;  %4750 = vmatpush3.bf16.msra.mxu0 %v7118_v43 }
 0x2b9   :  { %4726 = vmatpush3.bf16.msra.mxu1 %v8813_v51  ;;  %v1078_v2 = vmax.f32 %v8814_v1, %v1075_v54  ;;  %v1080_v16 = vmax.f32 %v8815_v5, %v1076_v9  ;;  %4779 = vmatprep.subr.bf16.mxu0 %v7124_v6  ;;  %v7518_v54 = vpack.c.bf16 %v911_v48, %v909_v60 }
 0x2ba   :  { %4727 = vmatprep.subr.bf16.mxu1 %v7269_v15  ;;  %v1584_v48 = vadd.f32 %v7422_v33, %v6599_v35  ;;  %v1586_v60 = vadd.f32 %v7427_v8, %v6603_v36  ;;  %v1590_v33 = vadd.f32 %v7438_v37, %v6603_v36 }
 0x2bb   :  { %v7512_v40 = vpack.c.bf16 %v1080_v16, %v1078_v2  ;;  %2756 = vmatmul.mubr.bf16.vlgmr.msra.gmra.mrb[60].mxu0 %v7307_v30  ;;  %v1588_v30 = vadd.f32 %v7433_v24, %v6599_v35 }
 0x2bc   :  { %4780 = vmatpush3.bf16.msra.mxu0 %v7140_v25  ;;  %v1592_v1 = vmax.f32 %v1584_v48, 0.0 }
 0x2bd   :  { %4728 = vmatpush3.bf16.msra.mxu1 %v7281_v59  ;;  %2837 = vmatprep.mubr.bf16.mxu0 %v7512_v40 }
 0x2be   :  { %4757 = vmatprep.subr.bf16.mxu1 %v7147_v46  ;;  %4781 = vmatprep.subr.bf16.mxu0 %v8790_v32 }
 0x2c0   :  { %2697 = vmatmul.mubr.bf16.vlgmr.msra.gmra.mrb[56].mxu1 %v7518_v54  ;;  %4782 = vmatpush3.bf16.msra.mxu0 %v8791_v63 }
 0x2c1   :  { %4758 = vmatpush3.bf16.msra.mxu1 %v7170_v7  ;;  %2796 = vmatprep.mubr.bf16.mxu1 %v7410_v18 }
 0x2c2   :  { %4759 = vmatprep.subr.bf16.mxu1 %v8818_v42  ;;  %4783 = vmatprep.subr.bf16.mxu0 %v8792_v62 }
 0x2c4   :  { %4784 = vmatpush3.bf16.msra.mxu0 %v8795_v13  ;;  %v1594_v13 = vmax.f32 %v1588_v30, 0.0 }
 0x2c5   :  { %4760 = vmatpush3.bf16.msra.mxu1 %v8819_v44  ;;  %4785 = vmatprep.subr.bf16.mxu0 %v8797_v31  ;;  %v1593_v31 = vmax.f32 %v1586_v60, 0.0 }
 0x2c6   :  { %4761 = vmatprep.subr.bf16.mxu1 %v7205_v17  ;;  %v7536_v16 = vpop.f32.mrb[36].mxu0 }
 0x2c7   :  { %v1640_v45 = vpop.f32.mrb[32].mxu1  ;;  %v7541_v56 = vpop.f32.mrb[37].mxu0 }
 0x2c8   :  { %v1641_v19 = vadd.f32 %v1640_v45, %v6599_v35  ;;  %v1642_v3 = vpop.f32.mrb[33].mxu1  ;;  %v7547_v8 = vpop.f32.mrb[38].mxu0  ;;  %4786 = vmatpush3.bf16.msra.mxu0 %v8799_v58 }
 0x2c9   :  { %v1643_v57 = vadd.f32 %v1642_v3, %v6603_v36  ;;  %v1644_v9 = vpop.f32.mrb[34].mxu1  ;;  %4762 = vmatpush3.bf16.msra.mxu1 %v7214_v55  ;;  %v7552_v45 = vpop.f32.mrb[39].mxu0  ;;  %4787 = vmatprep.subr.bf16.mxu0 %v8800_v12 }
 0x2ca   :  { %v1649_v2 = vmax.f32 %v1641_v19, 0.0  ;;  %v1645_v5 = vadd.f32 %v1644_v9, %v6599_v35  ;;  %v1646_v24 = vpop.f32.mrb[35].mxu1  ;;  %4763 = vmatprep.subr.bf16.mxu1 %v7220_v47  ;;  %v1595_v19 = vmax.f32 %v1590_v33, 0.0  ;;  %v8825_v33 = vunpack.i.l.bf16 %v7468_v52 }
 0x2cb   :  { %v1650_v37 = vmax.f32 %v1643_v57, 0.0  ;;  %v1647_v3 = vadd.f32 %v1646_v24, %v6603_v36  ;;  %v8828_v24 = vld [vmem:[#allocation17_spill] sm:$0xff] }
 0x2cc   :  { %v7556_v62 = vmax.f32 %v1592_v1, %v1649_v2  ;;  %v1651_v48 = vmax.f32 %v1645_v5, 0.0  ;;  %4788 = vmatpush3.bf16.msra.mxu0 %v8801_v21  ;;  %v8826_v1 = vunpack.i.h.bf16 %v7472_v34  ;;  %v8827_v2 = vunpack.i.h.bf16 %v7468_v52 }
 0x2cd   :  { %v7558_v63 = vmax.f32 %v1593_v31, %v1650_v37  ;;  %v1652_v9 = vmax.f32 %v1647_v3, 0.0  ;;  %4764 = vmatpush3.bf16.msra.mxu1 %v7228_v14  ;;  %4789 = vmatprep.subr.bf16.mxu0 %v8802_v61  ;;  %v8829_v3 = vld [vmem:[#allocation20_spill] sm:$0xff] }
 0x2ce   :  { %8820 = vst [vmem:[#allocation42_spill] sm:$0xff] %v7556_v62  ;;  %v7561_v58 = vmax.f32 %v1594_v13, %v1651_v48  ;;  %4765 = vmatprep.subr.bf16.mxu1 %v7234_v22  ;;  %v8824_v13 = vunpack.i.l.bf16 %v7472_v34  ;;  %v1074_v5 = vsel %vm450_vm8, %v8827_v2, %v8826_v1  ;;  %v8831_v34 = vld [vmem:[#allocation22_spill] sm:$0xff] }
 0x2cf   :  { %8821 = vst [vmem:[#allocation43_spill] sm:$0xff] %v7558_v63  ;;  %v7565_v60 = vmax.f32 %v1595_v19, %v1652_v9  ;;  %v1079_v48 = vmax.f32 %v8829_v3, %v1074_v5  ;;  %v1746_v9 = vadd.f32 %v7547_v8, %v6599_v35 }
 0x2d0   :  { %8822 = vst [vmem:[#allocation44_spill] sm:$0xff] %v7561_v58  ;;  %v5476_v30 = vpack.i.bf16 %v7561_v58, %v7556_v62  ;;  %4790 = vmatpush3.bf16.msra.mxu0 %v8803_v26  ;;  %v1073_v57 = vsel %vm450_vm8, %v8825_v33, %v8824_v13  ;;  %v8835_v62 = vld [vmem:[#allocation24_spill] sm:$0xff] }
 0x2d1   :  { %8823 = vst [vmem:[#allocation45_spill] sm:$0xff] %v7565_v60  ;;  %4766 = vmatpush3.bf16.msra.mxu1 %v7240_v23  ;;  %v5481_v31 = vpack.i.bf16 %v7565_v60, %v7558_v63  ;;  %4791 = vmatprep.subr.bf16.mxu0 %v8804_v50  ;;  %v1077_v37 = vmax.f32 %v8828_v24, %v1073_v57 }
 0x2d2   :  { %5477 = vrot.lane.b32.xlu0 %v5476_v30, %s5922_s6  ;;  %4767 = vmatprep.subr.bf16.mxu1 %v7246_v53 }
 0x2d3   :  { %5482 = vrot.lane.b32.xlu1 %v5481_v31, %s5922_s6  ;;  %v7599_v52 = vpack.c.bf16 %v1079_v48, %v1077_v37 }
 0x2d4   :  { %4792 = vmatpush3.bf16.msra.mxu0 %v8813_v51 }
 0x2d5   :  { %4768 = vmatpush3.bf16.msra.mxu1 %v7256_v41  ;;  %4793 = vmatprep.subr.bf16.mxu0 %v7269_v15 }
 0x2d6   :  { %4769 = vmatprep.subr.bf16.mxu1 %v7264_v39 }
 0x2d8   :  { %4794 = vmatpush3.bf16.msra.mxu0 %v7281_v59  ;;  %v7646_v48 = vpop.permute.xlu0 %5447 }
 0x2d9   :  { %4770 = vmatpush3.bf16.msra.mxu1 %v7277_v11  ;;  %4823 = vmatprep.subr.bf16.mxu0 %v7147_v46  ;;  %v8830_v46 = vld [vmem:[#allocation19_spill] sm:$0xff] }
 0x2da   :  { %4771 = vmatprep.subr.bf16.mxu1 %v7283_v10 }
 0x2db   :  { %2838 = vmatmul.mubr.bf16.vlgmr.msra.gmra.mrb[64].mxu0 %v7599_v52 }
 0x2dc   :  { %4824 = vmatpush3.bf16.msra.mxu0 %v7170_v7  ;;  %2927 = vmatprep.mubr.bf16.mxu0 %v7512_v40 }
 0x2dd   :  { %4772 = vmatpush3.bf16.msra.mxu1 %v7301_v28  ;;  %4825 = vmatprep.subr.bf16.mxu0 %v8818_v42 }
 0x2de   :  { %4801 = vmatprep.subr.bf16.mxu1 %v6984_v29  ;;  %v8832_v29 = vld [vmem:[#allocation23_spill] sm:$0xff] }
 0x2e0   :  { %2797 = vmatmul.mubr.bf16.vlgmr.msra.gmra.mrb[60].mxu1 %v7518_v54  ;;  %4826 = vmatpush3.bf16.msra.mxu0 %v8819_v44 }
 0x2e1   :  { %4802 = vmatpush3.bf16.msra.mxu1 %v7004_v49  ;;  %2886 = vmatprep.mubr.bf16.mxu1 %v7410_v18  ;;  %v1742_v49 = vadd.f32 %v7536_v16, %v6599_v35  ;;  %v1748_v16 = vadd.f32 %v7552_v45, %v6603_v36 }
 0x2e2   :  { %4803 = vmatprep.subr.bf16.mxu1 %v7014_v38  ;;  %4827 = vmatprep.subr.bf16.mxu0 %v7205_v17  ;;  %v1744_v38 = vadd.f32 %v7541_v56, %v6603_v36 }
 0x2e3   :  { %v1750_v1 = vmax.f32 %v1742_v49, 0.0 }
 0x2e4   :  { %4828 = vmatpush3.bf16.msra.mxu0 %v7214_v55  ;;  %v1751_v37 = vmax.f32 %v1744_v38, 0.0 }
 0x2e5   :  { %4804 = vmatpush3.bf16.msra.mxu1 %v8830_v46  ;;  %4829 = vmatprep.subr.bf16.mxu0 %v7220_v47  ;;  %v1752_v46 = vmax.f32 %v1746_v9, 0.0 }
 0x2e6   :  { %4805 = vmatprep.subr.bf16.mxu1 %v8831_v34 }
 0x2e8   :  { %4830 = vmatpush3.bf16.msra.mxu0 %v7228_v14 }
 0x2e9   :  { %4806 = vmatpush3.bf16.msra.mxu1 %v8832_v29  ;;  %4831 = vmatprep.subr.bf16.mxu0 %v7234_v22 }
 0x2ea   :  { %4807 = vmatprep.subr.bf16.mxu1 %v7052_v27  ;;  %v7626_v19 = vpop.f32.mrb[40].mxu0 }
 0x2eb   :  { %v1808_v18 = vpop.f32.mrb[36].mxu1  ;;  %v7631_v13 = vpop.f32.mrb[41].mxu0 }
 0x2ec   :  { %v1809_v30 = vadd.f32 %v1808_v18, %v6599_v35  ;;  %v1810_v31 = vpop.f32.mrb[37].mxu1  ;;  %v7637_v56 = vpop.f32.mrb[42].mxu0  ;;  %4832 = vmatpush3.bf16.msra.mxu0 %v7240_v23 }
 0x2ed   :  { %v1811_v33 = vadd.f32 %v1810_v31, %v6603_v36  ;;  %v1812_v57 = vpop.f32.mrb[38].mxu1  ;;  %4808 = vmatpush3.bf16.msra.mxu1 %v7060_v20  ;;  %v7642_v24 = vpop.f32.mrb[43].mxu0  ;;  %4833 = vmatprep.subr.bf16.mxu0 %v7246_v53  ;;  %v1753_v31 = vmax.f32 %v1748_v16, 0.0 }
 0x2ee   :  { %v1817_v2 = vmax.f32 %v1809_v30, 0.0  ;;  %v1813_v5 = vadd.f32 %v1812_v57, %v6599_v35  ;;  %v1814_v8 = vpop.f32.mrb[39].mxu1  ;;  %4809 = vmatprep.subr.bf16.mxu1 %v7066_v0  ;;  %v7650_v30 = vpop.permute.xlu1 %5452 }
 0x2ef   :  { %v1818_v45 = vmax.f32 %v1811_v33, 0.0  ;;  %v1815_v3 = vadd.f32 %v1814_v8, %v6603_v36  ;;  %v8837_v33 = vld [vmem:[#allocation25_spill] sm:$0xff]  ;;  %v8678_v8 = vunpack.i.h.bf16 %v7646_v48  ;;  %v8679_v16 = vunpack.i.h.bf16 %v7650_v30 }
 0x2f0   :  { %v7648_v49 = vmax.f32 %v1750_v1, %v1817_v2  ;;  %v1819_v18 = vmax.f32 %v1813_v5, 0.0  ;;  %4834 = vmatpush3.bf16.msra.mxu0 %v7256_v41  ;;  %v8677_v1 = vunpack.i.l.bf16 %v7646_v48  ;;  %v8680_v2 = vunpack.i.l.bf16 %v7650_v30 }
 0x2f1   :  { %v7652_v57 = vmax.f32 %v1751_v37, %v1818_v45  ;;  %v1820_v58 = vmax.f32 %v1815_v3, 0.0  ;;  %4810 = vmatpush3.bf16.msra.mxu1 %v8835_v62  ;;  %4835 = vmatprep.subr.bf16.mxu0 %v7264_v39  ;;  %v8839_v37 = vld [vmem:[#allocation26_spill] sm:$0xff] }
 0x2f2   :  { %8833 = vst [vmem:[#allocation46_spill] sm:$0xff] %v7648_v49  ;;  %v7655_v38 = vmax.f32 %v1752_v46, %v1819_v18  ;;  %4811 = vmatprep.subr.bf16.mxu1 %v8837_v33  ;;  %v1223_v3 = vsel %vm450_vm8, %v8680_v2, %v8677_v1  ;;  %v1224_v46 = vsel %vm450_vm8, %v8679_v16, %v8678_v8  ;;  %v8841_v18 = vld [vmem:[#allocation28_spill] sm:$0xff]  ;;  %v7698_v8 = vld [vmem:[#allocation6] sm:$0xff]  }
 0x2f3   :  { %8834 = vst [vmem:[#allocation47_spill] sm:$0xff] %v7652_v57  ;;  %v7660_v9 = vmax.f32 %v1753_v31, %v1820_v58  ;;  %v8840_v58 = vld [vmem:[#allocation27_spill] sm:$0xff]  ;;  %v8842_v31 = vld [vmem:[#allocation29_spill] sm:$0xff] }
 0x2f4   :  { %8836 = vst [vmem:[#allocation18_spill] sm:$0xff] %v7655_v38  ;;  %v5486_v5 = vpack.i.bf16 %v7655_v38, %v7648_v49  ;;  %4836 = vmatpush3.bf16.msra.mxu0 %v7277_v11  ;;  %v7754_v38 = vld [vmem:[#allocation6 + $0x28] sm:$0xff]  }
 0x2f5   :  { %8838 = vst [vmem:[#allocation21_spill] sm:$0xff] %v7660_v9  ;;  %4812 = vmatpush3.bf16.msra.mxu1 %v8839_v37  ;;  %v5491_v45 = vpack.i.bf16 %v7660_v9, %v7652_v57  ;;  %4837 = vmatprep.subr.bf16.mxu0 %v7283_v10  ;;  %v8843_v37 = vld [vmem:[#allocation35_spill] sm:$0xff]  ;;  %8852 = vst [vmem:[#allocation32_spill] sm:$0xff] %v7754_v38  ;;  %v7761_v9 = vld [vmem:[#allocation6 + $0x70] sm:$0xff]  }
 0x2f6   :  { %5487 = vrot.lane.b32.xlu0 %v5486_v5, %s5922_s6  ;;  %4813 = vmatprep.subr.bf16.mxu1 %v8840_v58  ;;  %v7691_v5 = vld [vmem:[#allocation6 + $0x40] sm:$0xff]   ;;  %8853 = vst [vmem:[#allocation36_spill] sm:$0xff] %v7761_v9 }
 0x2f7   :  { %5492 = vrot.lane.b32.xlu1 %v5491_v45, %s5922_s6  ;;  %v1226_v45 = vmax.f32 %v8843_v37, %v1223_v3  ;;  %v8844_v58 = vld [vmem:[#allocation39_spill] sm:$0xff] }
 0x2f8   :  { %4838 = vmatpush3.bf16.msra.mxu0 %v7301_v28  ;;  %v1228_v1 = vmax.f32 %v8844_v58, %v1224_v46  ;;  %v1904_v46 = vadd.f32 %v7637_v56, %v6599_v35 }
 0x2f9   :  { %4814 = vmatpush3.bf16.msra.mxu1 %v8841_v18  ;;  %4867 = vmatprep.subr.bf16.mxu0 %v7691_v5  ;;  %v7703_v18 = vld [vmem:[#allocation6 + $0x48] sm:$0xff]  }
 0x2fa   :  { %4815 = vmatprep.subr.bf16.mxu1 %v8842_v31  ;;  %8845 = vst [vmem:[#allocation15_spill] sm:$0xff] %v7703_v18  ;;  %v7706_v31 = vpack.c.bf16 %v1228_v1, %v1226_v45 }
 0x2fb   :  { %2928 = vmatmul.mubr.bf16.vlgmr.msra.gmra.mrb[68].mxu0 %v7599_v52 }
 0x2fc   :  { %4868 = vmatpush3.bf16.msra.mxu0 %v7698_v8  ;;  %3027 = vmatprep.mubr.bf16.mxu0 %v7512_v40  ;;  %v8848_v40 = vld [vmem:[#allocation33_spill] sm:$0xff]  ;;  %v7724_v1 = vpop.permute.xlu0 %5457 }
 0x2fd   :  { %4816 = vmatpush3.bf16.msra.mxu1 %v7118_v43  ;;  %4869 = vmatprep.subr.bf16.mxu0 %v7703_v18  ;;  %v7711_v43 = vld [vmem:[#allocation6 + $0x8] sm:$0xff]   ;;  %v8855_v60 = vunpack.i.l.bf16 %v7724_v1 }
 0x2fe   :  { %4845 = vmatprep.subr.bf16.mxu1 %v7124_v6  ;;  %8846 = vst [vmem:[#allocation16_spill] sm:$0xff] %v7711_v43  ;;  %v8847_v6 = vld [vmem:[#allocation31_spill] sm:$0xff] }
 0x300   :  { %2887 = vmatmul.mubr.bf16.vlgmr.msra.gmra.mrb[64].mxu1 %v7518_v54  ;;  %4870 = vmatpush3.bf16.msra.mxu0 %v7711_v43  ;;  %v8849_v54 = vld [vmem:[#allocation38_spill] sm:$0xff] }
 0x301   :  { %4846 = vmatpush3.bf16.msra.mxu1 %v7140_v25  ;;  %2968 = vmatprep.mubr.bf16.mxu1 %v7706_v31  ;;  %v8850_v25 = vld [vmem:[#allocation40_spill] sm:$0xff] }
 0x302   :  { %4847 = vmatprep.subr.bf16.mxu1 %v8790_v32  ;;  %4871 = vmatprep.subr.bf16.mxu0 %v8831_v34  ;;  %v8851_v32 = vld [vmem:[#allocation41_spill] sm:$0xff]  ;;  %v7727_v34 = vpop.permute.xlu1 %5462 }
 0x303   :  { %v8856_v63 = vunpack.i.l.bf16 %v7727_v34 }
 0x304   :  { %4872 = vmatpush3.bf16.msra.mxu0 %v8832_v29  ;;  %v1900_v29 = vadd.f32 %v7626_v19, %v6599_v35  ;;  %v1906_v19 = vadd.f32 %v7642_v24, %v6603_v36 }
 0x305   :  { %4848 = vmatpush3.bf16.msra.mxu1 %v8847_v6  ;;  %4873 = vmatprep.subr.bf16.mxu0 %v7052_v27  ;;  %v1902_v27 = vadd.f32 %v7631_v13, %v6603_v36 }
 0x306   :  { %4849 = vmatprep.subr.bf16.mxu1 %v8848_v40  ;;  %v1908_v3 = vmax.f32 %v1900_v29, 0.0  ;;  %v1910_v29 = vmax.f32 %v1904_v46, 0.0 }
 0x308   :  { %4874 = vmatpush3.bf16.msra.mxu0 %v7060_v20 }
 0x309   :  { %4850 = vmatpush3.bf16.msra.mxu1 %v8849_v54  ;;  %4875 = vmatprep.subr.bf16.mxu0 %v7066_v0 }
 0x30a   :  { %4851 = vmatprep.subr.bf16.mxu1 %v8850_v25 }
 0x30c   :  { %4876 = vmatpush3.bf16.msra.mxu0 %v8835_v62 }
 0x30d   :  { %4852 = vmatpush3.bf16.msra.mxu1 %v8851_v32  ;;  %4877 = vmatprep.subr.bf16.mxu0 %v8837_v33  ;;  %v1909_v33 = vmax.f32 %v1902_v27, 0.0  ;;  %v8858_v27 = vunpack.i.h.bf16 %v7727_v34 }
 0x30e   :  { %4853 = vmatprep.subr.bf16.mxu1 %v8800_v12  ;;  %v7736_v0 = vpop.f32.mrb[44].mxu0 }
 0x30f   :  { %v1956_v20 = vpop.f32.mrb[40].mxu1  ;;  %v7744_v45 = vpop.f32.mrb[45].mxu0 }
 0x310   :  { %v1957_v62 = vadd.f32 %v1956_v20, %v6599_v35  ;;  %v1958_v37 = vpop.f32.mrb[41].mxu1  ;;  %v7751_v56 = vpop.f32.mrb[46].mxu0  ;;  %4878 = vmatpush3.bf16.msra.mxu0 %v7754_v38  ;;  %v1371_v38 = vsel %vm450_vm8, %v8856_v63, %v8855_v60  ;;  %v8862_v63 = vunpack.i.l.bf16 %v7650_v30  ;;  %v8863_v60 = vunpack.i.l.bf16 %v7646_v48 }
 0x311   :  { %v1959_v16 = vadd.f32 %v1958_v37, %v6603_v36  ;;  %v1960_v2 = vpop.f32.mrb[42].mxu1  ;;  %4854 = vmatpush3.bf16.msra.mxu1 %v8801_v21  ;;  %v7758_v58 = vpop.f32.mrb[47].mxu0  ;;  %4879 = vmatprep.subr.bf16.mxu0 %v7761_v9 }
 0x312   :  { %v1965_v24 = vmax.f32 %v1957_v62, 0.0  ;;  %v1961_v20 = vadd.f32 %v1960_v2, %v6599_v35  ;;  %v1962_v13 = vpop.f32.mrb[43].mxu1  ;;  %4855 = vmatprep.subr.bf16.mxu1 %v8802_v61  ;;  %v1911_v62 = vmax.f32 %v1906_v19, 0.0  ;;  %v7783_v19 = vld [vmem:[#allocation6 + $0x30] sm:$0xff]  }
 0x313   :  { %v1966_v37 = vmax.f32 %v1959_v16, 0.0  ;;  %v1963_v49 = vadd.f32 %v1962_v13, %v6603_v36  ;;  %v8857_v16 = vunpack.i.h.bf16 %v7724_v1  ;;  %8861 = vst [vmem:[#allocation22_spill] sm:$0xff] %v7783_v19 }
 0x314   :  { %v7764_v2 = vmax.f32 %v1908_v3, %v1965_v24  ;;  %v1967_v57 = vmax.f32 %v1961_v20, 0.0  ;;  %4880 = vmatpush3.bf16.msra.mxu0 %v7783_v19  ;;  %v1221_v24 = vsel %vm450_vm8, %v8863_v60, %v8862_v63  ;;  %v8868_v19 = vld [vmem:[#allocation51_spill] sm:$0xff] }
 0x315   :  { %v1372_v13 = vsel %vm450_vm8, %v8858_v27, %v8857_v16  ;;  %v7778_v9 = vmax.f32 %v1909_v33, %v1966_v37  ;;  %v1968_v46 = vmax.f32 %v1963_v49, 0.0  ;;  %4856 = vmatpush3.bf16.msra.mxu1 %v8803_v26  ;;  %v8864_v33 = vunpack.i.h.bf16 %v7650_v30  ;;  %v7801_v37 = vld [vmem:[#allocation6 + $0x78] sm:$0xff]  }
 0x316   :  { %8854 = vst [vmem:[#allocation17_spill] sm:$0xff] %v7764_v2  ;;  %v7781_v3 = vmax.f32 %v1910_v29, %v1967_v57  ;;  %4857 = vmatprep.subr.bf16.mxu1 %v8804_v50  ;;  %v8865_v49 = vunpack.i.h.bf16 %v7646_v48  ;;  %4881 = vmatprep.subr.bf16.mxu0 %v7801_v37  ;;  %v8867_v16 = vld [vmem:[#allocation49_spill] sm:$0xff]  ;;  %v1376_v63 = vmax.f32 %v8868_v19, %v1372_v13  ;;  %v8869_v30 = vld [vmem:[#allocation34_spill] sm:$0xff] }
 0x317   :  { %8859 = vst [vmem:[#allocation20_spill] sm:$0xff] %v7778_v9  ;;  %v7799_v20 = vmax.f32 %v1911_v62, %v1968_v46  ;;  %v1374_v27 = vmax.f32 %v8867_v16, %v1371_v38  ;;  %v1225_v60 = vmax.f32 %v8869_v30, %v1221_v24  ;;  %v8870_v62 = vld [vmem:[#allocation37_spill] sm:$0xff]  ;;  %v7819_v38 = vld [vmem:[#allocation6 + $0x140] sm:$0xff]  }
 0x318   :  { %8860 = vst [vmem:[#allocation19_spill] sm:$0xff] %v7781_v3  ;;  %v1222_v57 = vsel %vm450_vm8, %v8865_v49, %v8864_v33  ;;  %v5496_v29 = vpack.i.bf16 %v7781_v3, %v7764_v2  ;;  %v7813_v33 = vld [vmem:[#allocation6 + $0x38] sm:$0xff]   ;;  %v7826_v19 = vld [vmem:[#allocation6 + $0x100] sm:$0xff]   ;;  %v8079_v3 = vld [vmem:[#allocation6 + $0x168] sm:$0xff]  }
 0x319   :  { %8866 = vst [vmem:[#allocation23_spill] sm:$0xff] %v7799_v20  ;;  %4858 = vmatpush3.bf16.msra.mxu1 %v8813_v51  ;;  %v5501_v48 = vpack.i.bf16 %v7799_v20, %v7778_v9  ;;  %v1227_v46 = vmax.f32 %v8870_v62, %v1222_v57  ;;  %4882 = vmatpush3.bf16.msra.mxu0 %v7813_v33  ;;  %v7832_v49 = vld [vmem:[#allocation6 + $0xc0] sm:$0xff]   ;;  %v7835_v57 = vld [vmem:[#allocation6 + $0x148] sm:$0xff]  }
 0x31a   :  { %5497 = vrot.lane.b32.xlu0 %v5496_v29, %s5922_s6  ;;  %4859 = vmatprep.subr.bf16.mxu1 %v7269_v15  ;;  %v7822_v13 = vpack.c.bf16 %v1376_v63, %v1374_v27  ;;  %v8876_v16 = vld [vmem:[#allocation50_spill] sm:$0xff] }
 0x31b   :  { %5502 = vrot.lane.b32.xlu1 %v5501_v48, %s5922_s6  ;;  %4911 = vmatprep.subr.bf16.mxu0 %v7819_v38  ;;  %v7830_v24 = vpack.c.bf16 %v1227_v46, %v1225_v60 }
 0x31c   :  { %3028 = vmatmul.mubr.bf16.vlgmr.msra.gmra.mrb[72].mxu0 %v7599_v52  ;;  %v8874_v52 = vunpack.i.h.bf16 %v7724_v1 }
 0x31d   :  { %4860 = vmatpush3.bf16.msra.mxu1 %v7281_v59  ;;  %4912 = vmatpush3.bf16.msra.mxu0 %v7826_v19 }
 0x31e   :  { %3109 = vmatprep.mubr.bf16.mxu0 %v7822_v13  ;;  %4889 = vmatprep.subr.bf16.mxu1 %v7832_v49 }
 0x31f   :  { %4913 = vmatprep.subr.bf16.mxu0 %v7835_v57 }
 0x320   :  { %2969 = vmatmul.mubr.bf16.vlgmr.msra.gmra.mrb[68].mxu1 %v7830_v24 }
 0x321   :  { %4890 = vmatpush3.bf16.msra.mxu1 %v7170_v7  ;;  %3068 = vmatprep.mubr.bf16.mxu1 %v7706_v31 }
 0x322   :  { %4914 = vmatpush3.bf16.msra.mxu0 %v8847_v6  ;;  %4891 = vmatprep.subr.bf16.mxu1 %v8818_v42  ;;  %v2052_v6 = vadd.f32 %v7751_v56, %v6599_v35 }
 0x323   :  { %4915 = vmatprep.subr.bf16.mxu0 %v8848_v40 }
 0x325   :  { %4892 = vmatpush3.bf16.msra.mxu1 %v8819_v44 }
 0x326   :  { %4916 = vmatpush3.bf16.msra.mxu0 %v8849_v54  ;;  %4893 = vmatprep.subr.bf16.mxu1 %v7205_v17 }
 0x327   :  { %4917 = vmatprep.subr.bf16.mxu0 %v8850_v25  ;;  %v2054_v25 = vadd.f32 %v7758_v58, %v6603_v36 }
 0x329   :  { %4894 = vmatpush3.bf16.msra.mxu1 %v7214_v55  ;;  %v2048_v55 = vadd.f32 %v7736_v0, %v6599_v35  ;;  %v2059_v62 = vmax.f32 %v2054_v25, 0.0  ;;  %v7978_v25 = vld [vmem:[%s8597_s4] ss:$0 sm:$0xff] }
 0x32a   :  { %4918 = vmatpush3.bf16.msra.mxu0 %v8851_v32  ;;  %4895 = vmatprep.subr.bf16.mxu1 %v7220_v47 }
 0x32b   :  { %4919 = vmatprep.subr.bf16.mxu0 %v8800_v12 }
 0x32d   :  { %4896 = vmatpush3.bf16.msra.mxu1 %v7228_v14  ;;  %v8871_v14 = vunpack.i.l.bf16 %v7727_v34 }
 0x32e   :  { %4920 = vmatpush3.bf16.msra.mxu0 %v8801_v21  ;;  %4897 = vmatprep.subr.bf16.mxu1 %v7234_v22  ;;  %v4619_v7 = vpop.f32.mrb[48].mxu0  ;;  %v8872_v22 = vunpack.i.l.bf16 %v7724_v1  ;;  %v2050_v21 = vadd.f32 %v7744_v45, %v6603_v36  ;;  %v2056_v1 = vmax.f32 %v2048_v55, 0.0  ;;  %v7944_v55 = vld [vmem:[#allocation6 + $0x10] sm:$0xff]  }
 0x32f   :  { %4921 = vmatprep.subr.bf16.mxu0 %v8802_v61  ;;  %v4620_v17 = vpop.f32.mrb[49].mxu0  ;;  %8883 = vst [vmem:[#allocation35_spill] sm:$0xff] %v7944_v55 }
 0x330   :  { %v7856_v42 = vadd.f32 %v4620_v17, %v4619_v7  ;;  %v4622_v44 = vpop.f32.mrb[50].mxu0  ;;  %v1369_v12 = vsel %vm450_vm8, %v8872_v22, %v8871_v14  ;;  %v2057_v63 = vmax.f32 %v2050_v21, 0.0  ;;  %v7914_v7 = vld [vmem:[#allocation6 + $0x80] sm:$0xff]   ;;  %v7935_v17 = vld [vmem:[#allocation6 + $0x90] sm:$0xff]   ;;  %v7950_v14 = vld [vmem:[#allocation6 + $0x58] sm:$0xff]  }
 0x331   :  { %4898 = vmatpush3.bf16.msra.mxu1 %v7240_v23  ;;  %v4623_v47 = vpop.f32.mrb[51].mxu0  ;;  %8885 = vst [vmem:[#allocation31_spill] sm:$0xff] %v7950_v14  ;;  %v7953_v22 = vld [vmem:[#allocation6 + $0xe0] sm:$0xff]  }
 0x332   :  { %4922 = vmatpush3.bf16.msra.mxu0 %v8803_v26  ;;  %4899 = vmatprep.subr.bf16.mxu1 %v7246_v53  ;;  %v7871_v61 = vadd.f32 %v4623_v47, %v4622_v44  ;;  %v8873_v26 = vunpack.i.h.bf16 %v7727_v34  ;;  %v7938_v44 = vld [vmem:[#allocation6 + $0x50] sm:$0xff]   ;;  %v7947_v47 = vld [vmem:[#allocation6 + $0x98] sm:$0xff]   ;;  %8886 = vst [vmem:[#allocation33_spill] sm:$0xff] %v7953_v22  ;;  %v7959_v21 = vld [vmem:[#allocation6 + $0xa0] sm:$0xff]  }
 0x333   :  { %v2114_v23 = vpop.f32.mrb[44].mxu1  ;;  %4923 = vmatprep.subr.bf16.mxu0 %v8804_v50  ;;  %v8875_v50 = vld [vmem:[#allocation48_spill] sm:$0xff]  ;;  %8881 = vst [vmem:[#allocation28_spill] sm:$0xff] %v7938_v44  ;;  %8884 = vst [vmem:[#allocation39_spill] sm:$0xff] %v7947_v47 }
 0x334   :  { %v1370_v53 = vsel %vm450_vm8, %v8874_v52, %v8873_v26  ;;  %v2115_v40 = vadd.f32 %v2114_v23, %v6599_v35  ;;  %v2116_v54 = vpop.f32.mrb[45].mxu1  ;;  %v1373_v34 = vmax.f32 %v8875_v50, %v1369_v12  ;;  %v7956_v12 = vld [vmem:[#allocation6 + $0x18] sm:$0xff]   ;;  %8888 = vst [vmem:[#allocation40_spill] sm:$0xff] %v7959_v21  ;;  %v7962_v23 = vld [vmem:[#allocation6 + $0x60] sm:$0xff]   ;;  %v7965_v26 = vld [vmem:[#allocation6 + $0xe8] sm:$0xff]   ;;  %v7968_v52 = vpop.permute.xlu0 %5467 }
 0x335   :  { %v2117_v32 = vadd.f32 %v2116_v54, %v6603_v36  ;;  %v2118_v0 = vpop.f32.mrb[46].mxu1  ;;  %4900 = vmatpush3.bf16.msra.mxu1 %v7256_v41  ;;  %v1375_v27 = vmax.f32 %v8876_v16, %v1370_v53  ;;  %v2058_v41 = vmax.f32 %v2052_v6, 0.0  ;;  %8887 = vst [vmem:[#allocation38_spill] sm:$0xff] %v7956_v12  ;;  %8889 = vst [vmem:[#allocation41_spill] sm:$0xff] %v7962_v23  ;;  %v7970_v6 = vpop.permute.xlu1 %5472  ;;  %v7972_v54 = vld [vmem:[#allocation6 + $0x20] sm:$0xff]   ;;  %v7980_v50 = vld [vmem:[#allocation6 + $0xa8] sm:$0xff]   ;;  %v8693_v16 = vunpack.i.l.bf16 %v7968_v52 }
 0x336   :  { %v2123_v45 = vmax.f32 %v2115_v40, 0.0  ;;  %v2119_v29 = vadd.f32 %v2118_v0, %v6599_v35  ;;  %4924 = vmatpush3.bf16.msra.mxu0 %v8813_v51  ;;  %v2120_v56 = vpop.f32.mrb[47].mxu1  ;;  %4901 = vmatprep.subr.bf16.mxu1 %v7264_v39  ;;  %8890 = vst [vmem:[#allocation49_spill] sm:$0xff] %v7965_v26  ;;  %8891 = vst [vmem:[#allocation51_spill] sm:$0xff] %v7972_v54 }
 0x337   :  { %v2124_v58 = vmax.f32 %v2117_v32, 0.0  ;;  %v2121_v48 = vadd.f32 %v2120_v56, %v6603_v36  ;;  %4925 = vmatprep.subr.bf16.mxu0 %v7269_v15  ;;  %v7905_v36 = vpack.c.bf16 %v1375_v27, %v1373_v34  ;;  %8892 = vst [vmem:[#allocation34_spill] sm:$0xff] %v7980_v50  ;;  %v7983_v34 = vld [vmem:[#allocation6 + $0x68] sm:$0xff]   ;;  %v7987_v56 = vld [vmem:[#allocation6 + $0xf0] sm:$0xff]  }
 0x338   :  { %v7894_v30 = vmax.f32 %v2056_v1, %v2123_v45  ;;  %v2125_v60 = vmax.f32 %v2119_v29, 0.0  ;;  %8893 = vst [vmem:[#allocation37_spill] sm:$0xff] %v7983_v34  ;;  %v8697_v1 = vunpack.i.h.bf16 %v7968_v52  ;;  %8894 = vst [vmem:[#allocation48_spill] sm:$0xff] %v7987_v56 }
 0x339   :  { %v7896_v46 = vmax.f32 %v2057_v63, %v2124_v58  ;;  %v2126_v35 = vmax.f32 %v2121_v48, 0.0  ;;  %4902 = vmatpush3.bf16.msra.mxu1 %v7277_v11  ;;  %v8694_v63 = vunpack.i.l.bf16 %v7970_v6 }
 0x33a   :  { %8877 = vst [vmem:[#allocation24_spill] sm:$0xff] %v7894_v30  ;;  %v7899_v51 = vmax.f32 %v2058_v41, %v2125_v60  ;;  %4926 = vmatpush3.bf16.msra.mxu0 %v7281_v59  ;;  %4903 = vmatprep.subr.bf16.mxu1 %v7283_v10  ;;  %v7922_v59 = vld [vmem:[#allocation6 + $0xc8] sm:$0xff]   ;;  %v7931_v10 = vld [vmem:[#allocation6 + $0xd0] sm:$0xff]   ;;  %v2486_v41 = vadd.f32 %v7856_v42, %v7978_v25 }
 0x33b   :  { %8878 = vst [vmem:[#allocation25_spill] sm:$0xff] %v7896_v46  ;;  %v7903_v39 = vmax.f32 %v2059_v62, %v2126_v35  ;;  %4955 = vmatprep.subr.bf16.mxu0 %v7832_v49  ;;  %v8895_v35 = vld [vmem:[#allocation32_spill] sm:$0xff]  ;;  %v1519_v42 = vsel %vm450_vm8, %v8694_v63, %v8693_v16 }
 0x33c   :  { %8879 = vst [vmem:[#allocation26_spill] sm:$0xff] %v7899_v51  ;;  %v5506_v15 = vpack.i.bf16 %v7899_v51, %v7894_v30  ;;  %v8901_v16 = vld [vmem:[#allocation52_spill] sm:$0xff]  ;;  %v8902_v51 = vld [vmem:[#allocation54_spill] sm:$0xff] }
 0x33d   :  { %8880 = vst [vmem:[#allocation27_spill] sm:$0xff] %v7903_v39  ;;  %3110 = vmatmul.mubr.bf16.vlgmr.msra.gmra.mrb[76].mxu0 %v7905_v36  ;;  %4904 = vmatpush3.bf16.msra.mxu1 %v7301_v28  ;;  %v5511_v11 = vpack.i.bf16 %v7903_v39, %v7896_v46  ;;  %v7927_v28 = vld [vmem:[#allocation6 + $0x88] sm:$0xff]   ;;  %v1522_v63 = vmax.f32 %v8901_v16, %v1519_v42  ;;  %v8059_v16 = vld [vmem:[#allocation6 + $0x118] sm:$0xff]  }
 0x33e   :  { %4956 = vmatpush3.bf16.msra.mxu0 %v7914_v7  ;;  %3199 = vmatprep.mubr.bf16.mxu0 %v7822_v13 }
 0x33f   :  { %5507 = vrot.lane.b32.xlu0 %v5506_v15, %s5922_s6  ;;  %5512 = vrot.lane.b32.xlu1 %v5511_v11, %s5922_s6  ;;  %v7996_v15 = vld [vmem:[#allocation6 + $0xb0] sm:$0xff]  }
 0x340   :  { %3069 = vmatmul.mubr.bf16.vlgmr.msra.gmra.mrb[72].mxu1 %v7830_v24  ;;  %4933 = vmatprep.subr.bf16.mxu1 %v7691_v5  ;;  %8896 = vst [vmem:[#allocation50_spill] sm:$0xff] %v7996_v15 }
 0x341   :  { %4957 = vmatprep.subr.bf16.mxu0 %v7922_v59  ;;  %4934 = vmatpush3.bf16.msra.mxu1 %v7698_v8 }
 0x342   :  { %3158 = vmatprep.mubr.bf16.mxu1 %v7706_v31  ;;  %4958 = vmatpush3.bf16.msra.mxu0 %v7927_v28  ;;  %v7941_v31 = vld [vmem:[#allocation6 + $0xd8] sm:$0xff]  }
 0x343   :  { %4935 = vmatprep.subr.bf16.mxu1 %v7703_v18  ;;  %4959 = vmatprep.subr.bf16.mxu0 %v7931_v10  ;;  %8882 = vst [vmem:[#allocation29_spill] sm:$0xff] %v7941_v31 }
 0x345   :  { %4936 = vmatpush3.bf16.msra.mxu1 %v7711_v43 }
 0x346   :  { %4960 = vmatpush3.bf16.msra.mxu0 %v7935_v17  ;;  %4937 = vmatprep.subr.bf16.mxu1 %v7938_v44 }
 0x347   :  { %4961 = vmatprep.subr.bf16.mxu0 %v7941_v31 }
 0x349   :  { %4938 = vmatpush3.bf16.msra.mxu1 %v7944_v55 }
 0x34a   :  { %4962 = vmatpush3.bf16.msra.mxu0 %v7947_v47  ;;  %4939 = vmatprep.subr.bf16.mxu1 %v7950_v14 }
 0x34b   :  { %4963 = vmatprep.subr.bf16.mxu0 %v7953_v22 }
 0x34d   :  { %4940 = vmatpush3.bf16.msra.mxu1 %v7956_v12 }
 0x34e   :  { %4964 = vmatpush3.bf16.msra.mxu0 %v7959_v21  ;;  %4941 = vmatprep.subr.bf16.mxu1 %v7962_v23  ;;  %v4663_v53 = vpop.f32.mrb[52].mxu0 }
 0x34f   :  { %4965 = vmatprep.subr.bf16.mxu0 %v7965_v26  ;;  %v4664_v40 = vpop.f32.mrb[53].mxu0 }
 0x350   :  { %v4665_v32 = vadd.f32 %v4664_v40, %v4663_v53  ;;  %v4666_v0 = vpop.f32.mrb[54].mxu0  ;;  %v8897_v53 = vld [vmem:[#allocation36_spill] sm:$0xff]  ;;  %v2489_v40 = vadd.f32 %v7871_v61, %v7978_v25 }
 0x351   :  { %4942 = vmatpush3.bf16.msra.mxu1 %v7972_v54  ;;  %v4667_v45 = vpop.f32.mrb[55].mxu0 }
 0x352   :  { %4966 = vmatpush3.bf16.msra.mxu0 %v7980_v50  ;;  %4943 = vmatprep.subr.bf16.mxu1 %v7983_v34  ;;  %v4668_v58 = vadd.f32 %v4667_v45, %v4666_v0  ;;  %v8002_v45 = vld [vmem:[#allocation6 + $0xf8] sm:$0xff]  }
 0x353   :  { %v4641_v29 = vpop.f32.mrb[48].mxu1  ;;  %4967 = vmatprep.subr.bf16.mxu0 %v7987_v56  ;;  %8898 = vst [vmem:[#allocation55_spill] sm:$0xff] %v8002_v45 }
 0x354   :  { %v4642_v48 = vpop.f32.mrb[49].mxu1 }
 0x355   :  { %v4643_v60 = vadd.f32 %v4642_v48, %v4641_v29  ;;  %v4644_v62 = vpop.f32.mrb[50].mxu1  ;;  %4944 = vmatpush3.bf16.msra.mxu1 %v8895_v35  ;;  %v8899_v29 = vunpack.i.h.bf16 %v7970_v6 }
 0x356   :  { %4968 = vmatpush3.bf16.msra.mxu0 %v7996_v15  ;;  %v4645_v11 = vpop.f32.mrb[51].mxu1  ;;  %4945 = vmatprep.subr.bf16.mxu1 %v8897_v53 }
 0x357   :  { %v2527_v27 = vadd.f32 %v4643_v60, %v2486_v41  ;;  %v4646_v0 = vadd.f32 %v4645_v11, %v4644_v62  ;;  %4969 = vmatprep.subr.bf16.mxu0 %v8002_v45  ;;  %v1520_v61 = vsel %vm450_vm8, %v8899_v29, %v8697_v1  ;;  %v8900_v60 = vld [vmem:[#allocation22_spill] sm:$0xff] }
 0x358   :  { %v8020_v62 = vld [vmem:[#allocation6 + $0xb8] sm:$0xff]   ;;  %v1524_v30 = vmax.f32 %v8902_v51, %v1520_v61  ;;  %v8043_v51 = vld [vmem:[#allocation6 + $0x108] sm:$0xff]   ;;  %v8075_v1 = vld [vmem:[#allocation6 + $0x120] sm:$0xff]  }
 0x359   :  { %v8017_v48 = vadd.f32 %v4665_v32, %v2527_v27  ;;  %v2530_v41 = vadd.f32 %v4646_v0, %v2489_v40  ;;  %4946 = vmatpush3.bf16.msra.mxu1 %v8900_v60  ;;  %v8062_v27 = vpop.permute.xlu0 %5477 }
 0x35a   :  { %4970 = vmatpush3.bf16.msra.mxu0 %v8020_v62  ;;  %4947 = vmatprep.subr.bf16.mxu1 %v7801_v37  ;;  %v8035_v32 = vpack.c.bf16 %v1524_v30, %v1522_v63  ;;  %v8055_v30 = vld [vmem:[#allocation6 + $0x158] sm:$0xff]   ;;  %v8064_v63 = vpop.permute.xlu1 %5482  ;;  %v8903_v61 = vunpack.i.l.bf16 %v8062_v27 }
 0x35b   :  { %v8024_v11 = vadd.f32 %v4668_v58, %v2530_v41  ;;  %4999 = vmatprep.subr.bf16.mxu0 %v7691_v5  ;;  %v8067_v58 = vld [vmem:[#allocation6 + $0x160] sm:$0xff]   ;;  %v8904_v20 = vunpack.i.l.bf16 %v8064_v63  ;;  %v8906_v9 = vunpack.i.h.bf16 %v8064_v63 }
 0x35d   :  { %3200 = vmatmul.mubr.bf16.vlgmr.msra.gmra.mrb[80].mxu0 %v7905_v36  ;;  %4948 = vmatpush3.bf16.msra.mxu1 %v7813_v33 }
 0x35e   :  { %5000 = vmatpush3.bf16.msra.mxu0 %v7698_v8  ;;  %3299 = vmatprep.mubr.bf16.mxu0 %v7822_v13  ;;  %v8047_v13 = vld [vmem:[#allocation6 + $0x150] sm:$0xff]  }
 0x35f   :  { %4977 = vmatprep.subr.bf16.mxu1 %v7819_v38  ;;  %5001 = vmatprep.subr.bf16.mxu0 %v7703_v18  ;;  %v8119_v18 = vld [vmem:[#allocation6 + $0x130] sm:$0xff]  }
 0x360   :  { %3159 = vmatmul.mubr.bf16.vlgmr.msra.gmra.mrb[76].mxu1 %v7830_v24  ;;  %v8051_v24 = vld [vmem:[#allocation6 + $0x110] sm:$0xff]  }
 0x361   :  { %4978 = vmatpush3.bf16.msra.mxu1 %v7826_v19  ;;  %3240 = vmatprep.mubr.bf16.mxu1 %v8035_v32 }
 0x362   :  { %5002 = vmatpush3.bf16.msra.mxu0 %v7711_v43  ;;  %4979 = vmatprep.subr.bf16.mxu1 %v7835_v57 }
 0x363   :  { %5003 = vmatprep.subr.bf16.mxu0 %v7938_v44 }
 0x365   :  { %4980 = vmatpush3.bf16.msra.mxu1 %v8043_v51 }
 0x366   :  { %5004 = vmatpush3.bf16.msra.mxu0 %v7944_v55  ;;  %4981 = vmatprep.subr.bf16.mxu1 %v8047_v13  ;;  %v8912_v55 = vld [vmem:[#allocation45_spill] sm:$0xff] }
 0x367   :  { %5005 = vmatprep.subr.bf16.mxu0 %v7950_v14 }
 0x369   :  { %4982 = vmatpush3.bf16.msra.mxu1 %v8051_v24 }
 0x36a   :  { %5006 = vmatpush3.bf16.msra.mxu0 %v7956_v12  ;;  %4983 = vmatprep.subr.bf16.mxu1 %v8055_v30  ;;  %v8911_v12 = vld [vmem:[#allocation43_spill] sm:$0xff] }
 0x36b   :  { %5007 = vmatprep.subr.bf16.mxu0 %v7962_v23  ;;  %v8095_v23 = vld [vmem:[#allocation6 + $0x128] sm:$0xff]  }
 0x36d   :  { %4984 = vmatpush3.bf16.msra.mxu1 %v8059_v16 }
 0x36e   :  { %5008 = vmatpush3.bf16.msra.mxu0 %v7972_v54  ;;  %4985 = vmatprep.subr.bf16.mxu1 %v8067_v58  ;;  %v4707_v40 = vpop.f32.mrb[56].mxu0 }
 0x36f   :  { %5009 = vmatprep.subr.bf16.mxu0 %v7983_v34  ;;  %v4708_v41 = vpop.f32.mrb[57].mxu0 }
 0x370   :  { %v4709_v39 = vadd.f32 %v4708_v41, %v4707_v40  ;;  %v4710_v46 = vpop.f32.mrb[58].mxu0  ;;  %v1667_v40 = vsel %vm450_vm8, %v8904_v20, %v8903_v61  ;;  %v8905_v41 = vunpack.i.h.bf16 %v8062_v27  ;;  %v8907_v20 = vunpack.i.l.bf16 %v7970_v6 }
 0x371   :  { %4986 = vmatpush3.bf16.msra.mxu1 %v8075_v1  ;;  %v4711_v0 = vpop.f32.mrb[59].mxu0  ;;  %v8908_v61 = vunpack.i.l.bf16 %v7968_v52  ;;  %v1670_v14 = vmax.f32 %v8911_v12, %v1667_v40 }
 0x372   :  { %5010 = vmatpush3.bf16.msra.mxu0 %v8895_v35  ;;  %4987 = vmatprep.subr.bf16.mxu1 %v8079_v3  ;;  %v4712_v29 = vadd.f32 %v4711_v0, %v4710_v46  ;;  %v1668_v35 = vsel %vm450_vm8, %v8906_v9, %v8905_v41  ;;  %v8099_v0 = vld [vmem:[#allocation6 + $0x170] sm:$0xff]  }
 0x373   :  { %v4685_v2 = vpop.f32.mrb[52].mxu1  ;;  %5011 = vmatprep.subr.bf16.mxu0 %v8897_v53  ;;  %v1517_v9 = vsel %vm450_vm8, %v8908_v61, %v8907_v20  ;;  %v1672_v44 = vmax.f32 %v8912_v55, %v1668_v35  ;;  %v8914_v61 = vld [vmem:[#allocation53_spill] sm:$0xff] }
 0x374   :  { %v4686_v42 = vpop.f32.mrb[53].mxu1 }
 0x375   :  { %v4687_v34 = vadd.f32 %v4686_v42, %v4685_v2  ;;  %v4688_v54 = vpop.f32.mrb[54].mxu1  ;;  %4988 = vmatpush3.bf16.msra.mxu1 %v8095_v23  ;;  %v8909_v2 = vunpack.i.h.bf16 %v7970_v6  ;;  %v8910_v42 = vunpack.i.h.bf16 %v7968_v52  ;;  %v8913_v52 = vld [vmem:[#allocation30_spill] sm:$0xff]  ;;  %v8129_v12 = vpack.c.bf16 %v1672_v44, %v1670_v14 }
 0x376   :  { %5012 = vmatpush3.bf16.msra.mxu0 %v8900_v60  ;;  %v4689_v46 = vpop.f32.mrb[55].mxu1  ;;  %4989 = vmatprep.subr.bf16.mxu1 %v8099_v0  ;;  %v1521_v20 = vmax.f32 %v8913_v52, %v1517_v9  ;;  %v8918_v9 = vunpack.i.h.bf16 %v8062_v27 }
 0x377   :  { %v1518_v41 = vsel %vm450_vm8, %v8910_v42, %v8909_v2  ;;  %v2617_v60 = vadd.f32 %v4687_v34, %v7978_v25  ;;  %v4690_v53 = vadd.f32 %v4689_v46, %v4688_v54  ;;  %5013 = vmatprep.subr.bf16.mxu0 %v7801_v37  ;;  %v8125_v54 = vld [vmem:[#allocation6 + $0x178] sm:$0xff]   ;;  %v8917_v46 = vunpack.i.h.bf16 %v8064_v63 }
 0x378   :  { %v1523_v2 = vmax.f32 %v8914_v61, %v1518_v41  ;;  %v8132_v34 = vld [vmem:[#allocation6 + $0x138] sm:$0xff]  }
 0x379   :  { %v2620_v43 = vadd.f32 %v4690_v53, %v7978_v25  ;;  %4990 = vmatpush3.bf16.msra.mxu1 %v8119_v18  ;;  %v2658_v6 = vadd.f32 %v4709_v39, %v2617_v60  ;;  %v8915_v60 = vunpack.i.l.bf16 %v8064_v63  ;;  %v1666_v42 = vsel %vm450_vm8, %v8918_v9, %v8917_v46  ;;  %v8920_v63 = vld [vmem:[#allocation44_spill] sm:$0xff] }
 0x37a   :  { %5014 = vmatpush3.bf16.msra.mxu0 %v7813_v33  ;;  %4991 = vmatprep.subr.bf16.mxu1 %v8125_v54  ;;  %v8137_v39 = vpack.c.bf16 %v1523_v2, %v1521_v20  ;;  %v2575_v46 = vmax.f32 %v8024_v11, 0.0  ;;  %v8923_v11 = vld [vmem:[#allocation15_spill] sm:$0xff] }
 0x37b   :  { %5043 = vmatprep.subr.bf16.mxu0 %v7819_v38  ;;  %v2661_v55 = vadd.f32 %v4712_v29, %v2620_v43  ;;  %v8916_v29 = vunpack.i.l.bf16 %v8062_v27 }
 0x37d   :  { %3300 = vmatmul.mubr.bf16.vlgmr.msra.gmra.mrb[84].mxu0 %v7905_v36  ;;  %4992 = vmatpush3.bf16.msra.mxu1 %v8132_v34  ;;  %v1665_v40 = vsel %vm450_vm8, %v8916_v29, %v8915_v60  ;;  %v1671_v60 = vmax.f32 %v8920_v63, %v1666_v42  ;;  %v8226_v63 = vpop.permute.xlu1 %5492 }
 0x37e   :  { %5044 = vmatpush3.bf16.msra.mxu0 %v7826_v19  ;;  %3381 = vmatprep.mubr.bf16.mxu0 %v8129_v12 }
 0x37f   :  { %5021 = vmatprep.subr.bf16.mxu1 %v7832_v49  ;;  %5045 = vmatprep.subr.bf16.mxu0 %v7835_v57 }
 0x380   :  { %3241 = vmatmul.mubr.bf16.vlgmr.msra.gmra.mrb[80].mxu1 %v8137_v39 }
 0x381   :  { %5022 = vmatpush3.bf16.msra.mxu1 %v7914_v7  ;;  %3340 = vmatprep.mubr.bf16.mxu1 %v8035_v32 }
 0x382   :  { %5046 = vmatpush3.bf16.msra.mxu0 %v8043_v51  ;;  %5023 = vmatprep.subr.bf16.mxu1 %v7922_v59 }
 0x383   :  { %5047 = vmatprep.subr.bf16.mxu0 %v8047_v13 }
 0x385   :  { %5024 = vmatpush3.bf16.msra.mxu1 %v7927_v28 }
 0x386   :  { %5048 = vmatpush3.bf16.msra.mxu0 %v8051_v24  ;;  %5025 = vmatprep.subr.bf16.mxu1 %v7931_v10 }
 0x387   :  { %5049 = vmatprep.subr.bf16.mxu0 %v8055_v30 }
 0x389   :  { %5026 = vmatpush3.bf16.msra.mxu1 %v7935_v17 }
 0x38a   :  { %5050 = vmatpush3.bf16.msra.mxu0 %v8059_v16  ;;  %5027 = vmatprep.subr.bf16.mxu1 %v7941_v31 }
 0x38b   :  { %5051 = vmatprep.subr.bf16.mxu0 %v8067_v58 }
 0x38d   :  { %5028 = vmatpush3.bf16.msra.mxu1 %v7947_v47 }
 0x38e   :  { %5052 = vmatpush3.bf16.msra.mxu0 %v8075_v1  ;;  %5029 = vmatprep.subr.bf16.mxu1 %v7953_v22  ;;  %v4751_v43 = vpop.f32.mrb[60].mxu0 }
 0x38f   :  { %5053 = vmatprep.subr.bf16.mxu0 %v8079_v3  ;;  %v4752_v36 = vpop.f32.mrb[61].mxu0 }
 0x390   :  { %v8160_v44 = vadd.f32 %v4752_v36, %v4751_v43  ;;  %v4754_v14 = vpop.f32.mrb[62].mxu0  ;;  %v8919_v43 = vld [vmem:[#allocation42_spill] sm:$0xff] }
 0x391   :  { %5030 = vmatpush3.bf16.msra.mxu1 %v7959_v21  ;;  %v4755_v35 = vpop.f32.mrb[63].mxu0  ;;  %v1669_v36 = vmax.f32 %v8919_v43, %v1665_v40  ;;  %v8224_v43 = vpop.permute.xlu0 %5487 }
 0x392   :  { %5054 = vmatpush3.bf16.msra.mxu0 %v8095_v23  ;;  %5031 = vmatprep.subr.bf16.mxu1 %v7965_v26  ;;  %v8177_v41 = vadd.f32 %v4755_v35, %v4754_v14  ;;  %v2574_v14 = vmax.f32 %v8017_v48, 0.0 }
 0x393   :  { %v4729_v53 = vpop.f32.mrb[56].mxu1  ;;  %5055 = vmatprep.subr.bf16.mxu0 %v8099_v0  ;;  %v8192_v42 = vpack.c.bf16 %v1671_v60, %v1669_v36 }
 0x394   :  { %v4730_v52 = vpop.f32.mrb[57].mxu1 }
 0x395   :  { %v4731_v20 = vadd.f32 %v4730_v52, %v4729_v53  ;;  %v4732_v61 = vpop.f32.mrb[58].mxu1  ;;  %5032 = vmatpush3.bf16.msra.mxu1 %v7980_v50  ;;  %v8925_v52 = vld [vmem:[#allocation28_spill] sm:$0xff] }
 0x396   :  { %5056 = vmatpush3.bf16.msra.mxu0 %v8119_v18  ;;  %v4733_v2 = vpop.f32.mrb[59].mxu1  ;;  %5033 = vmatprep.subr.bf16.mxu1 %v7987_v56 }
 0x397   :  { %v2699_v27 = vadd.f32 %v4731_v20, %v2658_v6  ;;  %v4734_v29 = vadd.f32 %v4733_v2, %v4732_v61  ;;  %5057 = vmatprep.subr.bf16.mxu0 %v8125_v54  ;;  %v8926_v20 = vld [vmem:[#allocation35_spill] sm:$0xff]  ;;  %v8928_v61 = vld [vmem:[#allocation38_spill] sm:$0xff]  ;;  %v8929_v2 = vld [vmem:[#allocation41_spill] sm:$0xff] }
 0x399   :  { %v2705_v35 = vmax.f32 %v2699_v27, 0.0  ;;  %v2702_v53 = vadd.f32 %v4734_v29, %v2661_v55  ;;  %5034 = vmatpush3.bf16.msra.mxu1 %v7996_v15  ;;  %v8924_v55 = vld [vmem:[#allocation16_spill] sm:$0xff]  ;;  %v8930_v27 = vld [vmem:[#allocation51_spill] sm:$0xff] }
 0x39a   :  { %5058 = vmatpush3.bf16.msra.mxu0 %v8132_v34  ;;  %5035 = vmatprep.subr.bf16.mxu1 %v8002_v45 }
 0x39b   :  { %v8190_v9 = vmax.f32 %v2574_v14, %v2705_v35  ;;  %v2706_v40 = vmax.f32 %v2702_v53, 0.0  ;;  %5087 = vmatprep.subr.bf16.mxu0 %v7832_v49  ;;  %v8931_v35 = vld [vmem:[#allocation37_spill] sm:$0xff] }
 0x39d   :  { %8921 = vst [vmem:[#allocation52_spill] sm:$0xff] %v8190_v9  ;;  %v8195_v6 = vmax.f32 %v2575_v46, %v2706_v40  ;;  %3382 = vmatmul.mubr.bf16.vlgmr.msra.gmra.mrb[88].mxu0 %v8192_v42  ;;  %5036 = vmatpush3.bf16.msra.mxu1 %v8020_v62 }
 0x39e   :  { %5088 = vmatpush3.bf16.msra.mxu0 %v7914_v7  ;;  %3471 = vmatprep.mubr.bf16.mxu0 %v8129_v12 }
 0x39f   :  { %8922 = vst [vmem:[#allocation54_spill] sm:$0xff] %v8195_v6  ;;  %5065 = vmatprep.subr.bf16.mxu1 %v7691_v5  ;;  %5089 = vmatprep.subr.bf16.mxu0 %v7922_v59  ;;  %v5521_v48 = vpack.i.bf16 %v8195_v6, %v8190_v9  ;;  %v8741_v6 = vunpack.i.l.bf16 %v8226_v63 }
 0x3a0   :  { %3341 = vmatmul.mubr.bf16.vlgmr.msra.gmra.mrb[84].mxu1 %v8137_v39 }
 0x3a1   :  { %5066 = vmatpush3.bf16.msra.mxu1 %v7698_v8  ;;  %3430 = vmatprep.mubr.bf16.mxu1 %v8035_v32  ;;  %v8927_v32 = vld [vmem:[#allocation31_spill] sm:$0xff] }
 0x3a2   :  { %5090 = vmatpush3.bf16.msra.mxu0 %v7927_v28  ;;  %5522 = vrot.lane.b32.xlu1 %v5521_v48, %s5905_s2  ;;  %v2761_v48 = vadd.f32 %v8177_v41, %v7978_v25  ;;  %v8937_v41 = vld [vmem:[#allocation22_spill] sm:$0xff] }
 0x3a3   :  { %5067 = vmatprep.subr.bf16.mxu1 %v8923_v11  ;;  %5091 = vmatprep.subr.bf16.mxu0 %v7931_v10 }
 0x3a5   :  { %5068 = vmatpush3.bf16.msra.mxu1 %v8924_v55 }
 0x3a6   :  { %5092 = vmatpush3.bf16.msra.mxu0 %v7935_v17  ;;  %5069 = vmatprep.subr.bf16.mxu1 %v8925_v52 }
 0x3a7   :  { %5093 = vmatprep.subr.bf16.mxu0 %v7941_v31 }
 0x3a9   :  { %5070 = vmatpush3.bf16.msra.mxu1 %v8926_v20 }
 0x3aa   :  { %5094 = vmatpush3.bf16.msra.mxu0 %v7947_v47  ;;  %5071 = vmatprep.subr.bf16.mxu1 %v8927_v32  ;;  %v8933_v47 = vld [vmem:[#allocation36_spill] sm:$0xff] }
 0x3ab   :  { %5095 = vmatprep.subr.bf16.mxu0 %v7953_v22 }
 0x3ad   :  { %5072 = vmatpush3.bf16.msra.mxu1 %v8928_v61 }
 0x3ae   :  { %5096 = vmatpush3.bf16.msra.mxu0 %v7959_v21  ;;  %5073 = vmatprep.subr.bf16.mxu1 %v8929_v2  ;;  %v4795_v36 = vpop.f32.mrb[64].mxu0 }
 0x3af   :  { %5097 = vmatprep.subr.bf16.mxu0 %v7965_v26  ;;  %v4796_v60 = vpop.f32.mrb[65].mxu0 }
 0x3b0   :  { %v4797_v29 = vadd.f32 %v4796_v60, %v4795_v36  ;;  %v4798_v14 = vpop.f32.mrb[66].mxu0  ;;  %v8932_v60 = vld [vmem:[#allocation32_spill] sm:$0xff] }
 0x3b1   :  { %5074 = vmatpush3.bf16.msra.mxu1 %v8930_v27  ;;  %v4799_v46 = vpop.f32.mrb[67].mxu0 }
 0x3b2   :  { %5098 = vmatpush3.bf16.msra.mxu0 %v7980_v50  ;;  %5075 = vmatprep.subr.bf16.mxu1 %v8931_v35  ;;  %v4800_v26 = vadd.f32 %v4799_v46, %v4798_v14  ;;  %v2758_v50 = vadd.f32 %v8160_v44, %v7978_v25  ;;  %v8934_v14 = vunpack.i.l.bf16 %v8224_v43  ;;  %v8936_v44 = vunpack.i.h.bf16 %v8226_v63 }
 0x3b3   :  { %v4773_v40 = vpop.f32.mrb[60].mxu1  ;;  %5099 = vmatprep.subr.bf16.mxu0 %v7987_v56 }
 0x3b4   :  { %v4774_v21 = vpop.f32.mrb[61].mxu1  ;;  %v1835_v46 = vsel %vm450_vm8, %v8741_v6, %v8934_v14  ;;  %v8938_v14 = vld [vmem:[#allocation47_spill] sm:$0xff] }
 0x3b5   :  { %v4776_v36 = vpop.f32.mrb[62].mxu1  ;;  %5076 = vmatpush3.bf16.msra.mxu1 %v8932_v60  ;;  %v4775_v22 = vadd.f32 %v4774_v21, %v4773_v40  ;;  %v8935_v21 = vunpack.i.h.bf16 %v8224_v43  ;;  %v1838_v6 = vmax.f32 %v8938_v14, %v1835_v46  ;;  %v8942_v14 = vunpack.i.h.bf16 %v8226_v63 }
 0x3b6   :  { %5100 = vmatpush3.bf16.msra.mxu0 %v7996_v15  ;;  %v4777_v53 = vpop.f32.mrb[63].mxu1  ;;  %5077 = vmatprep.subr.bf16.mxu1 %v8933_v47 }
 0x3b7   :  { %v4778_v9 = vadd.f32 %v4777_v53, %v4776_v36  ;;  %5101 = vmatprep.subr.bf16.mxu0 %v8002_v45  ;;  %v1836_v40 = vsel %vm450_vm8, %v8936_v44, %v8935_v21  ;;  %v2799_v15 = vadd.f32 %v4775_v22, %v2758_v50  ;;  %v8939_v45 = vld [vmem:[#allocation21_spill] sm:$0xff]  ;;  %v8940_v21 = vunpack.i.l.bf16 %v8226_v63  ;;  %v8946_v63 = vld [vmem:[#allocation46_spill] sm:$0xff] }
 0x3b8   :  { %v1840_v31 = vmax.f32 %v8939_v45, %v1836_v40  ;;  %v8941_v44 = vunpack.i.l.bf16 %v8224_v43 }
 0x3b9   :  { %v2802_v56 = vadd.f32 %v4778_v9, %v2761_v48  ;;  %5078 = vmatpush3.bf16.msra.mxu1 %v8937_v41  ;;  %v8257_v53 = vadd.f32 %v4797_v29, %v2799_v15 }
 0x3ba   :  { %5102 = vmatpush3.bf16.msra.mxu0 %v8020_v62  ;;  %5079 = vmatprep.subr.bf16.mxu1 %v7801_v37  ;;  %v8272_v22 = vpack.c.bf16 %v1840_v31, %v1838_v6  ;;  %v1833_v40 = vsel %vm450_vm8, %v8941_v44, %v8940_v21 }
 0x3bb   :  { %v8261_v36 = vadd.f32 %v4800_v26, %v2802_v56  ;;  %5131 = vmatprep.subr.bf16.mxu0 %v7691_v5  ;;  %v8291_v5 = vpop.permute.xlu1 %5502  ;;  %v1837_v44 = vmax.f32 %v8946_v63, %v1833_v40  ;;  %v8957_v63 = vld [vmem:[#allocation48_spill] sm:$0xff] }
 0x3bc   :  { %v8747_v56 = vunpack.i.h.bf16 %v8291_v5  ;;  %v5504_v15 = vunpack.i.l.bf16 %v8291_v5  ;;  %v8954_v40 = vunpack.i.h.bf16 %v8291_v5  ;;  %v8959_v5 = vld [vmem:[#allocation19_spill] sm:$0xff] }
 0x3bd   :  { %3472 = vmatmul.mubr.bf16.vlgmr.msra.gmra.mrb[92].mxu0 %v8192_v42  ;;  %5080 = vmatpush3.bf16.msra.mxu1 %v7813_v33 }
 0x3be   :  { %5132 = vmatpush3.bf16.msra.mxu0 %v7698_v8  ;;  %3571 = vmatprep.mubr.bf16.mxu0 %v8129_v12  ;;  %v8289_v8 = vpop.permute.xlu0 %5497 }
 0x3bf   :  { %5109 = vmatprep.subr.bf16.mxu1 %v7819_v38  ;;  %5133 = vmatprep.subr.bf16.mxu0 %v8923_v11  ;;  %v8746_v26 = vunpack.i.h.bf16 %v8289_v8  ;;  %v8748_v50 = vunpack.i.l.bf16 %v8289_v8 }
 0x3c0   :  { %3431 = vmatmul.mubr.bf16.vlgmr.msra.gmra.mrb[88].mxu1 %v8137_v39 }
 0x3c1   :  { %5110 = vmatpush3.bf16.msra.mxu1 %v7826_v19  ;;  %3512 = vmatprep.mubr.bf16.mxu1 %v8272_v22  ;;  %v1983_v29 = vsel %vm450_vm8, %v5504_v15, %v8748_v50  ;;  %v1984_v48 = vsel %vm450_vm8, %v8747_v56, %v8746_v26 }
 0x3c2   :  { %5134 = vmatpush3.bf16.msra.mxu0 %v8924_v55  ;;  %5111 = vmatprep.subr.bf16.mxu1 %v7835_v57 }
 0x3c3   :  { %5135 = vmatprep.subr.bf16.mxu0 %v8925_v52 }
 0x3c5   :  { %5112 = vmatpush3.bf16.msra.mxu1 %v8043_v51 }
 0x3c6   :  { %5136 = vmatpush3.bf16.msra.mxu0 %v8926_v20  ;;  %5113 = vmatprep.subr.bf16.mxu1 %v8047_v13 }
 0x3c7   :  { %5137 = vmatprep.subr.bf16.mxu0 %v8927_v32 }
 0x3c9   :  { %5114 = vmatpush3.bf16.msra.mxu1 %v8051_v24 }
 0x3ca   :  { %5138 = vmatpush3.bf16.msra.mxu0 %v8928_v61  ;;  %5115 = vmatprep.subr.bf16.mxu1 %v8055_v30 }
 0x3cb   :  { %5139 = vmatprep.subr.bf16.mxu0 %v8929_v2 }
 0x3cd   :  { %5116 = vmatpush3.bf16.msra.mxu1 %v8059_v16 }
 0x3ce   :  { %5140 = vmatpush3.bf16.msra.mxu0 %v8930_v27  ;;  %5117 = vmatprep.subr.bf16.mxu1 %v8067_v58  ;;  %v4839_v31 = vpop.f32.mrb[68].mxu0 }
 0x3cf   :  { %5141 = vmatprep.subr.bf16.mxu0 %v8931_v35  ;;  %v4840_v45 = vpop.f32.mrb[69].mxu0 }
 0x3d0   :  { %v4841_v12 = vadd.f32 %v4840_v45, %v4839_v31  ;;  %v4842_v39 = vpop.f32.mrb[70].mxu0  ;;  %v8943_v31 = vunpack.i.h.bf16 %v8224_v43  ;;  %v8947_v43 = vld [vmem:[#allocation18_spill] sm:$0xff] }
 0x3d1   :  { %5118 = vmatpush3.bf16.msra.mxu1 %v8075_v1  ;;  %v4843_v9 = vpop.f32.mrb[71].mxu0 }
 0x3d2   :  { %5142 = vmatpush3.bf16.msra.mxu0 %v8932_v60  ;;  %5119 = vmatprep.subr.bf16.mxu1 %v8079_v3  ;;  %v4844_v11 = vadd.f32 %v4843_v9, %v4842_v39  ;;  %v1834_v45 = vsel %vm450_vm8, %v8943_v31, %v8942_v14  ;;  %v8944_v9 = vld [vmem:[#allocation20_spill] sm:$0xff]  ;;  %v8955_v14 = vunpack.i.h.bf16 %v8289_v8 }
 0x3d3   :  { %v4817_v6 = vpop.f32.mrb[64].mxu1  ;;  %5143 = vmatprep.subr.bf16.mxu0 %v8933_v47  ;;  %v1839_v50 = vmax.f32 %v8947_v43, %v1834_v45 }
 0x3d4   :  { %v4818_v55 = vpop.f32.mrb[65].mxu1  ;;  %v1982_v31 = vsel %vm450_vm8, %v8955_v14, %v8954_v40  ;;  %v2847_v40 = vmax.f32 %v8261_v36, 0.0 }
 0x3d5   :  { %v4819_v60 = vadd.f32 %v4818_v55, %v4817_v6  ;;  %v4820_v46 = vpop.f32.mrb[66].mxu1  ;;  %5120 = vmatpush3.bf16.msra.mxu1 %v8095_v23  ;;  %v1986_v6 = vmax.f32 %v8944_v9, %v1983_v29  ;;  %v8945_v55 = vld [vmem:[#allocation23_spill] sm:$0xff]  ;;  %v1987_v43 = vmax.f32 %v8959_v5, %v1982_v31  ;;  %v5771_v5 = vld [vmem:[#allocation6 + $0x30] sm:$0xff]  }
 0x3d6   :  { %5144 = vmatpush3.bf16.msra.mxu0 %v8937_v41  ;;  %v4821_v47 = vpop.f32.mrb[67].mxu1  ;;  %5121 = vmatprep.subr.bf16.mxu1 %v8099_v0  ;;  %v1988_v26 = vmax.f32 %v8945_v55, %v1984_v48 }
 0x3d7   :  { %v2889_v39 = vadd.f32 %v4819_v60, %v7978_v25  ;;  %v4822_v41 = vadd.f32 %v4821_v47, %v4820_v46  ;;  %5145 = vmatprep.subr.bf16.mxu0 %v7801_v37  ;;  %v8953_v46 = vunpack.i.l.bf16 %v8289_v8 }
 0x3d8   :  { %v8342_v60 = vpack.c.bf16 %v1988_v26, %v1986_v6  ;;  %v8951_v26 = vld [vmem:[#allocation40_spill] sm:$0xff]  ;;  %v8956_v6 = vld [vmem:[#allocation34_spill] sm:$0xff] }
 0x3d9   :  { %v2892_v56 = vadd.f32 %v4822_v41, %v7978_v25  ;;  %5122 = vmatpush3.bf16.msra.mxu1 %v8119_v18  ;;  %v2930_v21 = vadd.f32 %v4841_v12, %v2889_v39  ;;  %v8348_v12 = vpack.c.bf16 %v1839_v50, %v1837_v44  ;;  %v1981_v47 = vsel %vm450_vm8, %v8953_v46, %v5504_v15  ;;  %v8958_v15 = vld [vmem:[#allocation17_spill] sm:$0xff]  ;;  %v8961_v46 = vld [vmem:[#allocation55_spill] sm:$0xff] }
 0x3da   :  { %5146 = vmatpush3.bf16.msra.mxu0 %v7813_v33  ;;  %5123 = vmatprep.subr.bf16.mxu1 %v8125_v54  ;;  %v8948_v33 = vld [vmem:[#allocation29_spill] sm:$0xff]  ;;  %v1985_v44 = vmax.f32 %v8958_v15, %v1981_v47 }
 0x3db   :  { %5175 = vmatprep.subr.bf16.mxu0 %v7819_v38  ;;  %v2933_v37 = vadd.f32 %v4844_v11, %v2892_v56  ;;  %v8949_v38 = vld [vmem:[#allocation39_spill] sm:$0xff]  ;;  %v8952_v11 = vld [vmem:[#allocation49_spill] sm:$0xff] }
 0x3dc   :  { %v8403_v31 = vpack.c.bf16 %v1987_v43, %v1985_v44  ;;  %v5772_v43 = vld [vmem:[#allocation6 + $0x78] sm:$0xff]  }
 0x3dd   :  { %3572 = vmatmul.mubr.bf16.vlgmr.msra.gmra.mrb[96].mxu0 %v8192_v42  ;;  %5124 = vmatpush3.bf16.msra.mxu1 %v8132_v34 }
 0x3de   :  { %5176 = vmatpush3.bf16.msra.mxu0 %v7826_v19  ;;  %3653 = vmatprep.mubr.bf16.mxu0 %v8342_v60  ;;  %v8950_v19 = vld [vmem:[#allocation33_spill] sm:$0xff] }
 0x3df   :  { %5153 = vmatprep.subr.bf16.mxu1 %v7832_v49  ;;  %5177 = vmatprep.subr.bf16.mxu0 %v7835_v57 }
 0x3e0   :  { %3513 = vmatmul.mubr.bf16.vlgmr.msra.gmra.mrb[92].mxu1 %v8348_v12 }
 0x3e1   :  { %5154 = vmatpush3.bf16.msra.mxu1 %v7914_v7  ;;  %3612 = vmatprep.mubr.bf16.mxu1 %v8272_v22 }
 0x3e2   :  { %5178 = vmatpush3.bf16.msra.mxu0 %v8043_v51  ;;  %5155 = vmatprep.subr.bf16.mxu1 %v7922_v59 }
 0x3e3   :  { %5179 = vmatprep.subr.bf16.mxu0 %v8047_v13 }
 0x3e5   :  { %5156 = vmatpush3.bf16.msra.mxu1 %v7927_v28 }
 0x3e6   :  { %5180 = vmatpush3.bf16.msra.mxu0 %v8051_v24  ;;  %5157 = vmatprep.subr.bf16.mxu1 %v7931_v10 }
 0x3e7   :  { %5181 = vmatprep.subr.bf16.mxu0 %v8055_v30 }
 0x3e9   :  { %5158 = vmatpush3.bf16.msra.mxu1 %v7935_v17 }
 0x3ea   :  { %5182 = vmatpush3.bf16.msra.mxu0 %v8059_v16  ;;  %5159 = vmatprep.subr.bf16.mxu1 %v8948_v33 }
 0x3eb   :  { %5183 = vmatprep.subr.bf16.mxu0 %v8067_v58 }
 0x3ed   :  { %5160 = vmatpush3.bf16.msra.mxu1 %v8949_v38 }
 0x3ee   :  { %5184 = vmatpush3.bf16.msra.mxu0 %v8075_v1  ;;  %5161 = vmatprep.subr.bf16.mxu1 %v8950_v19 }
 0x3ef   :  { %5185 = vmatprep.subr.bf16.mxu0 %v8079_v3  ;;  %v4883_v57 = vpop.f32.mrb[72].mxu0 }
 0x3f0   :  { %v4884_v42 = vpop.f32.mrb[73].mxu0 }
 0x3f1   :  { %5162 = vmatpush3.bf16.msra.mxu1 %v8951_v26  ;;  %v8371_v50 = vadd.f32 %v4884_v42, %v4883_v57  ;;  %v4886_v56 = vpop.f32.mrb[74].mxu0  ;;  %v2846_v42 = vmax.f32 %v8257_v53, 0.0  ;;  %v5765_v53 = vld [vmem:[#allocation6 + $0x40] sm:$0xff]  }
 0x3f2   :  { %5186 = vmatpush3.bf16.msra.mxu0 %v8095_v23  ;;  %5163 = vmatprep.subr.bf16.mxu1 %v8952_v11  ;;  %v4887_v29 = vpop.f32.mrb[75].mxu0 }
 0x3f3   :  { %v4861_v48 = vpop.f32.mrb[68].mxu1  ;;  %5187 = vmatprep.subr.bf16.mxu0 %v8099_v0  ;;  %v8388_v45 = vadd.f32 %v4887_v29, %v4886_v56 }
 0x3f4   :  { %v4862_v39 = vpop.f32.mrb[69].mxu1 }
 0x3f5   :  { %v4863_v41 = vadd.f32 %v4862_v39, %v4861_v48  ;;  %v4864_v9 = vpop.f32.mrb[70].mxu1  ;;  %5164 = vmatpush3.bf16.msra.mxu1 %v8956_v6  ;;  %v8960_v48 = vld [vmem:[#allocation50_spill] sm:$0xff] }
 0x3f6   :  { %5188 = vmatpush3.bf16.msra.mxu0 %v8119_v18  ;;  %v4865_v55 = vpop.f32.mrb[71].mxu1  ;;  %5165 = vmatprep.subr.bf16.mxu1 %v8957_v63 }
 0x3f7   :  { %v2971_v8 = vadd.f32 %v4863_v41, %v2930_v21  ;;  %v4866_v57 = vadd.f32 %v4865_v55, %v4864_v9  ;;  %5189 = vmatprep.subr.bf16.mxu0 %v8125_v54  ;;  %v5770_v41 = vld [vmem:[#allocation6 + $0x70] sm:$0xff]   ;;  %v3033_v9 = vadd.f32 %v8388_v45, %v7978_v25 }
 0x3f9   :  { %v2977_v56 = vmax.f32 %v2971_v8, 0.0  ;;  %v2974_v29 = vadd.f32 %v4866_v57, %v2933_v37  ;;  %5166 = vmatpush3.bf16.msra.mxu1 %v8960_v48  ;;  %v5768_v37 = vld [vmem:[#allocation6 + $0x8] sm:$0xff]   ;;  %v5637_v8 = vld [vmem:[#allocation8] sm:$0xff]  }
 0x3fa   :  { %5190 = vmatpush3.bf16.msra.mxu0 %v8132_v34  ;;  %5167 = vmatprep.subr.bf16.mxu1 %v8961_v46 }
 0x3fb   :  { %v8401_v14 = vmax.f32 %v2846_v42, %v2977_v56  ;;  %v2978_v47 = vmax.f32 %v2974_v29, 0.0  ;;  %5219 = vmatprep.subr.bf16.mxu0 %v7832_v49  ;;  %v5766_v49 = vld [vmem:[#allocation6] sm:$0xff]   ;;  %v8962_v42 = vld [vmem:[#allocation25_spill] sm:$0xff] }
 0x3fc   :  { %v8963_v29 = vld [vmem:[#allocation27_spill] sm:$0xff] }
 0x3fd   :  { %v8406_v21 = vmax.f32 %v2847_v40, %v2978_v47  ;;  %3654 = vmatmul.mubr.bf16.vlgmr.msra.gmra.mrb[100].mxu0 %v8403_v31  ;;  %5168 = vmatpush3.bf16.msra.mxu1 %v8020_v62  ;;  %v5773_v40 = vld [vmem:[#allocation6 + $0x38] sm:$0xff]   ;;  %v5774_v47 = vld [vmem:[#allocation6 + $0x140] sm:$0xff]  }
 0x3fe   :  { %5220 = vmatpush3.bf16.msra.mxu0 %v7914_v7  ;;  %3743 = vmatprep.mubr.bf16.mxu0 %v8342_v60  ;;  %v5767_v7 = vld [vmem:[#allocation6 + $0x48] sm:$0xff]  }
 0x3ff   :  { %5197 = vmatprep.subr.bf16.mxu1 %v5765_v53  ;;  %5221 = vmatprep.subr.bf16.mxu0 %v7922_v59  ;;  %v5516_v36 = vpack.i.bf16 %v8406_v21, %v8401_v14  ;;  %v8431_v59 = vpop.permute.xlu0 %5507  ;;  %v5639_v53 = vld [vmem:[#allocation8 + $0x8] sm:$0xff]  }
 0x400   :  { %3613 = vmatmul.mubr.bf16.vlgmr.msra.gmra.mrb[96].mxu1 %v8348_v12 }
 0x401   :  { %5198 = vmatpush3.bf16.msra.mxu1 %v5766_v49  ;;  %3702 = vmatprep.mubr.bf16.mxu1 %v8272_v22  ;;  %v5509_v22 = vunpack.i.l.bf16 %v8431_v59  ;;  %v5775_v49 = vld [vmem:[#allocation6 + $0x100] sm:$0xff]  }
 0x402   :  { %5222 = vmatpush3.bf16.msra.mxu0 %v7927_v28  ;;  %5517 = vrot.lane.b32.xlu0 %v5516_v36, %s5905_s2  ;;  %v5640_v36 = vld [vmem:[#allocation8 + $0x50] sm:$0xff]  }
 0x403   :  { %5199 = vmatprep.subr.bf16.mxu1 %v5767_v7  ;;  %5223 = vmatprep.subr.bf16.mxu0 %v7931_v10  ;;  %v8433_v10 = vpop.permute.xlu1 %5512  ;;  %v5776_v7 = vld [vmem:[#allocation6 + $0x148] sm:$0xff]  }
 0x404   :  { %v5515_v60 = vunpack.i.h.bf16 %v8433_v10 }
 0x405   :  { %5200 = vmatpush3.bf16.msra.mxu1 %v5768_v37  ;;  %v5641_v37 = vld [vmem:[#allocation8 + $0x10] sm:$0xff]  }
 0x406   :  { %5224 = vmatpush3.bf16.msra.mxu0 %v7935_v17  ;;  %5201 = vmatprep.subr.bf16.mxu1 %v8925_v52 }
 0x407   :  { %5225 = vmatprep.subr.bf16.mxu0 %v8948_v33  ;;  %v5514_v33 = vunpack.i.l.bf16 %v8433_v10 }
 0x409   :  { %5202 = vmatpush3.bf16.msra.mxu1 %v8926_v20 }
 0x40a   :  { %5226 = vmatpush3.bf16.msra.mxu0 %v8949_v38  ;;  %5203 = vmatprep.subr.bf16.mxu1 %v8927_v32  ;;  %v5510_v32 = vunpack.i.h.bf16 %v8431_v59 }
 0x40b   :  { %5227 = vmatprep.subr.bf16.mxu0 %v8950_v19  ;;  %v3030_v19 = vadd.f32 %v8371_v50, %v7978_v25  ;;  %v2141_v50 = vsel %vm450_vm8, %v5514_v33, %v5509_v22 }
 0x40c   :  { %v2142_v15 = vsel %vm450_vm8, %v5515_v60, %v5510_v32  ;;  %v2144_v56 = vmax.f32 %v8962_v42, %v2141_v50 }
 0x40d   :  { %5204 = vmatpush3.bf16.msra.mxu1 %v8928_v61 }
 0x40e   :  { %5228 = vmatpush3.bf16.msra.mxu0 %v8951_v26  ;;  %5205 = vmatprep.subr.bf16.mxu1 %v8929_v2 }
 0x40f   :  { %5229 = vmatprep.subr.bf16.mxu0 %v8952_v11 }
 0x410   :  { %v4927_v28 = vpop.f32.mrb[76].mxu0 }
 0x411   :  { %v4928_v17 = vpop.f32.mrb[77].mxu0  ;;  %5206 = vmatpush3.bf16.msra.mxu1 %v8930_v27 }
 0x412   :  { %v4929_v52 = vadd.f32 %v4928_v17, %v4927_v28  ;;  %v4930_v20 = vpop.f32.mrb[78].mxu0  ;;  %5230 = vmatpush3.bf16.msra.mxu0 %v8956_v6  ;;  %5207 = vmatprep.subr.bf16.mxu1 %v8931_v35  ;;  %v5769_v35 = vld [vmem:[#allocation6 + $0x28] sm:$0xff]   ;;  %v5643_v28 = vld [vmem:[#allocation8 + $0x18] sm:$0xff]   ;;  %v5644_v17 = vld [vmem:[#allocation8 + $0x60] sm:$0xff]  }
 0x413   :  { %v4931_v61 = vpop.f32.mrb[79].mxu0  ;;  %v4905_v2 = vpop.f32.mrb[72].mxu1  ;;  %5231 = vmatprep.subr.bf16.mxu0 %v8957_v63  ;;  %v5636_v63 = vld [vmem:[#allocation8 + $0x40] sm:$0xff]  }
 0x414   :  { %v4932_v38 = vadd.f32 %v4931_v61, %v4930_v20  ;;  %v4906_v27 = vpop.f32.mrb[73].mxu1 }
 0x415   :  { %v4907_v26 = vadd.f32 %v4906_v27, %v4905_v2  ;;  %v4908_v11 = vpop.f32.mrb[74].mxu1  ;;  %5208 = vmatpush3.bf16.msra.mxu1 %v5769_v35 }
 0x416   :  { %5232 = vmatpush3.bf16.msra.mxu0 %v8960_v48  ;;  %v4909_v39 = vpop.f32.mrb[75].mxu1  ;;  %5209 = vmatprep.subr.bf16.mxu1 %v5770_v41  ;;  %v2146_v48 = vmax.f32 %v8963_v29, %v2142_v15 }
 0x417   :  { %v3071_v6 = vadd.f32 %v4907_v26, %v3030_v19  ;;  %v4910_v55 = vadd.f32 %v4909_v39, %v4908_v11  ;;  %5233 = vmatprep.subr.bf16.mxu0 %v8961_v46  ;;  %v5638_v46 = vld [vmem:[#allocation8 + $0x48] sm:$0xff]   ;;  %v2140_v39 = vsel %vm450_vm8, %v5510_v32, %v5515_v60 }
 0x419   :  { %v8461_v45 = vadd.f32 %v4929_v52, %v3071_v6  ;;  %v3074_v44 = vadd.f32 %v4910_v55, %v3033_v9  ;;  %5210 = vmatpush3.bf16.msra.mxu1 %v5771_v5  ;;  %v5646_v52 = vld [vmem:[#allocation8 + $0x68] sm:$0xff]  }
 0x41a   :  { %5234 = vmatpush3.bf16.msra.mxu0 %v8020_v62  ;;  %5211 = vmatprep.subr.bf16.mxu1 %v5772_v43  ;;  %v2148_v62 = vpack.c.bf16 %v2146_v48, %v2144_v56  ;;  %v8964_v6 = vld [vmem:[#allocation24_spill] sm:$0xff] }
 0x41b   :  { %v8464_v57 = vadd.f32 %v4932_v38, %v3074_v44  ;;  %5263 = vmatprep.subr.bf16.mxu0 %v5636_v63  ;;  %v8965_v63 = vld [vmem:[#allocation26_spill] sm:$0xff] }
 0x41d   :  { %3744 = vmatmul.mubr.bf16.vlgmr.msra.gmra.mrb[104].mxu0 %v8403_v31  ;;  %5212 = vmatpush3.bf16.msra.mxu1 %v5773_v40  ;;  %v5642_v31 = vld [vmem:[#allocation8 + $0x58] sm:$0xff]  }
 0x41e   :  { %5241 = vmatprep.subr.bf16.mxu1 %v5774_v47  ;;  %5264 = vmatpush3.bf16.msra.mxu0 %v5637_v8 }
 0x41f   :  { %5265 = vmatprep.subr.bf16.mxu0 %v5638_v46 }
 0x420   :  { %3703 = vmatmul.mubr.bf16.vlgmr.msra.gmra.mrb[100].mxu1 %v8348_v12  ;;  %v5645_v12 = vld [vmem:[#allocation8 + $0x20] sm:$0xff]  }
 0x421   :  { %5242 = vmatpush3.bf16.msra.mxu1 %v5775_v49  ;;  %3784 = vmatprep.mubr.bf16.mxu1 %v2148_v62 }
 0x422   :  { %5243 = vmatprep.subr.bf16.mxu1 %v5776_v7  ;;  %5266 = vmatpush3.bf16.msra.mxu0 %v5639_v53  ;;  %v5523_v53 = vpop.permute.xlu1 %5522 }
 0x423   :  { %5267 = vmatprep.subr.bf16.mxu0 %v5640_v36  ;;  %v5525_v49 = vunpack.i.h.bf16 %v5523_v53  ;;  %v5524_v7 = vunpack.i.l.bf16 %v5523_v53 }
 0x425   :  { %5244 = vmatpush3.bf16.msra.mxu1 %v8043_v51  ;;  %v5647_v51 = vld [vmem:[#allocation8 + $0x28] sm:$0xff]  }
 0x426   :  { %5245 = vmatprep.subr.bf16.mxu1 %v8047_v13  ;;  %5268 = vmatpush3.bf16.msra.mxu0 %v5641_v37  ;;  %v5648_v13 = vld [vmem:[#allocation8 + $0x70] sm:$0xff]  }
 0x427   :  { %5269 = vmatprep.subr.bf16.mxu0 %v5642_v31 }
 0x429   :  { %5246 = vmatpush3.bf16.msra.mxu1 %v8051_v24 }
 0x42a   :  { %5247 = vmatprep.subr.bf16.mxu1 %v8055_v30  ;;  %5270 = vmatpush3.bf16.msra.mxu0 %v5643_v28  ;;  %v5649_v30 = vld [vmem:[#allocation8 + $0x30] sm:$0xff]  }
 0x42b   :  { %5271 = vmatprep.subr.bf16.mxu0 %v5644_v17 }
 0x42d   :  { %5248 = vmatpush3.bf16.msra.mxu1 %v8059_v16  ;;  %v5650_v16 = vld [vmem:[#allocation8 + $0x78] sm:$0xff]  }
 0x42e   :  { %5249 = vmatprep.subr.bf16.mxu1 %v8067_v58  ;;  %5272 = vmatpush3.bf16.msra.mxu0 %v5645_v12 }
 0x42f   :  { %5273 = vmatprep.subr.bf16.mxu0 %v5646_v52  ;;  %v8511_v52 = vld [vmem:[%s8597_s4] ss:$0 sm:$0xff] }
 0x430   :  { %v4971_v20 = vpop.f32.mrb[80].mxu0 }
 0x431   :  { %v4972_v61 = vpop.f32.mrb[81].mxu0  ;;  %5250 = vmatpush3.bf16.msra.mxu1 %v8075_v1  ;;  %v5651_v1 = vld [vmem:[#allocation8 + $0x38] sm:$0xff]  }
 0x432   :  { %v4973_v2 = vadd.f32 %v4972_v61, %v4971_v20  ;;  %v4974_v24 = vpop.f32.mrb[82].mxu0  ;;  %5251 = vmatprep.subr.bf16.mxu1 %v8079_v3  ;;  %5274 = vmatpush3.bf16.msra.mxu0 %v5647_v51  ;;  %v2139_v3 = vsel %vm450_vm8, %v5509_v22, %v5514_v33  ;;  %v2145_v22 = vmax.f32 %v8965_v63, %v2140_v39 }
 0x433   :  { %v4975_v38 = vpop.f32.mrb[83].mxu0  ;;  %v4949_v27 = vpop.f32.mrb[76].mxu1  ;;  %5275 = vmatprep.subr.bf16.mxu0 %v5648_v13  ;;  %v2143_v55 = vmax.f32 %v8964_v6, %v2139_v3 }
 0x434   :  { %v4976_v19 = vadd.f32 %v4975_v38, %v4974_v24  ;;  %v4950_v58 = vpop.f32.mrb[77].mxu1  ;;  %v8966_v24 = vld [vmem:[#allocation54_spill] sm:$0xff]  ;;  %v8967_v38 = vld [vmem:[#allocation52_spill] sm:$0xff] }
 0x435   :  { %v4951_v26 = vadd.f32 %v4950_v58, %v4949_v27  ;;  %v4952_v11 = vpop.f32.mrb[78].mxu1  ;;  %5252 = vmatpush3.bf16.msra.mxu1 %v8095_v23  ;;  %v2147_v4 = vpack.c.bf16 %v2145_v22, %v2143_v55  ;;  %v2713_v27 = vmax.f32 %v8967_v38, %v5524_v7 }
 0x436   :  { %v4953_v35 = vpop.f32.mrb[79].mxu1  ;;  %5253 = vmatprep.subr.bf16.mxu1 %v8099_v0  ;;  %5276 = vmatpush3.bf16.msra.mxu0 %v5649_v30  ;;  %v2714_v30 = vmax.f32 %v8966_v24, %v5525_v49 }
 0x437   :  { %v3161_v23 = vadd.f32 %v4951_v26, %v7978_v25  ;;  %v4954_v41 = vadd.f32 %v4953_v35, %v4952_v11  ;;  %5277 = vmatprep.subr.bf16.mxu0 %v5650_v16 }
 0x439   :  { %v3164_v0 = vadd.f32 %v4954_v41, %v7978_v25  ;;  %5254 = vmatpush3.bf16.msra.mxu1 %v8119_v18  ;;  %v3202_v9 = vadd.f32 %v4973_v2, %v3161_v23  ;;  %v2715_v23 = vpack.c.bf16 %v2714_v30, %v2713_v27 }
 0x43a   :  { %5255 = vmatprep.subr.bf16.mxu1 %v8125_v54  ;;  %5278 = vmatpush3.bf16.msra.mxu0 %v5651_v1  ;;  %v3118_v54 = vmax.f32 %v8461_v45, 0.0 }
 0x43b   :  { %v3205_v59 = vadd.f32 %v4976_v19, %v3164_v0 }
 0x43d   :  { %5256 = vmatpush3.bf16.msra.mxu1 %v8132_v34  ;;  %v3119_v34 = vmax.f32 %v8464_v57, 0.0 }
 0x440   :  { %3785 = vmatmul.mubr.bf16.vlgmr.msra.gmra.mrb[104].mxu1 %v2147_v4 }
 0x450   :  { %v5015_v10 = vpop.f32.mrb[84].mxu0 }
 0x451   :  { %v5016_v32 = vpop.f32.mrb[85].mxu0 }
 0x452   :  { %v5017_v60 = vadd.f32 %v5016_v32, %v5015_v10  ;;  %v5018_v33 = vpop.f32.mrb[86].mxu0 }
 0x453   :  { %v5019_v25 = vpop.f32.mrb[87].mxu0  ;;  %v4993_v50 = vpop.f32.mrb[80].mxu1 }
 0x454   :  { %v5020_v18 = vadd.f32 %v5019_v25, %v5018_v33  ;;  %v4994_v15 = vpop.f32.mrb[81].mxu1  ;;  %v3302_v51 = vadd.f32 %v8511_v52, %v5017_v60 }
 0x455   :  { %v4995_v44 = vadd.f32 %v4994_v15, %v4993_v50  ;;  %v4996_v5 = vpop.f32.mrb[82].mxu1  ;;  %v5653_v15 = vld [vmem:[#allocation8 + $0x80] sm:$0xff]  }
 0x456   :  { %v4997_v43 = vpop.f32.mrb[83].mxu1  ;;  %v3305_v16 = vadd.f32 %v8511_v52, %v5020_v18  ;;  %v5652_v18 = vld [vmem:[#allocation8 + $0xc0] sm:$0xff]  }
 0x457   :  { %v3243_v8 = vadd.f32 %v4995_v44, %v3202_v9  ;;  %v4998_v42 = vadd.f32 %v4997_v43, %v4996_v5  ;;  %5285 = vmatprep.subr.bf16.mxu1 %v5652_v18  ;;  %v5654_v44 = vld [vmem:[#allocation8 + $0xc8] sm:$0xff]   ;;  %v5656_v43 = vld [vmem:[#allocation8 + $0xd0] sm:$0xff]  }
 0x458   :  { %5286 = vmatpush3.bf16.msra.mxu1 %v5653_v15  ;;  %v5655_v5 = vld [vmem:[#allocation8 + $0x88] sm:$0xff]  }
 0x459   :  { %v3249_v56 = vmax.f32 %v3243_v8, 0.0  ;;  %v3246_v29 = vadd.f32 %v4998_v42, %v3205_v59  ;;  %5287 = vmatprep.subr.bf16.mxu1 %v5654_v44  ;;  %v5657_v8 = vld [vmem:[#allocation8 + $0x90] sm:$0xff]   ;;  %v5658_v42 = vld [vmem:[#allocation8 + $0xd8] sm:$0xff]   ;;  %v5673_v18 = vld [vmem:[#allocation8 + $0x128] sm:$0xff]  }
 0x45b   :  { %v8501_v48 = vmax.f32 %v3118_v54, %v3249_v56  ;;  %v3250_v46 = vmax.f32 %v3246_v29, 0.0  ;;  %v5659_v54 = vld [vmem:[#allocation8 + $0x98] sm:$0xff]   ;;  %v5660_v56 = vld [vmem:[#allocation8 + $0xe0] sm:$0xff]  }
 0x45c   :  { %5288 = vmatpush3.bf16.msra.mxu1 %v5655_v5  ;;  %v5661_v29 = vld [vmem:[#allocation8 + $0xa0] sm:$0xff]  }
 0x45d   :  { %v8503_v40 = vmax.f32 %v3119_v34, %v3250_v46  ;;  %5289 = vmatprep.subr.bf16.mxu1 %v5656_v43  ;;  %v5662_v34 = vld [vmem:[#allocation8 + $0xe8] sm:$0xff]  }
 0x45e   :  { %v5663_v46 = vld [vmem:[#allocation8 + $0xa8] sm:$0xff]  }
 0x45f   :  { %v5531_v47 = vpack.i.bf16 %v8503_v40, %v8501_v48 }
 0x460   :  { %5290 = vmatpush3.bf16.msra.mxu1 %v5657_v8 }
 0x461   :  { %5532 = vrot.lane.b32.xlu1 %v5531_v47, %s5905_s2  ;;  %5291 = vmatprep.subr.bf16.mxu1 %v5658_v42  ;;  %v5664_v47 = vld [vmem:[#allocation8 + $0xf0] sm:$0xff]  }
 0x464   :  { %5292 = vmatpush3.bf16.msra.mxu1 %v5659_v54 }
 0x465   :  { %5293 = vmatprep.subr.bf16.mxu1 %v5660_v56 }
 0x468   :  { %5294 = vmatpush3.bf16.msra.mxu1 %v5661_v29 }
 0x469   :  { %5295 = vmatprep.subr.bf16.mxu1 %v5662_v34 }
 0x46c   :  { %5296 = vmatpush3.bf16.msra.mxu1 %v5663_v46 }
 0x46d   :  { %5297 = vmatprep.subr.bf16.mxu1 %v5664_v47 }
 0x470   :  { %v5059_v62 = vpop.f32.mrb[88].mxu0 }
 0x471   :  { %v5060_v36 = vpop.f32.mrb[89].mxu0 }
 0x472   :  { %v5061_v45 = vadd.f32 %v5060_v36, %v5059_v62  ;;  %v5062_v37 = vpop.f32.mrb[90].mxu0 }
 0x473   :  { %v5063_v31 = vpop.f32.mrb[91].mxu0  ;;  %v5037_v28 = vpop.f32.mrb[84].mxu1 }
 0x474   :  { %v5064_v57 = vadd.f32 %v5063_v31, %v5062_v37  ;;  %v5518_v17 = vpop.permute.xlu0 %5517  ;;  %v5038_v12 = vpop.f32.mrb[85].mxu1 }
 0x475   :  { %v5520_v13 = vunpack.i.h.bf16 %v5518_v17  ;;  %v5519_v20 = vunpack.i.l.bf16 %v5518_v17  ;;  %v5039_v61 = vadd.f32 %v5038_v12, %v5037_v28  ;;  %v5040_v2 = vpop.f32.mrb[86].mxu1  ;;  %v5665_v28 = vld [vmem:[#allocation8 + $0xb0] sm:$0xff]  }
 0x476   :  { %v5041_v19 = vpop.f32.mrb[87].mxu1  ;;  %5298 = vmatpush3.bf16.msra.mxu1 %v5665_v28 }
 0x477   :  { %v2986_v58 = vmax.f32 %v8406_v21, %v5520_v13  ;;  %v2985_v26 = vmax.f32 %v8401_v14, %v5519_v20  ;;  %v3343_v11 = vadd.f32 %v5039_v61, %v3302_v51  ;;  %v5042_v35 = vadd.f32 %v5041_v19, %v5040_v2  ;;  %v5666_v51 = vld [vmem:[#allocation8 + $0xf8] sm:$0xff]  }
 0x478   :  { %v5667_v13 = vld [vmem:[#allocation8 + $0xb8] sm:$0xff]   ;;  %5299 = vmatprep.subr.bf16.mxu1 %v5666_v51 }
 0x479   :  { %v8519_v1 = vadd.f32 %v5061_v45, %v3343_v11  ;;  %v3346_v3 = vadd.f32 %v5042_v35, %v3305_v16  ;;  %v2987_v39 = vpack.c.bf16 %v2986_v58, %v2985_v26  ;;  %v5675_v51 = vld [vmem:[#allocation8 + $0x138] sm:$0xff]  }
 0x47a   :  { %5300 = vmatpush3.bf16.msra.mxu1 %v5667_v13 }
 0x47b   :  { %v8521_v41 = vadd.f32 %v5064_v57, %v3346_v3  ;;  %4169 = vmatprep.mubr.bf16.mxu0 %v2987_v39  ;;  %v3390_v2 = vmax.f32 %v8519_v1, 0.0 }
 0x47c   :  { %4170 = vmatmul.mubr.bf16.vlgmr.msra.gmra.mrb[108].mxu0 %v2715_v23 }
 0x47d   :  { %v3391_v38 = vmax.f32 %v8521_v41, 0.0 }
 0x490   :  { %v5103_v0 = vpop.f32.mrb[92].mxu0 }
 0x491   :  { %v5104_v9 = vpop.f32.mrb[93].mxu0 }
 0x492   :  { %v5105_v6 = vadd.f32 %v5104_v9, %v5103_v0  ;;  %v5106_v55 = vpop.f32.mrb[94].mxu0 }
 0x493   :  { %v5107_v63 = vpop.f32.mrb[95].mxu0  ;;  %v5081_v22 = vpop.f32.mrb[88].mxu1 }
 0x494   :  { %v5108_v21 = vadd.f32 %v5107_v63, %v5106_v55  ;;  %v5082_v59 = vpop.f32.mrb[89].mxu1  ;;  %v5668_v55 = vld [vmem:[#allocation8 + $0x100] sm:$0xff]  }
 0x495   :  { %v5083_v14 = vadd.f32 %v5082_v59, %v5081_v22  ;;  %v5084_v4 = vpop.f32.mrb[90].mxu1  ;;  %v5923_v22 = vmov 0.0  }
 0x496   :  { %v5085_v10 = vpop.f32.mrb[91].mxu1  ;;  %5325 = vmatprep.subr.bf16.mxu0 %v5923_v22  ;;  %5345 = vmatprep.subr.bf16.mxu1 %v5923_v22 }
 0x497   :  { %v3433_v32 = vadd.f32 %v8511_v52, %v5083_v14  ;;  %v5086_v60 = vadd.f32 %v5085_v10, %v5084_v4  ;;  %5326 = vmatpush3.bf16.msra.mxu0 %v5668_v55  ;;  %v5669_v4 = vld [vmem:[#allocation8 + $0x108] sm:$0xff]   ;;  %5341 = vmatprep.mubr.msk.bf16.mxu0 %vm5924_vm1, %v5923_v22 }
 0x498   :  { %5327 = vmatprep.subr.bf16.mxu0 %v5923_v22 }
 0x499   :  { %v3436_v33 = vadd.f32 %v8511_v52, %v5086_v60  ;;  %v3474_v25 = vadd.f32 %v5105_v6, %v3433_v32 }
 0x49b   :  { %v3477_v50 = vadd.f32 %v5108_v21, %v3436_v33  ;;  %5328 = vmatpush3.bf16.msra.mxu0 %v5669_v4  ;;  %v5670_v33 = vld [vmem:[#allocation8 + $0x110] sm:$0xff]   ;;  %v5677_v4 = vld [vmem:[%s8600_s7 + $0x8] sm:$0xff]  }
 0x49c   :  { %5329 = vmatprep.subr.bf16.mxu0 %v5923_v22 }
 0x49f   :  { %5330 = vmatpush3.bf16.msra.mxu0 %v5670_v33  ;;  %v5678_v33 = vld [vmem:[%s8600_s7 + $0x10] sm:$0xff]  }
 0x4a0   :  { %5331 = vmatprep.subr.bf16.mxu0 %v5923_v22 }
 0x4b0   :  { %v5147_v53 = vpop.f32.mrb[96].mxu0 }
 0x4b1   :  { %v5148_v62 = vpop.f32.mrb[97].mxu0 }
 0x4b2   :  { %v5149_v36 = vadd.f32 %v5148_v62, %v5147_v53  ;;  %v5150_v49 = vpop.f32.mrb[98].mxu0 }
 0x4b3   :  { %v5151_v7 = vpop.f32.mrb[99].mxu0  ;;  %v5125_v45 = vpop.f32.mrb[92].mxu1 }
 0x4b4   :  { %v5152_v37 = vadd.f32 %v5151_v7, %v5150_v49  ;;  %v5126_v31 = vpop.f32.mrb[93].mxu1  ;;  %v3574_v41 = vadd.f32 %v8511_v52, %v5149_v36 }
 0x4b5   :  { %v5127_v57 = vadd.f32 %v5126_v31, %v5125_v45  ;;  %v5128_v17 = vpop.f32.mrb[94].mxu1  ;;  %v5674_v45 = vld [vmem:[#allocation8 + $0x130] sm:$0xff]  }
 0x4b6   :  { %v5129_v12 = vpop.f32.mrb[95].mxu1  ;;  %v3577_v21 = vadd.f32 %v8511_v52, %v5152_v37 }
 0x4b7   :  { %v3515_v20 = vadd.f32 %v5127_v57, %v3474_v25  ;;  %v5130_v61 = vadd.f32 %v5129_v12, %v5128_v17  ;;  %v5671_v25 = vld [vmem:[#allocation8 + $0x118] sm:$0xff]  }
 0x4b8   :  { %5332 = vmatpush3.bf16.msra.mxu0 %v5671_v25  ;;  %v5679_v25 = vld [vmem:[%s8600_s7 + $0x18] sm:$0xff]  }
 0x4b9   :  { %v3521_v24 = vmax.f32 %v3515_v20, 0.0  ;;  %v3518_v30 = vadd.f32 %v5130_v61, %v3477_v50  ;;  %v5672_v50 = vld [vmem:[#allocation8 + $0x120] sm:$0xff]   ;;  %5333 = vmatprep.subr.bf16.mxu0 %v5923_v22 }
 0x4bb   :  { %v8527_v27 = vmax.f32 %v3390_v2, %v3521_v24  ;;  %v3522_v16 = vmax.f32 %v3518_v30, 0.0 }
 0x4bc   :  { %5334 = vmatpush3.bf16.msra.mxu0 %v5672_v50  ;;  %v5680_v50 = vld [vmem:[%s8600_s7 + $0x20] sm:$0xff]  }
 0x4bd   :  { %v8529_v19 = vmax.f32 %v3391_v38, %v3522_v16  ;;  %5335 = vmatprep.subr.bf16.mxu0 %v5923_v22 }
 0x4bf   :  { %v5526_v58 = vpack.i.bf16 %v8529_v19, %v8527_v27 }
 0x4c0   :  { %5336 = vmatpush3.bf16.msra.mxu0 %v5673_v18  ;;  %v5681_v18 = vld [vmem:[%s8600_s7 + $0x28] sm:$0xff]  }
 0x4c1   :  { %5527 = vrot.lane.b32.xlu0 %v5526_v58, %s5905_s2  ;;  %5337 = vmatprep.subr.bf16.mxu0 %v5923_v22 }
 0x4c4   :  { %5338 = vmatpush3.bf16.msra.mxu0 %v5674_v45 }
 0x4c5   :  { %5339 = vmatprep.subr.bf16.mxu0 %v5923_v22 }
 0x4c8   :  { %5340 = vmatpush3.bf16.msra.mxu0 %v5675_v51 }
 0x4d0   :  { %v5191_v26 = vpop.f32.mrb[100].mxu0 }
 0x4d1   :  { %v5192_v11 = vpop.f32.mrb[101].mxu0 }
 0x4d2   :  { %v5193_v35 = vadd.f32 %v5192_v11, %v5191_v26  ;;  %v5194_v3 = vpop.f32.mrb[102].mxu0 }
 0x4d3   :  { %v5195_v1 = vpop.f32.mrb[103].mxu0  ;;  %v5169_v39 = vpop.f32.mrb[96].mxu1 }
 0x4d4   :  { %v5196_v23 = vadd.f32 %v5195_v1, %v5194_v3  ;;  %v5170_v0 = vpop.f32.mrb[97].mxu1  ;;  %v5533_v16 = vpop.permute.xlu1 %5532 }
 0x4d5   :  { %v5171_v9 = vadd.f32 %v5170_v0, %v5169_v39  ;;  %v5172_v6 = vpop.f32.mrb[98].mxu1  ;;  %v5535_v58 = vunpack.i.h.bf16 %v5533_v16  ;;  %v5534_v26 = vunpack.i.l.bf16 %v5533_v16 }
 0x4d6   :  { %v5173_v63 = vpop.f32.mrb[99].mxu1 }
 0x4d7   :  { %v3615_v59 = vadd.f32 %v5171_v9, %v3574_v41  ;;  %v5174_v14 = vadd.f32 %v5173_v63, %v5172_v6  ;;  %v3258_v1 = vmax.f32 %v8503_v40, %v5535_v58  ;;  %v3257_v39 = vmax.f32 %v8501_v48, %v5534_v26  ;;  %v5676_v48 = vld [vmem:[%s8600_s7] sm:$0xff]  }
 0x4d9   :  { %v3656_v10 = vadd.f32 %v5193_v35, %v3615_v59  ;;  %v3618_v32 = vadd.f32 %v5174_v14, %v3577_v21  ;;  %v3259_v9 = vpack.c.bf16 %v3258_v1, %v3257_v39 }
 0x4db   :  { %v3659_v60 = vadd.f32 %v5196_v23, %v3618_v32  ;;  %v3662_v13 = vmax.f32 %v3656_v10, 0.0 }
 0x4f0   :  { %v5235_v15 = vpop.f32.mrb[104].mxu0 }
 0x4f1   :  { %v5236_v44 = vpop.f32.mrb[105].mxu0 }
 0x4f2   :  { %v5237_v5 = vadd.f32 %v5236_v44, %v5235_v15  ;;  %v5238_v43 = vpop.f32.mrb[106].mxu0  ;;  %v5682_v15 = vld [vmem:[%s8600_s7 + $0x30] sm:$0xff]   ;;  %v5683_v44 = vld [vmem:[%s8600_s7 + $0x38] sm:$0xff]  }
 0x4f3   :  { %v5239_v8 = vpop.f32.mrb[107].mxu0  ;;  %v5213_v42 = vpop.f32.mrb[100].mxu1 }
 0x4f4   :  { %v5240_v54 = vadd.f32 %v5239_v8, %v5238_v43  ;;  %v5214_v56 = vpop.f32.mrb[101].mxu1 }
 0x4f5   :  { %v5215_v29 = vadd.f32 %v5214_v56, %v5213_v42  ;;  %v5216_v34 = vpop.f32.mrb[102].mxu1 }
 0x4f6   :  { %v5217_v46 = vpop.f32.mrb[103].mxu1 }
 0x4f7   :  { %v3705_v47 = vadd.f32 %v8511_v52, %v5215_v29  ;;  %v5218_v53 = vadd.f32 %v5217_v46, %v5216_v34 }
 0x4f9   :  { %v3708_v62 = vadd.f32 %v8511_v52, %v5218_v53  ;;  %v3746_v36 = vadd.f32 %v5237_v5, %v3705_v47  ;;  %v3663_v52 = vmax.f32 %v3659_v60, 0.0  ;;  %v4553_v5 = vld [vmem:[#allocation9] ss:$0 sm:$0xff] }
 0x4fb   :  { %v3749_v49 = vadd.f32 %v5240_v54, %v3708_v62 }
 0x513   :  { %v5257_v7 = vpop.f32.mrb[104].mxu1 }
 0x514   :  { %v5258_v37 = vpop.f32.mrb[105].mxu1 }
 0x515   :  { %v5259_v31 = vadd.f32 %v5258_v37, %v5257_v7  ;;  %v5260_v28 = vpop.f32.mrb[106].mxu1 }
 0x516   :  { %v5261_v57 = vpop.f32.mrb[107].mxu1 }
 0x517   :  { %v3787_v17 = vadd.f32 %v5259_v31, %v3746_v36  ;;  %v5262_v12 = vadd.f32 %v5261_v57, %v5260_v28  ;;  %v4594_v57 = vld [vmem:[#allocation11] ss:$0 sm:$0xff] }
 0x519   :  { %v3793_v20 = vmax.f32 %v3787_v17, 0.0  ;;  %v3790_v61 = vadd.f32 %v5262_v12, %v3749_v49 }
 0x51b   :  { %v3795_v2 = vmax.f32 %v3662_v13, %v3793_v20  ;;  %v3794_v24 = vmax.f32 %v3790_v61, 0.0 }
 0x51d   :  { %v3796_v30 = vmax.f32 %v3663_v52, %v3794_v24 }
 0x51f   :  { %v5536_v38 = vpack.i.bf16 %v3796_v30, %v3795_v2 }
 0x521   :  { %5537 = vrot.lane.b32.xlu0 %v5536_v38, %s5905_s2 }
 0x533   :  { %v5528_v11 = vpop.permute.xlu0 %5527 }
 0x534   :  { %v5530_v35 = vunpack.i.h.bf16 %v5528_v11  ;;  %v5529_v3 = vunpack.i.l.bf16 %v5528_v11 }
 0x536   :  { %v3530_v23 = vmax.f32 %v8529_v19, %v5530_v35  ;;  %v3529_v0 = vmax.f32 %v8527_v27, %v5529_v3 }
 0x538   :  { %v3531_v41 = vpack.c.bf16 %v3530_v23, %v3529_v0 }
 0x53a   :  { %4210 = vmatprep.mubr.bf16.mxu1 %v3531_v41 }
 0x53b   :  { %4211 = vmatmul.mubr.bf16.vlgmr.msra.gmra.mrb[108].mxu1 %v3259_v9 }
 0x53c   :  { %5361 = vmatprep.mubr.msk.bf16.mxu1 %vm5924_vm1, %v5923_v22  ;;  %5346 = vmatpush3.bf16.msra.mxu1 %v5676_v48 }
 0x53d   :  { %5347 = vmatprep.subr.bf16.mxu1 %v5923_v22 }
 0x540   :  { %5348 = vmatpush3.bf16.msra.mxu1 %v5677_v4 }
 0x541   :  { %5349 = vmatprep.subr.bf16.mxu1 %v5923_v22 }
 0x544   :  { %5350 = vmatpush3.bf16.msra.mxu1 %v5678_v33 }
 0x545   :  { %5351 = vmatprep.subr.bf16.mxu1 %v5923_v22 }
 0x548   :  { %5352 = vmatpush3.bf16.msra.mxu1 %v5679_v25 }
 0x549   :  { %5353 = vmatprep.subr.bf16.mxu1 %v5923_v22 }
 0x54c   :  { %5354 = vmatpush3.bf16.msra.mxu1 %v5680_v50 }
 0x54d   :  { %5355 = vmatprep.subr.bf16.mxu1 %v5923_v22 }
 0x54f   :  { %v5279_v6 = vpop.f32.mrb[108].mxu0 }
 0x550   :  { %v5280_v55 = vpop.f32.mrb[109].mxu0  ;;  %5356 = vmatpush3.bf16.msra.mxu1 %v5681_v18 }
 0x551   :  { %v5281_v63 = vadd.f32 %v5280_v55, %v5279_v6  ;;  %v5282_v21 = vpop.f32.mrb[110].mxu0  ;;  %5357 = vmatprep.subr.bf16.mxu1 %v5923_v22 }
 0x552   :  { %v5283_v59 = vpop.f32.mrb[111].mxu0 }
 0x553   :  { %v5284_v14 = vadd.f32 %v5283_v59, %v5282_v21  ;;  %v4172_v42 = vadd.f32 %v5281_v63, %v4553_v5 }
 0x554   :  { %5358 = vmatpush3.bf16.msra.mxu1 %v5682_v15 }
 0x555   :  { %5359 = vmatprep.subr.bf16.mxu1 %v5923_v22  ;;  %v4175_v34 = vadd.f32 %v5284_v14, %v4553_v5 }
 0x558   :  { %5360 = vmatpush3.bf16.msra.mxu1 %v5683_v44 }
 0x593   :  { %v5538_v40 = vpop.permute.xlu0 %5537 }
 0x594   :  { %v5540_v19 = vunpack.i.h.bf16 %v5538_v40  ;;  %v5539_v27 = vunpack.i.l.bf16 %v5538_v40 }
 0x596   :  { %v3802_v10 = vmax.f32 %v3796_v30, %v5540_v19  ;;  %v3801_v32 = vmax.f32 %v3795_v2, %v5539_v27 }
 0x598   :  { %v3803_v60 = vpack.c.bf16 %v3802_v10, %v3801_v32 }
 0x59a   :  { %5342 = vmatmul.mubr.bf16.vlgmr.msra.gmra.mrb[112].mxu0 %v3803_v60 }
 0x60e   :  { %v5301_v43 = vpop.f32.mrb[108].mxu1 }
 0x60f   :  { %v5302_v8 = vpop.f32.mrb[109].mxu1 }
 0x610   :  { %v5303_v54 = vadd.f32 %v5302_v8, %v5301_v43  ;;  %v5304_v56 = vpop.f32.mrb[110].mxu1 }
 0x611   :  { %v5305_v29 = vpop.f32.mrb[111].mxu1 }
 0x612   :  { %v5306_v46 = vadd.f32 %v5305_v29, %v5304_v56  ;;  %v4213_v47 = vadd.f32 %v5303_v54, %v4172_v42 }
 0x614   :  { %v4216_v53 = vadd.f32 %v5306_v46, %v4175_v34 }
 0x66d   :  { %v4253_v62 = vpop.f32.mrb[112].mxu0 }
 0x66e   :  { %v4254_v36 = vadd.f32 %v4253_v62, %v4213_v47  ;;  %v5343_v49 = vpop.f32.mrb[113].mxu0 }
 0x66f   :  { %v4256_v22 = vpop.f32.mrb[114].mxu0 }
 0x670   :  { %v4257_v7 = vadd.f32 %v4256_v22, %v4216_v53  ;;  %v5344_v45 = vpop.f32.mrb[115].mxu0  ;;  %v4260_v37 = vmax.f32 %v4254_v36, 0.0 }
 0x672   :  { %v4261_v31 = vmax.f32 %v4257_v7, 0.0 }
 0x674   :  { %v4262_v28 = vpack.c.bf16 %v4261_v31, %v4260_v37 }
 0x676   :  { %5362 = vmatmul.mubr.bf16.vlgmr.msra.gmra.mrb[112].mxu1 %v4262_v28 }
 0x749   :  { %v4368_v17 = vpop.f32.mrb[112].mxu1 }
 0x74a   :  { %v4369_v12 = vadd.f32 %v4594_v57, %v4368_v17  ;;  %v5363_v51 = vpop.f32.mrb[113].mxu1 }
 0x74b   :  { %v4371_v13 = vpop.f32.mrb[114].mxu1 }
 0x74c   :  { %v4372_v20 = vadd.f32 %v4594_v57, %v4371_v13  ;;  %4375 = vmax.xlane.f32.xlu1 %v4369_v12  ;;  %v5364_v61 = vpop.f32.mrb[115].mxu1 }
 0x74e   :  { %4377 = vmax.xlane.f32.xlu0 %v4372_v20 }
 0x7d9   :  { %v4376_v52 = vpop.xlane.xlu1 %4375 }
 0x7da   :  { %v4379_v2 = vsub.f32 %v4369_v12, %v4376_v52 }
 0x7db   :  { %v4378_v24 = vpop.xlane.xlu0 %4377 }
 0x7dc   :  { %v4381_v30 = vmul.f32 1.442695, %v4379_v2  ;;  %v4380_v38 = vsub.f32 %v4372_v20, %v4378_v24 }
 0x7de   :  { %5684 = vpow2.f32 %v4381_v30  ;;  %v4383_v16 = vmul.f32 1.442695, %v4380_v38 }
 0x7e0   :  { %5686 = vpow2.f32 %v4383_v16 }
 0x7e8   :  { %v5685_v58 = vpop.eup %5684 }
 0x7e9   :  { %4385 = vadd.xlane.f32.xlu0 %v5685_v58 }
 0x7ea   :  { %v5687_v26 = vpop.eup %5686 }
 0x7eb   :  { %4387 = vadd.xlane.f32.xlu1 %v5687_v26 }
 0x876   :  { %v4386_v11 = vpop.xlane.xlu0 %4385 }
 0x877   :  { %5688 = vlog2.f32 %v4386_v11 }
 0x878   :  { %v4388_v35 = vpop.xlane.xlu1 %4387 }
 0x879   :  { %5690 = vlog2.f32 %v4388_v35 }
 0x881   :  { %v5689_v3 = vpop.eup %5688 }
 0x882   :  { %v4390_v1 = vmul.f32 0.6931472, %v5689_v3 }
 0x883   :  { %v5691_v39 = vpop.eup %5690 }
 0x884   :  { %v4393_v23 = vsub.f32 %v4379_v2, %v4390_v1  ;;  %v4392_v0 = vmul.f32 0.6931472, %v5691_v39 }
 0x886   :  { %4395 = vst [vmem:[%s8602_s9] sm:$0xff] %v4393_v23  ;;  %v4394_v41 = vsub.f32 %v4380_v38, %v4392_v0 }
 0x888   :  { %4396 = vst [vmem:[%s8602_s9 + $0x8] sm:$0xff] %v4394_v41 }
 0x889   :  { %4401 = vsyncpa [#allocation5], 1 }
 0x88a   :  { %4402 = vsyncpa [#allocation7], 1 }
 0x88b   :  { %4403 = vsyncpa [#allocation10], 1 }

</bundles_post_ra>
